<compile_context>
chip_gen: v6e
topology: v6e:2x2x1
jax: 0.10.0
libtpu: 0.0.40
codegen_flags: <defaults>
</compile_context>

<pallas_src>
import functools

import jax
import jax.numpy as jnp
from jax import lax
from jax.experimental import pallas as pl
from jax.experimental.pallas import tpu as pltpu


def sru_kernel(x_ref, w0_ref, ws_ref, bs_ref, out_ref,
               h_scr, f_scr, fx_scr, r_scr, rres_scr,
               *, num_layers, seq_len):
    """One (batch tile, layer) grid step of the L-layer SRU + final L2 normalization.

    x_ref   : (T, TB, K)  bf16  embedded input, time-major (TB % 16 == 0)
    w0_ref  : (4, K, D)   bf16  layer-0 per-gate weights (x_tilde, forget, reset, highway)
    ws_ref  : (3, D, D)   bf16  current layer's per-gate weights (layers >= 1)
    bs_ref  : (2, D)      f32   current layer's (forget, reset) gate biases
    out_ref : (TB, D)     f32   L2-normalized last-timestep hidden of the top layer
    h_scr   : (T*TB, D)   bf16  current layer's output sequence (next layer's input)
    f_scr   : (T*TB, D)   f32   sigmoid forget gate
    fx_scr  : (T*TB, D)   f32   (1 - f) * x_tilde
    r_scr   : (T*TB, D)   bf16  sigmoid reset gate
    rres_scr: (T*TB, D)   bf16  (1 - r) * residual
    """
    layer = pl.program_id(1)
    T = seq_len
    TB, D = out_ref.shape
    K = x_ref.shape[2]
    f32 = jnp.float32
    bf16 = jnp.bfloat16

    bf_bias = bs_ref[0:1, :]                                        # (1, D)
    br_bias = bs_ref[1:2, :]                                        # (1, D)

    # ---- bulk per-gate projections (MXU, bf16 operands, f32 accumulation) ----
    # Gate-by-gate computation keeps the peak live VMEM at one (T*TB, D) slab instead of
    # the full fused u plus all gate slabs.
    @pl.when(layer == 0)
    def _():
        # (T, TB, K) -> (T*TB, K): TB % 16 == 0 so this is a free relayout for bf16.
        x2d = x_ref[...].reshape(T * TB, K)
        f_seq = jax.nn.sigmoid(
            jnp.dot(x2d, w0_ref[1], preferred_element_type=f32) + bf_bias)
        f_scr[...] = f_seq
        fx_scr[...] = (1.0 - f_seq) * jnp.dot(
            x2d, w0_ref[0], preferred_element_type=f32)
        r_seq = jax.nn.sigmoid(
            jnp.dot(x2d, w0_ref[2], preferred_element_type=f32) + br_bias)
        r_scr[...] = r_seq.astype(bf16)
        res = jnp.dot(x2d, w0_ref[3], preferred_element_type=f32)   # projected highway
        rres_scr[...] = ((1.0 - r_seq) * res).astype(bf16)

    @pl.when(layer > 0)
    def _():
        h2d = h_scr[...]                                            # (T*TB, D) bf16
        f_seq = jax.nn.sigmoid(
            jnp.dot(h2d, ws_ref[1], preferred_element_type=f32) + bf_bias)
        f_scr[...] = f_seq
        fx_scr[...] = (1.0 - f_seq) * jnp.dot(
            h2d, ws_ref[0], preferred_element_type=f32)
        r_seq = jax.nn.sigmoid(
            jnp.dot(h2d, ws_ref[2], preferred_element_type=f32) + br_bias)
        r_scr[...] = r_seq.astype(bf16)
        rres_scr[...] = ((1.0 - r_seq) * h2d.astype(f32)).astype(bf16)   # identity highway

    # ---- serial recurrence, chunked over D so the cell-state chunk lives in vregs ----
    # Per step & chunk: 2 mul + 2 add + 1 tanh, with bf16 loads for r / rres and a bf16
    # store for h (arithmetic kept f32 for v5e portability).
    dc = D
    for cand in (1024, 512, 256, 128):
        if D % cand == 0:
            dc = cand
            break
    # TODO(synk): switch the time loop to lax.fori_loop(unroll=2..4) with
    #             pl.ds/pl.multiple_of once T is production-sized (T=8 here: unroll).
    for d0 in range(0, D, dc):
        c = jnp.zeros((TB, dc), f32)                                # init_hidden == 0
        for t in range(T):
            lo = t * TB
            c = f_scr[lo:lo + TB, d0:d0 + dc] * c + fx_scr[lo:lo + TB, d0:d0 + dc]
            r_t = r_scr[lo:lo + TB, d0:d0 + dc].astype(f32)
            rres_t = rres_scr[lo:lo + TB, d0:d0 + dc].astype(f32)
            h_scr[lo:lo + TB, d0:d0 + dc] = (
                r_t * jnp.tanh(c) + rres_t).astype(bf16)

    # ---- top layer: output[-1], L2-normalize along dim 1 ----
    @pl.when(layer == num_layers - 1)
    def _():
        out = h_scr[(T - 1) * TB:T * TB, :].astype(f32)             # (TB, D)
        ss = jnp.sum(out * out, axis=1, keepdims=True)
        # tiny floor guards all-zero rows (padded/degenerate inputs) against inf/NaN
        inv_norm = lax.rsqrt(jnp.maximum(ss, 1e-12))
        out_ref[...] = (out * inv_norm).astype(out_ref.dtype)


def _pick_batch_tile(bp, batch_tile):
    """Largest multiple of 16 dividing bp, <= batch_tile; prefer >= 2 tiles if possible."""
    bt = max(16, (batch_tile // 16) * 16)
    tb = 16
    for cand in range(16, min(bt, bp) + 1, 16):
        if bp % cand == 0:
            tb = cand
    if bp // tb < 2:
        for cand in range(tb - 16, 15, -16):
            if bp % cand == 0 and bp // cand >= 2:
                tb = cand
                break
    return tb


def text_encoder_forward(inp, emb_weight, w0, ws, bs, *, batch_tile=16):
    """inp: (B, T) int32 token ids. Returns (B, D) f32 L2-normalized encodings.

    batch_tile guideline: 16 on v7x (64 MiB VMEM), 16-32 on v5e/v6e (128 MiB VMEM).
    """
    B, T = inp.shape
    K = emb_weight.shape[1]
    L, _, D = bs.shape
    assert L >= 2, "kernel assumes num_stack >= 2 (module default is 4)"

    # Pad batch to a multiple of 16 (bf16 sublane packing); padded rows are sliced off.
    Bp = ((B + 15) // 16) * 16
    if Bp != B:
        inp = jnp.pad(inp, ((0, Bp - B), (0, 0)))
    TB = _pick_batch_tile(Bp, batch_tile)

    # Embedding lookup gathered directly time-major and in bf16 (MXU consumes bf16
    # anyway; halves the (T, Bp, K) DMA).
    # TODO(synk): fuse the gather into the kernel (scalar-prefetched ids + row gather)
    #             at production vocab/K sizes to drop one HBM round trip.
    ids = jnp.transpose(inp)                                        # (T, Bp) int32
    x = jnp.take(emb_weight.astype(jnp.bfloat16), ids, axis=0)      # (T, Bp, K) bf16

    # Per-gate weight layouts: w0 -> (4, K, D) [x_tilde, forget, reset, highway],
    # ws -> (L-1, 3, D, D) [x_tilde, forget, reset].
    w0_g = jnp.transpose(w0.reshape(K, 4, D), (1, 0, 2)).astype(jnp.bfloat16)
    ws_g = jnp.transpose(ws.reshape(L - 1, D, 3, D), (0, 2, 1, 3)).astype(jnp.bfloat16)
    bs_f = bs.astype(jnp.float32)

    # Generation-aware scoped-VMEM limit (defaults are only 16/32 MiB).
    vmem_limit = 48 * 1024 * 1024
    try:
        cap = int(pltpu.get_tpu_info().vmem_capacity_bytes)
        vmem_limit = min(int(cap * 0.85), 100 * 1024 * 1024)
    except Exception:
        pass

    flops = (2 * T * Bp * (4 * K * D + (L - 1) * 3 * D * D)
             + 12 * T * Bp * D * L)
    transcendentals = 3 * T * Bp * D * L
    bytes_accessed = (x.size * 2 + w0_g.size * 2 + ws_g.size * 2
                      + bs_f.size * 4 + Bp * D * 4)
    cost = pl.CostEstimate(flops=flops, transcendentals=transcendentals,
                           bytes_accessed=bytes_accessed)

    def _grid_spec(single_buffer_weights):
        # Layer-0 weights have a constant block index across the whole grid; a single
        # buffer halves their VMEM residency. Per-layer ws keeps the default double
        # buffer so the next layer's weights stream in during the current recurrence.
        w0_kwargs = {}
        if single_buffer_weights:
            w0_kwargs = dict(pipeline_mode=pl.Buffered(1))
        return pltpu.PrefetchScalarGridSpec(
            num_scalar_prefetch=0,
            grid=(Bp // TB, L),                                     # (batch tiles, layers)
            in_specs=[
                pl.BlockSpec((T, TB, K), lambda i, l: (0, i, 0)),
                pl.BlockSpec((4, K, D), lambda i, l: (0, 0, 0), **w0_kwargs),
                pl.BlockSpec((None, 3, D, D),
                             lambda i, l: (jnp.maximum(l - 1, 0), 0, 0, 0)),
                pl.BlockSpec((None, 2, D), lambda i, l: (l, 0, 0)),
            ],
            out_specs=pl.BlockSpec((TB, D), lambda i, l: (i, 0)),
            # Scratch persists across grid steps by design: h_scr carries the layer
            # output sequence across the (arbitrary) layer axis and is fully rewritten
            # at layer 0 of every batch tile before it is read.
            scratch_shapes=[
                pltpu.VMEM((T * TB, D), jnp.bfloat16),              # h sequence
                pltpu.VMEM((T * TB, D), jnp.float32),               # f gate
                pltpu.VMEM((T * TB, D), jnp.float32),               # (1-f)*x_tilde
                pltpu.VMEM((T * TB, D), jnp.bfloat16),              # r gate
                pltpu.VMEM((T * TB, D), jnp.bfloat16),              # (1-r)*residual
            ],
        )

    def _run(single_buffer_weights):
        fn = pl.pallas_call(
            functools.partial(sru_kernel, num_layers=L, seq_len=T),
            out_shape=jax.ShapeDtypeStruct((Bp, D), jnp.float32),
            grid_spec=_grid_spec(single_buffer_weights),
            compiler_params=pltpu.CompilerParams(
                dimension_semantics=("parallel", "arbitrary"),
                vmem_limit_bytes=vmem_limit),
            cost_estimate=cost,
        )
        return jax.block_until_ready(fn(x, w0_g, ws_g, bs_f))

    try:
        out_full = _run(True)
    except Exception:
        # Fallback if this JAX build rejects single-buffered (pl.Buffered(1)) specs.
        out_full = _run(False)

    return out_full[:B]


def text_encoder_reference(inp, emb_weight, w0, ws, bs):
    """Pure-JAX f32 reference of the same forward pass."""
    K = emb_weight.shape[1]
    L, _, D = bs.shape
    x = jnp.take(emb_weight, inp, axis=0)
    h = jnp.transpose(x, (1, 0, 2)).astype(jnp.float32)             # (T, B, K)
    T, B, _ = h.shape
    for l in range(L):
        if l == 0:
            u = (h.reshape(T * B, K) @ w0).reshape(T, B, 4 * D)
            res_seq = u[..., 3 * D:4 * D]
        else:
            u = (h.reshape(T * B, D) @ ws[l - 1]).reshape(T, B, 3 * D)
            res_seq = h
        bf = bs[l, 0][None, :]
        br = bs[l, 1][None, :]
        c = jnp.zeros((B, D), jnp.float32)
        outs = []
        for t in range(T):
            f_t = jax.nn.sigmoid(u[t, :, D:2 * D] + bf)
            r_t = jax.nn.sigmoid(u[t, :, 2 * D:3 * D] + br)
            c = f_t * c + (1.0 - f_t) * u[t, :, 0:D]
            outs.append(r_t * jnp.tanh(c) + (1.0 - r_t) * res_seq[t])
        h = jnp.stack(outs, axis=0)
    out = h[-1]
    return out / jnp.linalg.norm(out, axis=1, keepdims=True)


if __name__ == "__main__":
    # Small, deterministic problem (module defaults scaled down: K=620->128,
    # d=2400->128, num_stack=4 kept, vocab=50).
    VOCAB, K, D, L = 50, 128, 128, 4
    B, T = 4, 8

    key = jax.random.PRNGKey(0)
    k_emb, k_w0, k_ws, k_bs, k_inp = jax.random.split(key, 5)

    emb_weight = jax.random.normal(k_emb, (VOCAB, K), jnp.float32) * 0.1
    w0 = jax.random.normal(k_w0, (K, 4 * D), jnp.float32) * (1.0 / jnp.sqrt(K))
    ws = jax.random.normal(k_ws, (L - 1, D, 3 * D), jnp.float32) * (1.0 / jnp.sqrt(D))
    bs = jax.random.normal(k_bs, (L, 2, D), jnp.float32) * 0.01
    inp = jax.random.randint(k_inp, (B, T), 0, VOCAB, dtype=jnp.int32)

    out = text_encoder_forward(inp, emb_weight, w0, ws, bs)
    out = jax.block_until_ready(out)

    ref = jax.block_until_ready(text_encoder_reference(inp, emb_weight, w0, ws, bs))

    assert out.shape == (B, D)
    assert bool(jnp.all(jnp.isfinite(out)))
    # Kernel runs the projections in bf16 (f32 accumulation) and stores inter-layer
    # activations in bf16; tolerance vs the pure-f32 reference is loosened accordingly.
    assert bool(jnp.allclose(out, ref, rtol=2.5e-2, atol=2.5e-2)), "mismatch vs reference"
    # Each row should be unit-norm.
    assert bool(jnp.allclose(jnp.linalg.norm(out, axis=1), 1.0, atol=1e-3))

    print("KERNEL_OK")
</pallas_src>

<mosaic_0001>
module attributes {stable_mosaic.version = 11 : i64} {
  func.func @sru_kernel(%arg0: i32, %arg1: i32, %arg2: memref<8x16x128xbf16, #tpu.memory_space<vmem>>, %arg3: memref<4x128x128xbf16, #tpu.memory_space<vmem>>, %arg4: memref<1x3x128x128xbf16, #tpu.memory_space<vmem>>, %arg5: memref<1x2x128xf32, #tpu.memory_space<vmem>>, %arg6: memref<16x128xf32, #tpu.memory_space<vmem>>, %arg7: memref<128x128xbf16, #tpu.memory_space<vmem>>, %arg8: memref<128x128xf32, #tpu.memory_space<vmem>>, %arg9: memref<128x128xf32, #tpu.memory_space<vmem>>, %arg10: memref<128x128xbf16, #tpu.memory_space<vmem>>, %arg11: memref<128x128xbf16, #tpu.memory_space<vmem>>) attributes {dimension_semantics = [#tpu.dimension_semantics<parallel>, #tpu.dimension_semantics<arbitrary>], iteration_bounds = array<i64: 1, 4>, scalar_prefetch = 0 : i64, scratch_operands = 5 : i64, tpu.core_type = #tpu.core_type<tc>, window_params = [{transform_indices = @transform_0, window_bounds = array<i64: 8, 16, 128>}, {pipeline_mode = #tpu.pipeline_mode<synchronous>, transform_indices = @transform_1, window_bounds = array<i64: 4, 128, 128>}, {transform_indices = @transform_2, window_bounds = array<i64: 1, 3, 128, 128>}, {transform_indices = @transform_3, window_bounds = array<i64: 1, 2, 128>}, {transform_indices = @transform_4, window_bounds = array<i64: 16, 128>}]} {
    %c0 = arith.constant 0 : index
    %c0_0 = arith.constant 0 : index
    %c0_1 = arith.constant 0 : index
    %0 = vector.load %arg5[%c0, %c0_0, %c0_1] : memref<1x2x128xf32, #tpu.memory_space<vmem>>, vector<1x1x128xf32>
    %1 = vector.shape_cast %0 : vector<1x1x128xf32> to vector<1x128xf32>
    %c0_2 = arith.constant 0 : index
    %c1 = arith.constant 1 : index
    %c0_3 = arith.constant 0 : index
    %2 = vector.load %arg5[%c0_2, %c1, %c0_3] : memref<1x2x128xf32, #tpu.memory_space<vmem>>, vector<1x1x128xf32>
    %3 = vector.shape_cast %2 : vector<1x1x128xf32> to vector<1x128xf32>
    %c0_i32 = arith.constant 0 : i32
    %4 = arith.cmpi eq, %arg1, %c0_i32 : i32
    %5 = arith.extui %4 : i1 to i32
    %c0_i32_4 = arith.constant 0 : i32
    %6 = arith.cmpi ne, %5, %c0_i32_4 : i32
    scf.if %6 {
      %c0_81 = arith.constant 0 : index
      %c0_82 = arith.constant 0 : index
      %c0_83 = arith.constant 0 : index
      %118 = vector.load %arg2[%c0_81, %c0_82, %c0_83] : memref<8x16x128xbf16, #tpu.memory_space<vmem>>, vector<8x16x128xbf16>
      %119 = vector.shape_cast %118 : vector<8x16x128xbf16> to vector<128x128xbf16>
      %c1_84 = arith.constant 1 : index
      %c0_85 = arith.constant 0 : index
      %c0_86 = arith.constant 0 : index
      %120 = vector.load %arg3[%c1_84, %c0_85, %c0_86] : memref<4x128x128xbf16, #tpu.memory_space<vmem>>, vector<1x128x128xbf16>
      %121 = vector.shape_cast %120 : vector<1x128x128xbf16> to vector<128x128xbf16>
      %cst_87 = arith.constant dense<0.000000e+00> : vector<128x128xf32>
      %122 = tpu.matmul %119, %121, %cst_87 {dimension_numbers = #tpu.dot_dimension_numbers<[1], [0], [0], [1], [0, 0, 1, 1], [], []>} : vector<128x128xbf16>, vector<128x128xbf16>, vector<128x128xf32> -> vector<128x128xf32>
      %123 = vector.broadcast %1 : vector<1x128xf32> to vector<128x128xf32>
      %124 = arith.addf %122, %123 : vector<128x128xf32>
      %125 = arith.negf %124 : vector<128x128xf32>
      %126 = math.exp %125 : vector<128x128xf32>
      %cst_88 = arith.constant 1.000000e+00 : f32
      %127 = vector.broadcast %cst_88 : f32 to vector<128x128xf32>
      %128 = arith.addf %127, %126 : vector<128x128xf32>
      %129 = arith.divf %127, %128 : vector<128x128xf32>
      %c0_89 = arith.constant 0 : index
      %c0_90 = arith.constant 0 : index
      %130 = vector.load %arg8[%c0_89, %c0_90] : memref<128x128xf32, #tpu.memory_space<vmem>>, vector<128x128xf32>
      tpu.vector_store %arg8[%c0_89, %c0_90], %129 {strides = array<i32>} : memref<128x128xf32, #tpu.memory_space<vmem>>, vector<128x128xf32>,
      %cst_91 = arith.constant 1.000000e+00 : f32
      %131 = vector.broadcast %cst_91 : f32 to vector<128x128xf32>
      %132 = arith.subf %131, %129 : vector<128x128xf32>
      %c0_92 = arith.constant 0 : index
      %c0_93 = arith.constant 0 : index
      %c0_94 = arith.constant 0 : index
      %133 = vector.load %arg3[%c0_92, %c0_93, %c0_94] : memref<4x128x128xbf16, #tpu.memory_space<vmem>>, vector<1x128x128xbf16>
      %134 = vector.shape_cast %133 : vector<1x128x128xbf16> to vector<128x128xbf16>
      %cst_95 = arith.constant dense<0.000000e+00> : vector<128x128xf32>
      %135 = tpu.matmul %119, %134, %cst_95 {dimension_numbers = #tpu.dot_dimension_numbers<[1], [0], [0], [1], [0, 0, 1, 1], [], []>} : vector<128x128xbf16>, vector<128x128xbf16>, vector<128x128xf32> -> vector<128x128xf32>
      %136 = arith.mulf %132, %135 : vector<128x128xf32>
      %c0_96 = arith.constant 0 : index
      %c0_97 = arith.constant 0 : index
      %137 = vector.load %arg9[%c0_96, %c0_97] : memref<128x128xf32, #tpu.memory_space<vmem>>, vector<128x128xf32>
      tpu.vector_store %arg9[%c0_96, %c0_97], %136 {strides = array<i32>} : memref<128x128xf32, #tpu.memory_space<vmem>>, vector<128x128xf32>,
      %c2 = arith.constant 2 : index
      %c0_98 = arith.constant 0 : index
      %c0_99 = arith.constant 0 : index
      %138 = vector.load %arg3[%c2, %c0_98, %c0_99] : memref<4x128x128xbf16, #tpu.memory_space<vmem>>, vector<1x128x128xbf16>
      %139 = vector.shape_cast %138 : vector<1x128x128xbf16> to vector<128x128xbf16>
      %cst_100 = arith.constant dense<0.000000e+00> : vector<128x128xf32>
      %140 = tpu.matmul %119, %139, %cst_100 {dimension_numbers = #tpu.dot_dimension_numbers<[1], [0], [0], [1], [0, 0, 1, 1], [], []>} : vector<128x128xbf16>, vector<128x128xbf16>, vector<128x128xf32> -> vector<128x128xf32>
      %141 = vector.broadcast %3 : vector<1x128xf32> to vector<128x128xf32>
      %142 = arith.addf %140, %141 : vector<128x128xf32>
      %143 = arith.negf %142 : vector<128x128xf32>
      %144 = math.exp %143 : vector<128x128xf32>
      %cst_101 = arith.constant 1.000000e+00 : f32
      %145 = vector.broadcast %cst_101 : f32 to vector<128x128xf32>
      %146 = arith.addf %145, %144 : vector<128x128xf32>
      %147 = arith.divf %145, %146 : vector<128x128xf32>
      %148 = arith.truncf %147 : vector<128x128xf32> to vector<128x128xbf16>
      %c0_102 = arith.constant 0 : index
      %c0_103 = arith.constant 0 : index
      %149 = vector.load %arg10[%c0_102, %c0_103] : memref<128x128xbf16, #tpu.memory_space<vmem>>, vector<128x128xbf16>
      tpu.vector_store %arg10[%c0_102, %c0_103], %148 {strides = array<i32>} : memref<128x128xbf16, #tpu.memory_space<vmem>>, vector<128x128xbf16>,
      %c3 = arith.constant 3 : index
      %c0_104 = arith.constant 0 : index
      %c0_105 = arith.constant 0 : index
      %150 = vector.load %arg3[%c3, %c0_104, %c0_105] : memref<4x128x128xbf16, #tpu.memory_space<vmem>>, vector<1x128x128xbf16>
      %151 = vector.shape_cast %150 : vector<1x128x128xbf16> to vector<128x128xbf16>
      %cst_106 = arith.constant dense<0.000000e+00> : vector<128x128xf32>
      %152 = tpu.matmul %119, %151, %cst_106 {dimension_numbers = #tpu.dot_dimension_numbers<[1], [0], [0], [1], [0, 0, 1, 1], [], []>} : vector<128x128xbf16>, vector<128x128xbf16>, vector<128x128xf32> -> vector<128x128xf32>
      %cst_107 = arith.constant 1.000000e+00 : f32
      %153 = vector.broadcast %cst_107 : f32 to vector<128x128xf32>
      %154 = arith.subf %153, %147 : vector<128x128xf32>
      %155 = arith.mulf %154, %152 : vector<128x128xf32>
      %156 = arith.truncf %155 : vector<128x128xf32> to vector<128x128xbf16>
      %c0_108 = arith.constant 0 : index
      %c0_109 = arith.constant 0 : index
      %157 = vector.load %arg11[%c0_108, %c0_109] : memref<128x128xbf16, #tpu.memory_space<vmem>>, vector<128x128xbf16>
      tpu.vector_store %arg11[%c0_108, %c0_109], %156 {strides = array<i32>} : memref<128x128xbf16, #tpu.memory_space<vmem>>, vector<128x128xbf16>,
    } else {
    }
    %c0_i32_5 = arith.constant 0 : i32
    %7 = arith.cmpi sgt, %arg1, %c0_i32_5 : i32
    %8 = arith.extui %7 : i1 to i32
    %c0_i32_6 = arith.constant 0 : i32
    %9 = arith.cmpi ne, %8, %c0_i32_6 : i32
    scf.if %9 {
      %c0_81 = arith.constant 0 : index
      %c0_82 = arith.constant 0 : index
      %118 = vector.load %arg7[%c0_81, %c0_82] : memref<128x128xbf16, #tpu.memory_space<vmem>>, vector<128x128xbf16>
      %c0_83 = arith.constant 0 : index
      %c1_84 = arith.constant 1 : index
      %c0_85 = arith.constant 0 : index
      %c0_86 = arith.constant 0 : index
      %119 = vector.load %arg4[%c0_83, %c1_84, %c0_85, %c0_86] : memref<1x3x128x128xbf16, #tpu.memory_space<vmem>>, vector<1x1x128x128xbf16>
      %120 = vector.shape_cast %119 : vector<1x1x128x128xbf16> to vector<128x128xbf16>
      %cst_87 = arith.constant dense<0.000000e+00> : vector<128x128xf32>
      %121 = tpu.matmul %118, %120, %cst_87 {dimension_numbers = #tpu.dot_dimension_numbers<[1], [0], [0], [1], [0, 0, 1, 1], [], []>} : vector<128x128xbf16>, vector<128x128xbf16>, vector<128x128xf32> -> vector<128x128xf32>
      %122 = vector.broadcast %1 : vector<1x128xf32> to vector<128x128xf32>
      %123 = arith.addf %121, %122 : vector<128x128xf32>
      %124 = arith.negf %123 : vector<128x128xf32>
      %125 = math.exp %124 : vector<128x128xf32>
      %cst_88 = arith.constant 1.000000e+00 : f32
      %126 = vector.broadcast %cst_88 : f32 to vector<128x128xf32>
      %127 = arith.addf %126, %125 : vector<128x128xf32>
      %128 = arith.divf %126, %127 : vector<128x128xf32>
      %c0_89 = arith.constant 0 : index
      %c0_90 = arith.constant 0 : index
      %129 = vector.load %arg8[%c0_89, %c0_90] : memref<128x128xf32, #tpu.memory_space<vmem>>, vector<128x128xf32>
      tpu.vector_store %arg8[%c0_89, %c0_90], %128 {strides = array<i32>} : memref<128x128xf32, #tpu.memory_space<vmem>>, vector<128x128xf32>,
      %cst_91 = arith.constant 1.000000e+00 : f32
      %130 = vector.broadcast %cst_91 : f32 to vector<128x128xf32>
      %131 = arith.subf %130, %128 : vector<128x128xf32>
      %c0_92 = arith.constant 0 : index
      %c0_93 = arith.constant 0 : index
      %c0_94 = arith.constant 0 : index
      %c0_95 = arith.constant 0 : index
      %132 = vector.load %arg4[%c0_92, %c0_93, %c0_94, %c0_95] : memref<1x3x128x128xbf16, #tpu.memory_space<vmem>>, vector<1x1x128x128xbf16>
      %133 = vector.shape_cast %132 : vector<1x1x128x128xbf16> to vector<128x128xbf16>
      %cst_96 = arith.constant dense<0.000000e+00> : vector<128x128xf32>
      %134 = tpu.matmul %118, %133, %cst_96 {dimension_numbers = #tpu.dot_dimension_numbers<[1], [0], [0], [1], [0, 0, 1, 1], [], []>} : vector<128x128xbf16>, vector<128x128xbf16>, vector<128x128xf32> -> vector<128x128xf32>
      %135 = arith.mulf %131, %134 : vector<128x128xf32>
      %c0_97 = arith.constant 0 : index
      %c0_98 = arith.constant 0 : index
      %136 = vector.load %arg9[%c0_97, %c0_98] : memref<128x128xf32, #tpu.memory_space<vmem>>, vector<128x128xf32>
      tpu.vector_store %arg9[%c0_97, %c0_98], %135 {strides = array<i32>} : memref<128x128xf32, #tpu.memory_space<vmem>>, vector<128x128xf32>,
      %c0_99 = arith.constant 0 : index
      %c2 = arith.constant 2 : index
      %c0_100 = arith.constant 0 : index
      %c0_101 = arith.constant 0 : index
      %137 = vector.load %arg4[%c0_99, %c2, %c0_100, %c0_101] : memref<1x3x128x128xbf16, #tpu.memory_space<vmem>>, vector<1x1x128x128xbf16>
      %138 = vector.shape_cast %137 : vector<1x1x128x128xbf16> to vector<128x128xbf16>
      %cst_102 = arith.constant dense<0.000000e+00> : vector<128x128xf32>
      %139 = tpu.matmul %118, %138, %cst_102 {dimension_numbers = #tpu.dot_dimension_numbers<[1], [0], [0], [1], [0, 0, 1, 1], [], []>} : vector<128x128xbf16>, vector<128x128xbf16>, vector<128x128xf32> -> vector<128x128xf32>
      %140 = vector.broadcast %3 : vector<1x128xf32> to vector<128x128xf32>
      %141 = arith.addf %139, %140 : vector<128x128xf32>
      %142 = arith.negf %141 : vector<128x128xf32>
      %143 = math.exp %142 : vector<128x128xf32>
      %cst_103 = arith.constant 1.000000e+00 : f32
      %144 = vector.broadcast %cst_103 : f32 to vector<128x128xf32>
      %145 = arith.addf %144, %143 : vector<128x128xf32>
      %146 = arith.divf %144, %145 : vector<128x128xf32>
      %147 = arith.truncf %146 : vector<128x128xf32> to vector<128x128xbf16>
      %c0_104 = arith.constant 0 : index
      %c0_105 = arith.constant 0 : index
      %148 = vector.load %arg10[%c0_104, %c0_105] : memref<128x128xbf16, #tpu.memory_space<vmem>>, vector<128x128xbf16>
      tpu.vector_store %arg10[%c0_104, %c0_105], %147 {strides = array<i32>} : memref<128x128xbf16, #tpu.memory_space<vmem>>, vector<128x128xbf16>,
      %cst_106 = arith.constant 1.000000e+00 : f32
      %149 = vector.broadcast %cst_106 : f32 to vector<128x128xf32>
      %150 = arith.subf %149, %146 : vector<128x128xf32>
      %151 = arith.extf %118 : vector<128x128xbf16> to vector<128x128xf32>
      %152 = arith.mulf %150, %151 : vector<128x128xf32>
      %153 = arith.truncf %152 : vector<128x128xf32> to vector<128x128xbf16>
      %c0_107 = arith.constant 0 : index
      %c0_108 = arith.constant 0 : index
      %154 = vector.load %arg11[%c0_107, %c0_108] : memref<128x128xbf16, #tpu.memory_space<vmem>>, vector<128x128xbf16>
      tpu.vector_store %arg11[%c0_107, %c0_108], %153 {strides = array<i32>} : memref<128x128xbf16, #tpu.memory_space<vmem>>, vector<128x128xbf16>,
    } else {
    }
    %cst = arith.constant 0.000000e+00 : f32
    %10 = vector.broadcast %cst : f32 to vector<16x128xf32>
    %c0_7 = arith.constant 0 : index
    %c0_8 = arith.constant 0 : index
    %11 = vector.load %arg8[%c0_7, %c0_8] : memref<128x128xf32, #tpu.memory_space<vmem>>, vector<16x128xf32>
    %12 = arith.mulf %11, %10 : vector<16x128xf32>
    %c0_9 = arith.constant 0 : index
    %c0_10 = arith.constant 0 : index
    %13 = vector.load %arg9[%c0_9, %c0_10] : memref<128x128xf32, #tpu.memory_space<vmem>>, vector<16x128xf32>
    %14 = arith.addf %12, %13 : vector<16x128xf32>
    %c0_11 = arith.constant 0 : index
    %c0_12 = arith.constant 0 : index
    %15 = vector.load %arg10[%c0_11, %c0_12] : memref<128x128xbf16, #tpu.memory_space<vmem>>, vector<16x128xbf16>
    %16 = arith.extf %15 : vector<16x128xbf16> to vector<16x128xf32>
    %c0_13 = arith.constant 0 : index
    %c0_14 = arith.constant 0 : index
    %17 = vector.load %arg11[%c0_13, %c0_14] : memref<128x128xbf16, #tpu.memory_space<vmem>>, vector<16x128xbf16>
    %18 = arith.extf %17 : vector<16x128xbf16> to vector<16x128xf32>
    %19 = math.tanh %14 : vector<16x128xf32>
    %20 = arith.mulf %16, %19 : vector<16x128xf32>
    %21 = arith.addf %20, %18 : vector<16x128xf32>
    %22 = arith.truncf %21 : vector<16x128xf32> to vector<16x128xbf16>
    %c0_15 = arith.constant 0 : index
    %c0_16 = arith.constant 0 : index
    %23 = vector.load %arg7[%c0_15, %c0_16] : memref<128x128xbf16, #tpu.memory_space<vmem>>, vector<16x128xbf16>
    tpu.vector_store %arg7[%c0_15, %c0_16], %22 {strides = array<i32>} : memref<128x128xbf16, #tpu.memory_space<vmem>>, vector<16x128xbf16>,
    %c16 = arith.constant 16 : index
    %c0_17 = arith.constant 0 : index
    %24 = vector.load %arg8[%c16, %c0_17] : memref<128x128xf32, #tpu.memory_space<vmem>>, vector<16x128xf32>
    %25 = arith.mulf %24, %14 : vector<16x128xf32>
    %c16_18 = arith.constant 16 : index
    %c0_19 = arith.constant 0 : index
    %26 = vector.load %arg9[%c16_18, %c0_19] : memref<128x128xf32, #tpu.memory_space<vmem>>, vector<16x128xf32>
    %27 = arith.addf %25, %26 : vector<16x128xf32>
    %c16_20 = arith.constant 16 : index
    %c0_21 = arith.constant 0 : index
    %28 = vector.load %arg10[%c16_20, %c0_21] : memref<128x128xbf16, #tpu.memory_space<vmem>>, vector<16x128xbf16>
    %29 = arith.extf %28 : vector<16x128xbf16> to vector<16x128xf32>
    %c16_22 = arith.constant 16 : index
    %c0_23 = arith.constant 0 : index
    %30 = vector.load %arg11[%c16_22, %c0_23] : memref<128x128xbf16, #tpu.memory_space<vmem>>, vector<16x128xbf16>
    %31 = arith.extf %30 : vector<16x128xbf16> to vector<16x128xf32>
    %32 = math.tanh %27 : vector<16x128xf32>
    %33 = arith.mulf %29, %32 : vector<16x128xf32>
    %34 = arith.addf %33, %31 : vector<16x128xf32>
    %35 = arith.truncf %34 : vector<16x128xf32> to vector<16x128xbf16>
    %c16_24 = arith.constant 16 : index
    %c0_25 = arith.constant 0 : index
    %36 = vector.load %arg7[%c16_24, %c0_25] : memref<128x128xbf16, #tpu.memory_space<vmem>>, vector<16x128xbf16>
    tpu.vector_store %arg7[%c16_24, %c0_25], %35 {strides = array<i32>} : memref<128x128xbf16, #tpu.memory_space<vmem>>, vector<16x128xbf16>,
    %c32 = arith.constant 32 : index
    %c0_26 = arith.constant 0 : index
    %37 = vector.load %arg8[%c32, %c0_26] : memref<128x128xf32, #tpu.memory_space<vmem>>, vector<16x128xf32>
    %38 = arith.mulf %37, %27 : vector<16x128xf32>
    %c32_27 = arith.constant 32 : index
    %c0_28 = arith.constant 0 : index
    %39 = vector.load %arg9[%c32_27, %c0_28] : memref<128x128xf32, #tpu.memory_space<vmem>>, vector<16x128xf32>
    %40 = arith.addf %38, %39 : vector<16x128xf32>
    %c32_29 = arith.constant 32 : index
    %c0_30 = arith.constant 0 : index
    %41 = vector.load %arg10[%c32_29, %c0_30] : memref<128x128xbf16, #tpu.memory_space<vmem>>, vector<16x128xbf16>
    %42 = arith.extf %41 : vector<16x128xbf16> to vector<16x128xf32>
    %c32_31 = arith.constant 32 : index
    %c0_32 = arith.constant 0 : index
    %43 = vector.load %arg11[%c32_31, %c0_32] : memref<128x128xbf16, #tpu.memory_space<vmem>>, vector<16x128xbf16>
    %44 = arith.extf %43 : vector<16x128xbf16> to vector<16x128xf32>
    %45 = math.tanh %40 : vector<16x128xf32>
    %46 = arith.mulf %42, %45 : vector<16x128xf32>
    %47 = arith.addf %46, %44 : vector<16x128xf32>
    %48 = arith.truncf %47 : vector<16x128xf32> to vector<16x128xbf16>
    %c32_33 = arith.constant 32 : index
    %c0_34 = arith.constant 0 : index
    %49 = vector.load %arg7[%c32_33, %c0_34] : memref<128x128xbf16, #tpu.memory_space<vmem>>, vector<16x128xbf16>
    tpu.vector_store %arg7[%c32_33, %c0_34], %48 {strides = array<i32>} : memref<128x128xbf16, #tpu.memory_space<vmem>>, vector<16x128xbf16>,
    %c48 = arith.constant 48 : index
    %c0_35 = arith.constant 0 : index
    %50 = vector.load %arg8[%c48, %c0_35] : memref<128x128xf32, #tpu.memory_space<vmem>>, vector<16x128xf32>
    %51 = arith.mulf %50, %40 : vector<16x128xf32>
    %c48_36 = arith.constant 48 : index
    %c0_37 = arith.constant 0 : index
    %52 = vector.load %arg9[%c48_36, %c0_37] : memref<128x128xf32, #tpu.memory_space<vmem>>, vector<16x128xf32>
    %53 = arith.addf %51, %52 : vector<16x128xf32>
    %c48_38 = arith.constant 48 : index
    %c0_39 = arith.constant 0 : index
    %54 = vector.load %arg10[%c48_38, %c0_39] : memref<128x128xbf16, #tpu.memory_space<vmem>>, vector<16x128xbf16>
    %55 = arith.extf %54 : vector<16x128xbf16> to vector<16x128xf32>
    %c48_40 = arith.constant 48 : index
    %c0_41 = arith.constant 0 : index
    %56 = vector.load %arg11[%c48_40, %c0_41] : memref<128x128xbf16, #tpu.memory_space<vmem>>, vector<16x128xbf16>
    %57 = arith.extf %56 : vector<16x128xbf16> to vector<16x128xf32>
    %58 = math.tanh %53 : vector<16x128xf32>
    %59 = arith.mulf %55, %58 : vector<16x128xf32>
    %60 = arith.addf %59, %57 : vector<16x128xf32>
    %61 = arith.truncf %60 : vector<16x128xf32> to vector<16x128xbf16>
    %c48_42 = arith.constant 48 : index
    %c0_43 = arith.constant 0 : index
    %62 = vector.load %arg7[%c48_42, %c0_43] : memref<128x128xbf16, #tpu.memory_space<vmem>>, vector<16x128xbf16>
    tpu.vector_store %arg7[%c48_42, %c0_43], %61 {strides = array<i32>} : memref<128x128xbf16, #tpu.memory_space<vmem>>, vector<16x128xbf16>,
    %c64 = arith.constant 64 : index
    %c0_44 = arith.constant 0 : index
    %63 = vector.load %arg8[%c64, %c0_44] : memref<128x128xf32, #tpu.memory_space<vmem>>, vector<16x128xf32>
    %64 = arith.mulf %63, %53 : vector<16x128xf32>
    %c64_45 = arith.constant 64 : index
    %c0_46 = arith.constant 0 : index
    %65 = vector.load %arg9[%c64_45, %c0_46] : memref<128x128xf32, #tpu.memory_space<vmem>>, vector<16x128xf32>
    %66 = arith.addf %64, %65 : vector<16x128xf32>
    %c64_47 = arith.constant 64 : index
    %c0_48 = arith.constant 0 : index
    %67 = vector.load %arg10[%c64_47, %c0_48] : memref<128x128xbf16, #tpu.memory_space<vmem>>, vector<16x128xbf16>
    %68 = arith.extf %67 : vector<16x128xbf16> to vector<16x128xf32>
    %c64_49 = arith.constant 64 : index
    %c0_50 = arith.constant 0 : index
    %69 = vector.load %arg11[%c64_49, %c0_50] : memref<128x128xbf16, #tpu.memory_space<vmem>>, vector<16x128xbf16>
    %70 = arith.extf %69 : vector<16x128xbf16> to vector<16x128xf32>
    %71 = math.tanh %66 : vector<16x128xf32>
    %72 = arith.mulf %68, %71 : vector<16x128xf32>
    %73 = arith.addf %72, %70 : vector<16x128xf32>
    %74 = arith.truncf %73 : vector<16x128xf32> to vector<16x128xbf16>
    %c64_51 = arith.constant 64 : index
    %c0_52 = arith.constant 0 : index
    %75 = vector.load %arg7[%c64_51, %c0_52] : memref<128x128xbf16, #tpu.memory_space<vmem>>, vector<16x128xbf16>
    tpu.vector_store %arg7[%c64_51, %c0_52], %74 {strides = array<i32>} : memref<128x128xbf16, #tpu.memory_space<vmem>>, vector<16x128xbf16>,
    %c80 = arith.constant 80 : index
    %c0_53 = arith.constant 0 : index
    %76 = vector.load %arg8[%c80, %c0_53] : memref<128x128xf32, #tpu.memory_space<vmem>>, vector<16x128xf32>
    %77 = arith.mulf %76, %66 : vector<16x128xf32>
    %c80_54 = arith.constant 80 : index
    %c0_55 = arith.constant 0 : index
    %78 = vector.load %arg9[%c80_54, %c0_55] : memref<128x128xf32, #tpu.memory_space<vmem>>, vector<16x128xf32>
    %79 = arith.addf %77, %78 : vector<16x128xf32>
    %c80_56 = arith.constant 80 : index
    %c0_57 = arith.constant 0 : index
    %80 = vector.load %arg10[%c80_56, %c0_57] : memref<128x128xbf16, #tpu.memory_space<vmem>>, vector<16x128xbf16>
    %81 = arith.extf %80 : vector<16x128xbf16> to vector<16x128xf32>
    %c80_58 = arith.constant 80 : index
    %c0_59 = arith.constant 0 : index
    %82 = vector.load %arg11[%c80_58, %c0_59] : memref<128x128xbf16, #tpu.memory_space<vmem>>, vector<16x128xbf16>
    %83 = arith.extf %82 : vector<16x128xbf16> to vector<16x128xf32>
    %84 = math.tanh %79 : vector<16x128xf32>
    %85 = arith.mulf %81, %84 : vector<16x128xf32>
    %86 = arith.addf %85, %83 : vector<16x128xf32>
    %87 = arith.truncf %86 : vector<16x128xf32> to vector<16x128xbf16>
    %c80_60 = arith.constant 80 : index
    %c0_61 = arith.constant 0 : index
    %88 = vector.load %arg7[%c80_60, %c0_61] : memref<128x128xbf16, #tpu.memory_space<vmem>>, vector<16x128xbf16>
    tpu.vector_store %arg7[%c80_60, %c0_61], %87 {strides = array<i32>} : memref<128x128xbf16, #tpu.memory_space<vmem>>, vector<16x128xbf16>,
    %c96 = arith.constant 96 : index
    %c0_62 = arith.constant 0 : index
    %89 = vector.load %arg8[%c96, %c0_62] : memref<128x128xf32, #tpu.memory_space<vmem>>, vector<16x128xf32>
    %90 = arith.mulf %89, %79 : vector<16x128xf32>
    %c96_63 = arith.constant 96 : index
    %c0_64 = arith.constant 0 : index
    %91 = vector.load %arg9[%c96_63, %c0_64] : memref<128x128xf32, #tpu.memory_space<vmem>>, vector<16x128xf32>
    %92 = arith.addf %90, %91 : vector<16x128xf32>
    %c96_65 = arith.constant 96 : index
    %c0_66 = arith.constant 0 : index
    %93 = vector.load %arg10[%c96_65, %c0_66] : memref<128x128xbf16, #tpu.memory_space<vmem>>, vector<16x128xbf16>
    %94 = arith.extf %93 : vector<16x128xbf16> to vector<16x128xf32>
    %c96_67 = arith.constant 96 : index
    %c0_68 = arith.constant 0 : index
    %95 = vector.load %arg11[%c96_67, %c0_68] : memref<128x128xbf16, #tpu.memory_space<vmem>>, vector<16x128xbf16>
    %96 = arith.extf %95 : vector<16x128xbf16> to vector<16x128xf32>
    %97 = math.tanh %92 : vector<16x128xf32>
    %98 = arith.mulf %94, %97 : vector<16x128xf32>
    %99 = arith.addf %98, %96 : vector<16x128xf32>
    %100 = arith.truncf %99 : vector<16x128xf32> to vector<16x128xbf16>
    %c96_69 = arith.constant 96 : index
    %c0_70 = arith.constant 0 : index
    %101 = vector.load %arg7[%c96_69, %c0_70] : memref<128x128xbf16, #tpu.memory_space<vmem>>, vector<16x128xbf16>
    tpu.vector_store %arg7[%c96_69, %c0_70], %100 {strides = array<i32>} : memref<128x128xbf16, #tpu.memory_space<vmem>>, vector<16x128xbf16>,
    %c112 = arith.constant 112 : index
    %c0_71 = arith.constant 0 : index
    %102 = vector.load %arg8[%c112, %c0_71] : memref<128x128xf32, #tpu.memory_space<vmem>>, vector<16x128xf32>
    %103 = arith.mulf %102, %92 : vector<16x128xf32>
    %c112_72 = arith.constant 112 : index
    %c0_73 = arith.constant 0 : index
    %104 = vector.load %arg9[%c112_72, %c0_73] : memref<128x128xf32, #tpu.memory_space<vmem>>, vector<16x128xf32>
    %105 = arith.addf %103, %104 : vector<16x128xf32>
    %c112_74 = arith.constant 112 : index
    %c0_75 = arith.constant 0 : index
    %106 = vector.load %arg10[%c112_74, %c0_75] : memref<128x128xbf16, #tpu.memory_space<vmem>>, vector<16x128xbf16>
    %107 = arith.extf %106 : vector<16x128xbf16> to vector<16x128xf32>
    %c112_76 = arith.constant 112 : index
    %c0_77 = arith.constant 0 : index
    %108 = vector.load %arg11[%c112_76, %c0_77] : memref<128x128xbf16, #tpu.memory_space<vmem>>, vector<16x128xbf16>
    %109 = arith.extf %108 : vector<16x128xbf16> to vector<16x128xf32>
    %110 = math.tanh %105 : vector<16x128xf32>
    %111 = arith.mulf %107, %110 : vector<16x128xf32>
    %112 = arith.addf %111, %109 : vector<16x128xf32>
    %113 = arith.truncf %112 : vector<16x128xf32> to vector<16x128xbf16>
    %c112_78 = arith.constant 112 : index
    %c0_79 = arith.constant 0 : index
    %114 = vector.load %arg7[%c112_78, %c0_79] : memref<128x128xbf16, #tpu.memory_space<vmem>>, vector<16x128xbf16>
    tpu.vector_store %arg7[%c112_78, %c0_79], %113 {strides = array<i32>} : memref<128x128xbf16, #tpu.memory_space<vmem>>, vector<16x128xbf16>,
    %c3_i32 = arith.constant 3 : i32
    %115 = arith.cmpi eq, %arg1, %c3_i32 : i32
    %116 = arith.extui %115 : i1 to i32
    %c0_i32_80 = arith.constant 0 : i32
    %117 = arith.cmpi ne, %116, %c0_i32_80 : i32
    scf.if %117 {
      %c112_81 = arith.constant 112 : index
      %c0_82 = arith.constant 0 : index
      %118 = vector.load %arg7[%c112_81, %c0_82] : memref<128x128xbf16, #tpu.memory_space<vmem>>, vector<16x128xbf16>
      %119 = arith.extf %118 : vector<16x128xbf16> to vector<16x128xf32>
      %120 = arith.mulf %119, %119 : vector<16x128xf32>
      %cst_83 = arith.constant dense<0.000000e+00> : vector<16xf32>
      %121 = vector.multi_reduction <add>, %120, %cst_83 [1] : vector<16x128xf32> to vector<16xf32>
      %122 = vector.shape_cast %121 : vector<16xf32> to vector<16x1xf32>
      %cst_84 = arith.constant 9.99999996E-13 : f32
      %123 = vector.broadcast %cst_84 : f32 to vector<16x1xf32>
      %124 = arith.maximumf %122, %123 : vector<16x1xf32>
      %125 = math.rsqrt %124 : vector<16x1xf32>
      %126 = vector.broadcast %125 : vector<16x1xf32> to vector<16x128xf32>
      %127 = arith.mulf %119, %126 : vector<16x128xf32>
      %c0_85 = arith.constant 0 : index
      %c0_86 = arith.constant 0 : index
      %128 = vector.load %arg6[%c0_85, %c0_86] : memref<16x128xf32, #tpu.memory_space<vmem>>, vector<16x128xf32>
      tpu.vector_store %arg6[%c0_85, %c0_86], %127 {strides = array<i32>} : memref<16x128xf32, #tpu.memory_space<vmem>>, vector<16x128xf32>,
    } else {
    }
    return
  }
  func.func @transform_0(%arg0: i32, %arg1: i32) -> (i32, i32, i32) {
    %c0_i32 = arith.constant 0 : i32
    %c0_i32_0 = arith.constant 0 : i32
    %c0_i32_1 = arith.constant 0 : i32
    return %c0_i32, %arg0, %c0_i32_0 : i32, i32, i32
  }
  func.func @transform_1(%arg0: i32, %arg1: i32) -> (i32, i32, i32) {
    %c0_i32 = arith.constant 0 : i32
    %c0_i32_0 = arith.constant 0 : i32
    %c0_i32_1 = arith.constant 0 : i32
    %c0_i32_2 = arith.constant 0 : i32
    return %c0_i32, %c0_i32_0, %c0_i32_1 : i32, i32, i32
  }
  func.func @transform_2(%arg0: i32, %arg1: i32) -> (i32, i32, i32, i32) {
    %c1_i32 = arith.constant 1 : i32
    %0 = arith.subi %arg1, %c1_i32 : i32
    %c0_i32 = arith.constant 0 : i32
    %1 = arith.maxsi %0, %c0_i32 : i32
    %c0_i32_0 = arith.constant 0 : i32
    %c0_i32_1 = arith.constant 0 : i32
    %c0_i32_2 = arith.constant 0 : i32
    %c0_i32_3 = arith.constant 0 : i32
    return %1, %c0_i32_0, %c0_i32_1, %c0_i32_2 : i32, i32, i32, i32
  }
  func.func @transform_3(%arg0: i32, %arg1: i32) -> (i32, i32, i32) {
    %c0_i32 = arith.constant 0 : i32
    %c0_i32_0 = arith.constant 0 : i32
    %c0_i32_1 = arith.constant 0 : i32
    return %arg1, %c0_i32, %c0_i32_0 : i32, i32, i32
  }
  func.func @transform_4(%arg0: i32, %arg1: i32) -> (i32, i32) {
    %c0_i32 = arith.constant 0 : i32
    %c0_i32_0 = arith.constant 0 : i32
    return %arg0, %c0_i32 : i32, i32
  }
}

module attributes {stable_mosaic.version = 11 : i64} {
  func.func @sru_kernel(%arg0: i32, %arg1: i32, %arg2: memref<8x16x128xbf16, #tpu.memory_space<vmem>>, %arg3: memref<4x128x128xbf16, #tpu.memory_space<vmem>>, %arg4: memref<1x3x128x128xbf16, #tpu.memory_space<vmem>>, %arg5: memref<1x2x128xf32, #tpu.memory_space<vmem>>, %arg6: memref<16x128xf32, #tpu.memory_space<vmem>>, %arg7: memref<128x128xbf16, #tpu.memory_space<vmem>>, %arg8: memref<128x128xf32, #tpu.memory_space<vmem>>, %arg9: memref<128x128xf32, #tpu.memory_space<vmem>>, %arg10: memref<128x128xbf16, #tpu.memory_space<vmem>>, %arg11: memref<128x128xbf16, #tpu.memory_space<vmem>>) attributes {dimension_semantics = [#tpu.dimension_semantics<parallel>, #tpu.dimension_semantics<arbitrary>], iteration_bounds = array<i64: 1, 4>, scalar_prefetch = 0 : i64, scratch_operands = 5 : i64, tpu.core_type = #tpu.core_type<tc>, window_params = [{transform_indices = @transform_0, window_bounds = array<i64: 8, 16, 128>}, {pipeline_mode = #tpu.pipeline_mode<synchronous>, transform_indices = @transform_1, window_bounds = array<i64: 4, 128, 128>}, {transform_indices = @transform_2, window_bounds = array<i64: 1, 3, 128, 128>}, {transform_indices = @transform_3, window_bounds = array<i64: 1, 2, 128>}, {transform_indices = @transform_4, window_bounds = array<i64: 16, 128>}]} {
    %c0 = arith.constant 0 : index
    %c0_0 = arith.constant 0 : index
    %c0_1 = arith.constant 0 : index
    %0 = vector.load %arg5[%c0, %c0_0, %c0_1] : memref<1x2x128xf32, #tpu.memory_space<vmem>>, vector<1x1x128xf32>
    %1 = vector.shape_cast %0 : vector<1x1x128xf32> to vector<1x128xf32>
    %c0_2 = arith.constant 0 : index
    %c1 = arith.constant 1 : index
    %c0_3 = arith.constant 0 : index
    %2 = vector.load %arg5[%c0_2, %c1, %c0_3] : memref<1x2x128xf32, #tpu.memory_space<vmem>>, vector<1x1x128xf32>
    %3 = vector.shape_cast %2 : vector<1x1x128xf32> to vector<1x128xf32>
    %c0_i32 = arith.constant 0 : i32
    %4 = arith.cmpi eq, %arg1, %c0_i32 : i32
    %5 = arith.extui %4 : i1 to i32
    %c0_i32_4 = arith.constant 0 : i32
    %6 = arith.cmpi ne, %5, %c0_i32_4 : i32
    scf.if %6 {
      %c0_81 = arith.constant 0 : index
      %c0_82 = arith.constant 0 : index
      %c0_83 = arith.constant 0 : index
      %118 = vector.load %arg2[%c0_81, %c0_82, %c0_83] : memref<8x16x128xbf16, #tpu.memory_space<vmem>>, vector<8x16x128xbf16>
      %119 = vector.shape_cast %118 : vector<8x16x128xbf16> to vector<128x128xbf16>
      %c1_84 = arith.constant 1 : index
      %c0_85 = arith.constant 0 : index
      %c0_86 = arith.constant 0 : index
      %120 = vector.load %arg3[%c1_84, %c0_85, %c0_86] : memref<4x128x128xbf16, #tpu.memory_space<vmem>>, vector<1x128x128xbf16>
      %121 = vector.shape_cast %120 : vector<1x128x128xbf16> to vector<128x128xbf16>
      %cst_87 = arith.constant dense<0.000000e+00> : vector<128x128xf32>
      %122 = tpu.matmul %119, %121, %cst_87 {dimension_numbers = #tpu.dot_dimension_numbers<[1], [0], [0], [1], [0, 0, 1, 1], [], []>} : vector<128x128xbf16>, vector<128x128xbf16>, vector<128x128xf32> -> vector<128x128xf32>
      %123 = vector.broadcast %1 : vector<1x128xf32> to vector<128x128xf32>
      %124 = arith.addf %122, %123 : vector<128x128xf32>
      %125 = arith.negf %124 : vector<128x128xf32>
      %126 = math.exp %125 : vector<128x128xf32>
      %cst_88 = arith.constant 1.000000e+00 : f32
      %127 = vector.broadcast %cst_88 : f32 to vector<128x128xf32>
      %128 = arith.addf %127, %126 : vector<128x128xf32>
      %129 = arith.divf %127, %128 : vector<128x128xf32>
      %c0_89 = arith.constant 0 : index
      %c0_90 = arith.constant 0 : index
      %130 = vector.load %arg8[%c0_89, %c0_90] : memref<128x128xf32, #tpu.memory_space<vmem>>, vector<128x128xf32>
      tpu.vector_store %arg8[%c0_89, %c0_90], %129 {strides = array<i32>} : memref<128x128xf32, #tpu.memory_space<vmem>>, vector<128x128xf32>,
      %cst_91 = arith.constant 1.000000e+00 : f32
      %131 = vector.broadcast %cst_91 : f32 to vector<128x128xf32>
      %132 = arith.subf %131, %129 : vector<128x128xf32>
      %c0_92 = arith.constant 0 : index
      %c0_93 = arith.constant 0 : index
      %c0_94 = arith.constant 0 : index
      %133 = vector.load %arg3[%c0_92, %c0_93, %c0_94] : memref<4x128x128xbf16, #tpu.memory_space<vmem>>, vector<1x128x128xbf16>
      %134 = vector.shape_cast %133 : vector<1x128x128xbf16> to vector<128x128xbf16>
      %cst_95 = arith.constant dense<0.000000e+00> : vector<128x128xf32>
      %135 = tpu.matmul %119, %134, %cst_95 {dimension_numbers = #tpu.dot_dimension_numbers<[1], [0], [0], [1], [0, 0, 1, 1], [], []>} : vector<128x128xbf16>, vector<128x128xbf16>, vector<128x128xf32> -> vector<128x128xf32>
      %136 = arith.mulf %132, %135 : vector<128x128xf32>
      %c0_96 = arith.constant 0 : index
      %c0_97 = arith.constant 0 : index
      %137 = vector.load %arg9[%c0_96, %c0_97] : memref<128x128xf32, #tpu.memory_space<vmem>>, vector<128x128xf32>
      tpu.vector_store %arg9[%c0_96, %c0_97], %136 {strides = array<i32>} : memref<128x128xf32, #tpu.memory_space<vmem>>, vector<128x128xf32>,
      %c2 = arith.constant 2 : index
      %c0_98 = arith.constant 0 : index
      %c0_99 = arith.constant 0 : index
      %138 = vector.load %arg3[%c2, %c0_98, %c0_99] : memref<4x128x128xbf16, #tpu.memory_space<vmem>>, vector<1x128x128xbf16>
      %139 = vector.shape_cast %138 : vector<1x128x128xbf16> to vector<128x128xbf16>
      %cst_100 = arith.constant dense<0.000000e+00> : vector<128x128xf32>
      %140 = tpu.matmul %119, %139, %cst_100 {dimension_numbers = #tpu.dot_dimension_numbers<[1], [0], [0], [1], [0, 0, 1, 1], [], []>} : vector<128x128xbf16>, vector<128x128xbf16>, vector<128x128xf32> -> vector<128x128xf32>
      %141 = vector.broadcast %3 : vector<1x128xf32> to vector<128x128xf32>
      %142 = arith.addf %140, %141 : vector<128x128xf32>
      %143 = arith.negf %142 : vector<128x128xf32>
      %144 = math.exp %143 : vector<128x128xf32>
      %cst_101 = arith.constant 1.000000e+00 : f32
      %145 = vector.broadcast %cst_101 : f32 to vector<128x128xf32>
      %146 = arith.addf %145, %144 : vector<128x128xf32>
      %147 = arith.divf %145, %146 : vector<128x128xf32>
      %148 = arith.truncf %147 : vector<128x128xf32> to vector<128x128xbf16>
      %c0_102 = arith.constant 0 : index
      %c0_103 = arith.constant 0 : index
      %149 = vector.load %arg10[%c0_102, %c0_103] : memref<128x128xbf16, #tpu.memory_space<vmem>>, vector<128x128xbf16>
      tpu.vector_store %arg10[%c0_102, %c0_103], %148 {strides = array<i32>} : memref<128x128xbf16, #tpu.memory_space<vmem>>, vector<128x128xbf16>,
      %c3 = arith.constant 3 : index
      %c0_104 = arith.constant 0 : index
      %c0_105 = arith.constant 0 : index
      %150 = vector.load %arg3[%c3, %c0_104, %c0_105] : memref<4x128x128xbf16, #tpu.memory_space<vmem>>, vector<1x128x128xbf16>
      %151 = vector.shape_cast %150 : vector<1x128x128xbf16> to vector<128x128xbf16>
      %cst_106 = arith.constant dense<0.000000e+00> : vector<128x128xf32>
      %152 = tpu.matmul %119, %151, %cst_106 {dimension_numbers = #tpu.dot_dimension_numbers<[1], [0], [0], [1], [0, 0, 1, 1], [], []>} : vector<128x128xbf16>, vector<128x128xbf16>, vector<128x128xf32> -> vector<128x128xf32>
      %cst_107 = arith.constant 1.000000e+00 : f32
      %153 = vector.broadcast %cst_107 : f32 to vector<128x128xf32>
      %154 = arith.subf %153, %147 : vector<128x128xf32>
      %155 = arith.mulf %154, %152 : vector<128x128xf32>
      %156 = arith.truncf %155 : vector<128x128xf32> to vector<128x128xbf16>
      %c0_108 = arith.constant 0 : index
      %c0_109 = arith.constant 0 : index
      %157 = vector.load %arg11[%c0_108, %c0_109] : memref<128x128xbf16, #tpu.memory_space<vmem>>, vector<128x128xbf16>
      tpu.vector_store %arg11[%c0_108, %c0_109], %156 {strides = array<i32>} : memref<128x128xbf16, #tpu.memory_space<vmem>>, vector<128x128xbf16>,
    } else {
    }
    %c0_i32_5 = arith.constant 0 : i32
    %7 = arith.cmpi sgt, %arg1, %c0_i32_5 : i32
    %8 = arith.extui %7 : i1 to i32
    %c0_i32_6 = arith.constant 0 : i32
    %9 = arith.cmpi ne, %8, %c0_i32_6 : i32
    scf.if %9 {
      %c0_81 = arith.constant 0 : index
      %c0_82 = arith.constant 0 : index
      %118 = vector.load %arg7[%c0_81, %c0_82] : memref<128x128xbf16, #tpu.memory_space<vmem>>, vector<128x128xbf16>
      %c0_83 = arith.constant 0 : index
      %c1_84 = arith.constant 1 : index
      %c0_85 = arith.constant 0 : index
      %c0_86 = arith.constant 0 : index
      %119 = vector.load %arg4[%c0_83, %c1_84, %c0_85, %c0_86] : memref<1x3x128x128xbf16, #tpu.memory_space<vmem>>, vector<1x1x128x128xbf16>
      %120 = vector.shape_cast %119 : vector<1x1x128x128xbf16> to vector<128x128xbf16>
      %cst_87 = arith.constant dense<0.000000e+00> : vector<128x128xf32>
      %121 = tpu.matmul %118, %120, %cst_87 {dimension_numbers = #tpu.dot_dimension_numbers<[1], [0], [0], [1], [0, 0, 1, 1], [], []>} : vector<128x128xbf16>, vector<128x128xbf16>, vector<128x128xf32> -> vector<128x128xf32>
      %122 = vector.broadcast %1 : vector<1x128xf32> to vector<128x128xf32>
      %123 = arith.addf %121, %122 : vector<128x128xf32>
      %124 = arith.negf %123 : vector<128x128xf32>
      %125 = math.exp %124 : vector<128x128xf32>
      %cst_88 = arith.constant 1.000000e+00 : f32
      %126 = vector.broadcast %cst_88 : f32 to vector<128x128xf32>
      %127 = arith.addf %126, %125 : vector<128x128xf32>
      %128 = arith.divf %126, %127 : vector<128x128xf32>
      %c0_89 = arith.constant 0 : index
      %c0_90 = arith.constant 0 : index
      %129 = vector.load %arg8[%c0_89, %c0_90] : memref<128x128xf32, #tpu.memory_space<vmem>>, vector<128x128xf32>
      tpu.vector_store %arg8[%c0_89, %c0_90], %128 {strides = array<i32>} : memref<128x128xf32, #tpu.memory_space<vmem>>, vector<128x128xf32>,
      %cst_91 = arith.constant 1.000000e+00 : f32
      %130 = vector.broadcast %cst_91 : f32 to vector<128x128xf32>
      %131 = arith.subf %130, %128 : vector<128x128xf32>
      %c0_92 = arith.constant 0 : index
      %c0_93 = arith.constant 0 : index
      %c0_94 = arith.constant 0 : index
      %c0_95 = arith.constant 0 : index
      %132 = vector.load %arg4[%c0_92, %c0_93, %c0_94, %c0_95] : memref<1x3x128x128xbf16, #tpu.memory_space<vmem>>, vector<1x1x128x128xbf16>
      %133 = vector.shape_cast %132 : vector<1x1x128x128xbf16> to vector<128x128xbf16>
      %cst_96 = arith.constant dense<0.000000e+00> : vector<128x128xf32>
      %134 = tpu.matmul %118, %133, %cst_96 {dimension_numbers = #tpu.dot_dimension_numbers<[1], [0], [0], [1], [0, 0, 1, 1], [], []>} : vector<128x128xbf16>, vector<128x128xbf16>, vector<128x128xf32> -> vector<128x128xf32>
      %135 = arith.mulf %131, %134 : vector<128x128xf32>
      %c0_97 = arith.constant 0 : index
      %c0_98 = arith.constant 0 : index
      %136 = vector.load %arg9[%c0_97, %c0_98] : memref<128x128xf32, #tpu.memory_space<vmem>>, vector<128x128xf32>
      tpu.vector_store %arg9[%c0_97, %c0_98], %135 {strides = array<i32>} : memref<128x128xf32, #tpu.memory_space<vmem>>, vector<128x128xf32>,
      %c0_99 = arith.constant 0 : index
      %c2 = arith.constant 2 : index
      %c0_100 = arith.constant 0 : index
      %c0_101 = arith.constant 0 : index
      %137 = vector.load %arg4[%c0_99, %c2, %c0_100, %c0_101] : memref<1x3x128x128xbf16, #tpu.memory_space<vmem>>, vector<1x1x128x128xbf16>
      %138 = vector.shape_cast %137 : vector<1x1x128x128xbf16> to vector<128x128xbf16>
      %cst_102 = arith.constant dense<0.000000e+00> : vector<128x128xf32>
      %139 = tpu.matmul %118, %138, %cst_102 {dimension_numbers = #tpu.dot_dimension_numbers<[1], [0], [0], [1], [0, 0, 1, 1], [], []>} : vector<128x128xbf16>, vector<128x128xbf16>, vector<128x128xf32> -> vector<128x128xf32>
      %140 = vector.broadcast %3 : vector<1x128xf32> to vector<128x128xf32>
      %141 = arith.addf %139, %140 : vector<128x128xf32>
      %142 = arith.negf %141 : vector<128x128xf32>
      %143 = math.exp %142 : vector<128x128xf32>
      %cst_103 = arith.constant 1.000000e+00 : f32
      %144 = vector.broadcast %cst_103 : f32 to vector<128x128xf32>
      %145 = arith.addf %144, %143 : vector<128x128xf32>
      %146 = arith.divf %144, %145 : vector<128x128xf32>
      %147 = arith.truncf %146 : vector<128x128xf32> to vector<128x128xbf16>
      %c0_104 = arith.constant 0 : index
      %c0_105 = arith.constant 0 : index
      %148 = vector.load %arg10[%c0_104, %c0_105] : memref<128x128xbf16, #tpu.memory_space<vmem>>, vector<128x128xbf16>
      tpu.vector_store %arg10[%c0_104, %c0_105], %147 {strides = array<i32>} : memref<128x128xbf16, #tpu.memory_space<vmem>>, vector<128x128xbf16>,
      %cst_106 = arith.constant 1.000000e+00 : f32
      %149 = vector.broadcast %cst_106 : f32 to vector<128x128xf32>
      %150 = arith.subf %149, %146 : vector<128x128xf32>
      %151 = arith.extf %118 : vector<128x128xbf16> to vector<128x128xf32>
      %152 = arith.mulf %150, %151 : vector<128x128xf32>
      %153 = arith.truncf %152 : vector<128x128xf32> to vector<128x128xbf16>
      %c0_107 = arith.constant 0 : index
      %c0_108 = arith.constant 0 : index
      %154 = vector.load %arg11[%c0_107, %c0_108] : memref<128x128xbf16, #tpu.memory_space<vmem>>, vector<128x128xbf16>
      tpu.vector_store %arg11[%c0_107, %c0_108], %153 {strides = array<i32>} : memref<128x128xbf16, #tpu.memory_space<vmem>>, vector<128x128xbf16>,
    } else {
    }
    %cst = arith.constant 0.000000e+00 : f32
    %10 = vector.broadcast %cst : f32 to vector<16x128xf32>
    %c0_7 = arith.constant 0 : index
    %c0_8 = arith.constant 0 : index
    %11 = vector.load %arg8[%c0_7, %c0_8] : memref<128x128xf32, #tpu.memory_space<vmem>>, vector<16x128xf32>
    %12 = arith.mulf %11, %10 : vector<16x128xf32>
    %c0_9 = arith.constant 0 : index
    %c0_10 = arith.constant 0 : index
    %13 = vector.load %arg9[%c0_9, %c0_10] : memref<128x128xf32, #tpu.memory_space<vmem>>, vector<16x128xf32>
    %14 = arith.addf %12, %13 : vector<16x128xf32>
    %c0_11 = arith.constant 0 : index
    %c0_12 = arith.constant 0 : index
    %15 = vector.load %arg10[%c0_11, %c0_12] : memref<128x128xbf16, #tpu.memory_space<vmem>>, vector<16x128xbf16>
    %16 = arith.extf %15 : vector<16x128xbf16> to vector<16x128xf32>
    %c0_13 = arith.constant 0 : index
    %c0_14 = arith.constant 0 : index
    %17 = vector.load %arg11[%c0_13, %c0_14] : memref<128x128xbf16, #tpu.memory_space<vmem>>, vector<16x128xbf16>
    %18 = arith.extf %17 : vector<16x128xbf16> to vector<16x128xf32>
    %19 = math.tanh %14 : vector<16x128xf32>
    %20 = arith.mulf %16, %19 : vector<16x128xf32>
    %21 = arith.addf %20, %18 : vector<16x128xf32>
    %22 = arith.truncf %21 : vector<16x128xf32> to vector<16x128xbf16>
    %c0_15 = arith.constant 0 : index
    %c0_16 = arith.constant 0 : index
    %23 = vector.load %arg7[%c0_15, %c0_16] : memref<128x128xbf16, #tpu.memory_space<vmem>>, vector<16x128xbf16>
    tpu.vector_store %arg7[%c0_15, %c0_16], %22 {strides = array<i32>} : memref<128x128xbf16, #tpu.memory_space<vmem>>, vector<16x128xbf16>,
    %c16 = arith.constant 16 : index
    %c0_17 = arith.constant 0 : index
    %24 = vector.load %arg8[%c16, %c0_17] : memref<128x128xf32, #tpu.memory_space<vmem>>, vector<16x128xf32>
    %25 = arith.mulf %24, %14 : vector<16x128xf32>
    %c16_18 = arith.constant 16 : index
    %c0_19 = arith.constant 0 : index
    %26 = vector.load %arg9[%c16_18, %c0_19] : memref<128x128xf32, #tpu.memory_space<vmem>>, vector<16x128xf32>
    %27 = arith.addf %25, %26 : vector<16x128xf32>
    %c16_20 = arith.constant 16 : index
    %c0_21 = arith.constant 0 : index
    %28 = vector.load %arg10[%c16_20, %c0_21] : memref<128x128xbf16, #tpu.memory_space<vmem>>, vector<16x128xbf16>
    %29 = arith.extf %28 : vector<16x128xbf16> to vector<16x128xf32>
    %c16_22 = arith.constant 16 : index
    %c0_23 = arith.constant 0 : index
    %30 = vector.load %arg11[%c16_22, %c0_23] : memref<128x128xbf16, #tpu.memory_space<vmem>>, vector<16x128xbf16>
    %31 = arith.extf %30 : vector<16x128xbf16> to vector<16x128xf32>
    %32 = math.tanh %27 : vector<16x128xf32>
    %33 = arith.mulf %29, %32 : vector<16x128xf32>
    %34 = arith.addf %33, %31 : vector<16x128xf32>
    %35 = arith.truncf %34 : vector<16x128xf32> to vector<16x128xbf16>
    %c16_24 = arith.constant 16 : index
    %c0_25 = arith.constant 0 : index
    %36 = vector.load %arg7[%c16_24, %c0_25] : memref<128x128xbf16, #tpu.memory_space<vmem>>, vector<16x128xbf16>
    tpu.vector_store %arg7[%c16_24, %c0_25], %35 {strides = array<i32>} : memref<128x128xbf16, #tpu.memory_space<vmem>>, vector<16x128xbf16>,
    %c32 = arith.constant 32 : index
    %c0_26 = arith.constant 0 : index
    %37 = vector.load %arg8[%c32, %c0_26] : memref<128x128xf32, #tpu.memory_space<vmem>>, vector<16x128xf32>
    %38 = arith.mulf %37, %27 : vector<16x128xf32>
    %c32_27 = arith.constant 32 : index
    %c0_28 = arith.constant 0 : index
    %39 = vector.load %arg9[%c32_27, %c0_28] : memref<128x128xf32, #tpu.memory_space<vmem>>, vector<16x128xf32>
    %40 = arith.addf %38, %39 : vector<16x128xf32>
    %c32_29 = arith.constant 32 : index
    %c0_30 = arith.constant 0 : index
    %41 = vector.load %arg10[%c32_29, %c0_30] : memref<128x128xbf16, #tpu.memory_space<vmem>>, vector<16x128xbf16>
    %42 = arith.extf %41 : vector<16x128xbf16> to vector<16x128xf32>
    %c32_31 = arith.constant 32 : index
    %c0_32 = arith.constant 0 : index
    %43 = vector.load %arg11[%c32_31, %c0_32] : memref<128x128xbf16, #tpu.memory_space<vmem>>, vector<16x128xbf16>
    %44 = arith.extf %43 : vector<16x128xbf16> to vector<16x128xf32>
    %45 = math.tanh %40 : vector<16x128xf32>
    %46 = arith.mulf %42, %45 : vector<16x128xf32>
    %47 = arith.addf %46, %44 : vector<16x128xf32>
    %48 = arith.truncf %47 : vector<16x128xf32> to vector<16x128xbf16>
    %c32_33 = arith.constant 32 : index
    %c0_34 = arith.constant 0 : index
    %49 = vector.load %arg7[%c32_33, %c0_34] : memref<128x128xbf16, #tpu.memory_space<vmem>>, vector<16x128xbf16>
    tpu.vector_store %arg7[%c32_33, %c0_34], %48 {strides = array<i32>} : memref<128x128xbf16, #tpu.memory_space<vmem>>, vector<16x128xbf16>,
    %c48 = arith.constant 48 : index
    %c0_35 = arith.constant 0 : index
    %50 = vector.load %arg8[%c48, %c0_35] : memref<128x128xf32, #tpu.memory_space<vmem>>, vector<16x128xf32>
    %51 = arith.mulf %50, %40 : vector<16x128xf32>
    %c48_36 = arith.constant 48 : index
    %c0_37 = arith.constant 0 : index
    %52 = vector.load %arg9[%c48_36, %c0_37] : memref<128x128xf32, #tpu.memory_space<vmem>>, vector<16x128xf32>
    %53 = arith.addf %51, %52 : vector<16x128xf32>
    %c48_38 = arith.constant 48 : index
    %c0_39 = arith.constant 0 : index
    %54 = vector.load %arg10[%c48_38, %c0_39] : memref<128x128xbf16, #tpu.memory_space<vmem>>, vector<16x128xbf16>
    %55 = arith.extf %54 : vector<16x128xbf16> to vector<16x128xf32>
    %c48_40 = arith.constant 48 : index
    %c0_41 = arith.constant 0 : index
    %56 = vector.load %arg11[%c48_40, %c0_41] : memref<128x128xbf16, #tpu.memory_space<vmem>>, vector<16x128xbf16>
    %57 = arith.extf %56 : vector<16x128xbf16> to vector<16x128xf32>
    %58 = math.tanh %53 : vector<16x128xf32>
    %59 = arith.mulf %55, %58 : vector<16x128xf32>
    %60 = arith.addf %59, %57 : vector<16x128xf32>
    %61 = arith.truncf %60 : vector<16x128xf32> to vector<16x128xbf16>
    %c48_42 = arith.constant 48 : index
    %c0_43 = arith.constant 0 : index
    %62 = vector.load %arg7[%c48_42, %c0_43] : memref<128x128xbf16, #tpu.memory_space<vmem>>, vector<16x128xbf16>
    tpu.vector_store %arg7[%c48_42, %c0_43], %61 {strides = array<i32>} : memref<128x128xbf16, #tpu.memory_space<vmem>>, vector<16x128xbf16>,
    %c64 = arith.constant 64 : index
    %c0_44 = arith.constant 0 : index
    %63 = vector.load %arg8[%c64, %c0_44] : memref<128x128xf32, #tpu.memory_space<vmem>>, vector<16x128xf32>
    %64 = arith.mulf %63, %53 : vector<16x128xf32>
    %c64_45 = arith.constant 64 : index
    %c0_46 = arith.constant 0 : index
    %65 = vector.load %arg9[%c64_45, %c0_46] : memref<128x128xf32, #tpu.memory_space<vmem>>, vector<16x128xf32>
    %66 = arith.addf %64, %65 : vector<16x128xf32>
    %c64_47 = arith.constant 64 : index
    %c0_48 = arith.constant 0 : index
    %67 = vector.load %arg10[%c64_47, %c0_48] : memref<128x128xbf16, #tpu.memory_space<vmem>>, vector<16x128xbf16>
    %68 = arith.extf %67 : vector<16x128xbf16> to vector<16x128xf32>
    %c64_49 = arith.constant 64 : index
    %c0_50 = arith.constant 0 : index
    %69 = vector.load %arg11[%c64_49, %c0_50] : memref<128x128xbf16, #tpu.memory_space<vmem>>, vector<16x128xbf16>
    %70 = arith.extf %69 : vector<16x128xbf16> to vector<16x128xf32>
    %71 = math.tanh %66 : vector<16x128xf32>
    %72 = arith.mulf %68, %71 : vector<16x128xf32>
    %73 = arith.addf %72, %70 : vector<16x128xf32>
    %74 = arith.truncf %73 : vector<16x128xf32> to vector<16x128xbf16>
    %c64_51 = arith.constant 64 : index
    %c0_52 = arith.constant 0 : index
    %75 = vector.load %arg7[%c64_51, %c0_52] : memref<128x128xbf16, #tpu.memory_space<vmem>>, vector<16x128xbf16>
    tpu.vector_store %arg7[%c64_51, %c0_52], %74 {strides = array<i32>} : memref<128x128xbf16, #tpu.memory_space<vmem>>, vector<16x128xbf16>,
    %c80 = arith.constant 80 : index
    %c0_53 = arith.constant 0 : index
    %76 = vector.load %arg8[%c80, %c0_53] : memref<128x128xf32, #tpu.memory_space<vmem>>, vector<16x128xf32>
    %77 = arith.mulf %76, %66 : vector<16x128xf32>
    %c80_54 = arith.constant 80 : index
    %c0_55 = arith.constant 0 : index
    %78 = vector.load %arg9[%c80_54, %c0_55] : memref<128x128xf32, #tpu.memory_space<vmem>>, vector<16x128xf32>
    %79 = arith.addf %77, %78 : vector<16x128xf32>
    %c80_56 = arith.constant 80 : index
    %c0_57 = arith.constant 0 : index
    %80 = vector.load %arg10[%c80_56, %c0_57] : memref<128x128xbf16, #tpu.memory_space<vmem>>, vector<16x128xbf16>
    %81 = arith.extf %80 : vector<16x128xbf16> to vector<16x128xf32>
    %c80_58 = arith.constant 80 : index
    %c0_59 = arith.constant 0 : index
    %82 = vector.load %arg11[%c80_58, %c0_59] : memref<128x128xbf16, #tpu.memory_space<vmem>>, vector<16x128xbf16>
    %83 = arith.extf %82 : vector<16x128xbf16> to vector<16x128xf32>
    %84 = math.tanh %79 : vector<16x128xf32>
    %85 = arith.mulf %81, %84 : vector<16x128xf32>
    %86 = arith.addf %85, %83 : vector<16x128xf32>
    %87 = arith.truncf %86 : vector<16x128xf32> to vector<16x128xbf16>
    %c80_60 = arith.constant 80 : index
    %c0_61 = arith.constant 0 : index
    %88 = vector.load %arg7[%c80_60, %c0_61] : memref<128x128xbf16, #tpu.memory_space<vmem>>, vector<16x128xbf16>
    tpu.vector_store %arg7[%c80_60, %c0_61], %87 {strides = array<i32>} : memref<128x128xbf16, #tpu.memory_space<vmem>>, vector<16x128xbf16>,
    %c96 = arith.constant 96 : index
    %c0_62 = arith.constant 0 : index
    %89 = vector.load %arg8[%c96, %c0_62] : memref<128x128xf32, #tpu.memory_space<vmem>>, vector<16x128xf32>
    %90 = arith.mulf %89, %79 : vector<16x128xf32>
    %c96_63 = arith.constant 96 : index
    %c0_64 = arith.constant 0 : index
    %91 = vector.load %arg9[%c96_63, %c0_64] : memref<128x128xf32, #tpu.memory_space<vmem>>, vector<16x128xf32>
    %92 = arith.addf %90, %91 : vector<16x128xf32>
    %c96_65 = arith.constant 96 : index
    %c0_66 = arith.constant 0 : index
    %93 = vector.load %arg10[%c96_65, %c0_66] : memref<128x128xbf16, #tpu.memory_space<vmem>>, vector<16x128xbf16>
    %94 = arith.extf %93 : vector<16x128xbf16> to vector<16x128xf32>
    %c96_67 = arith.constant 96 : index
    %c0_68 = arith.constant 0 : index
    %95 = vector.load %arg11[%c96_67, %c0_68] : memref<128x128xbf16, #tpu.memory_space<vmem>>, vector<16x128xbf16>
    %96 = arith.extf %95 : vector<16x128xbf16> to vector<16x128xf32>
    %97 = math.tanh %92 : vector<16x128xf32>
    %98 = arith.mulf %94, %97 : vector<16x128xf32>
    %99 = arith.addf %98, %96 : vector<16x128xf32>
    %100 = arith.truncf %99 : vector<16x128xf32> to vector<16x128xbf16>
    %c96_69 = arith.constant 96 : index
    %c0_70 = arith.constant 0 : index
    %101 = vector.load %arg7[%c96_69, %c0_70] : memref<128x128xbf16, #tpu.memory_space<vmem>>, vector<16x128xbf16>
    tpu.vector_store %arg7[%c96_69, %c0_70], %100 {strides = array<i32>} : memref<128x128xbf16, #tpu.memory_space<vmem>>, vector<16x128xbf16>,
    %c112 = arith.constant 112 : index
    %c0_71 = arith.constant 0 : index
    %102 = vector.load %arg8[%c112, %c0_71] : memref<128x128xf32, #tpu.memory_space<vmem>>, vector<16x128xf32>
    %103 = arith.mulf %102, %92 : vector<16x128xf32>
    %c112_72 = arith.constant 112 : index
    %c0_73 = arith.constant 0 : index
    %104 = vector.load %arg9[%c112_72, %c0_73] : memref<128x128xf32, #tpu.memory_space<vmem>>, vector<16x128xf32>
    %105 = arith.addf %103, %104 : vector<16x128xf32>
    %c112_74 = arith.constant 112 : index
    %c0_75 = arith.constant 0 : index
    %106 = vector.load %arg10[%c112_74, %c0_75] : memref<128x128xbf16, #tpu.memory_space<vmem>>, vector<16x128xbf16>
    %107 = arith.extf %106 : vector<16x128xbf16> to vector<16x128xf32>
    %c112_76 = arith.constant 112 : index
    %c0_77 = arith.constant 0 : index
    %108 = vector.load %arg11[%c112_76, %c0_77] : memref<128x128xbf16, #tpu.memory_space<vmem>>, vector<16x128xbf16>
    %109 = arith.extf %108 : vector<16x128xbf16> to vector<16x128xf32>
    %110 = math.tanh %105 : vector<16x128xf32>
    %111 = arith.mulf %107, %110 : vector<16x128xf32>
    %112 = arith.addf %111, %109 : vector<16x128xf32>
    %113 = arith.truncf %112 : vector<16x128xf32> to vector<16x128xbf16>
    %c112_78 = arith.constant 112 : index
    %c0_79 = arith.constant 0 : index
    %114 = vector.load %arg7[%c112_78, %c0_79] : memref<128x128xbf16, #tpu.memory_space<vmem>>, vector<16x128xbf16>
    tpu.vector_store %arg7[%c112_78, %c0_79], %113 {strides = array<i32>} : memref<128x128xbf16, #tpu.memory_space<vmem>>, vector<16x128xbf16>,
    %c3_i32 = arith.constant 3 : i32
    %115 = arith.cmpi eq, %arg1, %c3_i32 : i32
    %116 = arith.extui %115 : i1 to i32
    %c0_i32_80 = arith.constant 0 : i32
    %117 = arith.cmpi ne, %116, %c0_i32_80 : i32
    scf.if %117 {
      %c112_81 = arith.constant 112 : index
      %c0_82 = arith.constant 0 : index
      %118 = vector.load %arg7[%c112_81, %c0_82] : memref<128x128xbf16, #tpu.memory_space<vmem>>, vector<16x128xbf16>
      %119 = arith.extf %118 : vector<16x128xbf16> to vector<16x128xf32>
      %120 = arith.mulf %119, %119 : vector<16x128xf32>
      %cst_83 = arith.constant dense<0.000000e+00> : vector<16xf32>
      %121 = vector.multi_reduction <add>, %120, %cst_83 [1] : vector<16x128xf32> to vector<16xf32>
      %122 = vector.shape_cast %121 : vector<16xf32> to vector<16x1xf32>
      %cst_84 = arith.constant 9.99999996E-13 : f32
      %123 = vector.broadcast %cst_84 : f32 to vector<16x1xf32>
      %124 = arith.maximumf %122, %123 : vector<16x1xf32>
      %125 = math.rsqrt %124 : vector<16x1xf32>
      %126 = vector.broadcast %125 : vector<16x1xf32> to vector<16x128xf32>
      %127 = arith.mulf %119, %126 : vector<16x128xf32>
      %c0_85 = arith.constant 0 : index
      %c0_86 = arith.constant 0 : index
      %128 = vector.load %arg6[%c0_85, %c0_86] : memref<16x128xf32, #tpu.memory_space<vmem>>, vector<16x128xf32>
      tpu.vector_store %arg6[%c0_85, %c0_86], %127 {strides = array<i32>} : memref<16x128xf32, #tpu.memory_space<vmem>>, vector<16x128xf32>,
    } else {
    }
    return
  }
  func.func @transform_0(%arg0: i32, %arg1: i32) -> (i32, i32, i32) {
    %c0_i32 = arith.constant 0 : i32
    %c0_i32_0 = arith.constant 0 : i32
    %c0_i32_1 = arith.constant 0 : i32
    return %c0_i32, %arg0, %c0_i32_0 : i32, i32, i32
  }
  func.func @transform_1(%arg0: i32, %arg1: i32) -> (i32, i32, i32) {
    %c0_i32 = arith.constant 0 : i32
    %c0_i32_0 = arith.constant 0 : i32
    %c0_i32_1 = arith.constant 0 : i32
    %c0_i32_2 = arith.constant 0 : i32
    return %c0_i32, %c0_i32_0, %c0_i32_1 : i32, i32, i32
  }
  func.func @transform_2(%arg0: i32, %arg1: i32) -> (i32, i32, i32, i32) {
    %c1_i32 = arith.constant 1 : i32
    %0 = arith.subi %arg1, %c1_i32 : i32
    %c0_i32 = arith.constant 0 : i32
    %1 = arith.maxsi %0, %c0_i32 : i32
    %c0_i32_0 = arith.constant 0 : i32
    %c0_i32_1 = arith.constant 0 : i32
    %c0_i32_2 = arith.constant 0 : i32
    %c0_i32_3 = arith.constant 0 : i32
    return %1, %c0_i32_0, %c0_i32_1, %c0_i32_2 : i32, i32, i32, i32
  }
  func.func @transform_3(%arg0: i32, %arg1: i32) -> (i32, i32, i32) {
    %c0_i32 = arith.constant 0 : i32
    %c0_i32_0 = arith.constant 0 : i32
    %c0_i32_1 = arith.constant 0 : i32
    return %arg1, %c0_i32, %c0_i32_0 : i32, i32, i32
  }
  func.func @transform_4(%arg0: i32, %arg1: i32) -> (i32, i32) {
    %c0_i32 = arith.constant 0 : i32
    %c0_i32_0 = arith.constant 0 : i32
    return %arg0, %c0_i32 : i32, i32
  }
}

</mosaic_0001>

<bundles_post_ra>
// kernel: tpu_custom_call.1
= control target key start
LH: loop header
LB: loop body
LE: loop exit
PB: predicated region body
PF: predicated region fallthrough
CT: control target
= control target key end

     0   :  { %s5218_s0 = inlined_call_operand.hbm [shape: bf16[8,16,128], index: 0, kind: input, shape index: {}]   ;;  %s5219_s1 = inlined_call_operand.hbm [shape: bf16[4,128,128], index: 1, kind: input, shape index: {}]   ;;  %s5220_s2 = inlined_call_operand.hbm [shape: bf16[3,3,128,128], index: 2, kind: input, shape index: {}]   ;;  %s5221_s3 = inlined_call_operand.hbm [shape: f32[4,2,128], index: 3, kind: input, shape index: {}]   ;;  %s5222_s4 = inlined_call_operand.hbm [shape: f32[16,128], index: 4, kind: output, shape index: {}]  }
   0x1   :  { %5229 = sst [smem:[#allocation20_spill]] %s5218_s0 }
   0x2   :  { %5230 = sst [smem:[#allocation21_spill]] %s5222_s4 }
   0x3   :  { %9 = vsyncpa [#allocation8], 0 }
   0x4   :  { %10 = vsyncpa [#allocation11], 0 }
   0x5   :  { %11 = vsyncpa [#allocation9], 0  ;;  %s4664_s15 = smov 0   ;;  %s4666_s16 = smov 0  }
   0x6   :  { %s4668_s17 = smov 0   ;;  %s4670_s18 = smov 0  }
   0x7   :  { %s4672_s19 = smov 0   ;;  %s4674_s20 = smov 0  }
   0x8   :  { %s4676_s21 = smov 0   ;;  %s4678_s22 = smov 0  }
   0x9   :  { %s4680_s23 = smov 0  }
   0xa LB: > { %s4708_s24 = sadd.s32 4294967295, %s4628_s23   ;;  %p102_p0 = scmp.ne.s32.totalorder %s4612_s19, %s4608_s18  ;;  %s4628_s23 = sphi %s4680_s23, %s17_s23   ;;  %s4624_s22 = sphi %s4678_s22, %s5254_s22   ;;  %s4620_s21 = sphi %s4676_s21, %s5253_s21   ;;  %s4616_s20 = sphi %s4674_s20, %s5252_s20   ;;  %s4612_s19 = sphi %s4672_s19, %s5251_s19   ;;  %s4608_s18 = sphi %s4670_s18, %s5250_s18   ;;  %s4604_s17 = sphi %s4668_s17, %s5249_s17   ;;  %s4600_s16 = sphi %s4666_s16, %s5248_s16   ;;  %s4596_s15 = sphi %s4664_s15, %s5247_s15  }
   0xb   : > { %p5228_p1 = scmp.eq.s32.totalorder %s4708_s24, 0  ;;  %p2898_p2 = scmp.ge.s32.totalorder %s4628_s23, 1 }
   0xc   : > { %p165_p3 = scmp.lt.s32.totalorder %s4628_s23, 5  ;;  %s4630_s27 = smov [#allocation7]  }
   0xd   : > { %p4716_p4 = por %p5228_p1, %p102_p0  ;;  %s180_s28 = sshll.u32 %s4630_s27, 4  ;;  %s181_s28 = int_to_ptr.vmem [resolvable:$true] %s180_s28 }
   0xe   : > { %p4720_p5 = pnand %p2898_p2, %p165_p3  ;;  %s26_s30 = sadd.s32 1, %s4624_s22 }
   0xf   : > { %s4417_s5 = scalar_lea.vmem %s181_s28, 1024  ;;  %p4425_p12 = scmp.lt.s32.totalorder %s181_s28, %s181_s28 }
  0x10   : > { %p3934_p6 = pneg %p4720_p5  ;;  %p4418_p9 = scmp.ne.s32.totalorder %s181_s28, %s4417_s5 }
  0x11   : > { %p4426_p13 = scmp.lt.s32.totalorder %s4417_s5, %s4417_s5 }
  0x12   : > { %p4728_p7 = pnand %p3934_p6, %p5228_p1 }
  0x13   : > { %p4427_p0 = por %p4426_p13, %p4425_p12 }
  0x14   : > { %p4408_p8 = pneg %p4728_p7 }
  0x16   : > { %p4420_p10 = pnand %p4418_p9, %p4408_p8 }
  0x18   : > { %p4421_p11 = pneg %p4420_p10 }
  0x1a   : > { %p4428_p2 = pnand %p4427_p0, %p4421_p11 }
  0x1c   : > { %4431 = shalt.err (!%p4428_p2)
}
  0x1d   : > { %s5223_s6 = smov 64   ;;  %s5225_s7 = smov 4  }
  0x1e   : > { %s5234_s0 = sld [smem:[#allocation20_spill]]  ;;  %p27_p3 = scmp.ge.s32.totalorder %s26_s30, 4 }
  0x1f   : > { %s2896_s10 = sadd.s32 4294967295, %s4624_s22  ;;  %s89_s11 = sadd.s32 1, %s4616_s20 }
  0x20   : > { %p81_p6 = scmp.gt.s32.totalorder %s2896_s10, 0  ;;  %s5256_s30 = smov (%p27_p3, %s26_s30), 0 }
  0x21   : > { %s2897_s12 = sadd.s32 4294967295, %s5256_s30  ;;  %p96_p9 = scmp.ne.s32.totalorder %s4616_s20, %s4612_s19 }
  0x22   : > { %s5258_s10 = smov (!%p81_p6, %s2896_s10), 0  ;;  %p84_p10 = scmp.gt.s32.totalorder %s2897_s12, 0 }
  0x23   : > { %p97_p11 = scmp.eq.s32.totalorder %s4628_s23, 0  ;;  %p5227_p12 = scmp.lt.s32.totalorder %s4628_s23, 4 }
  0x24   : > { %3937 = dma.hbm_to_vmem [thread:$0]  (!%p4728_p7), %s5234_s0, 1024, %s181_s28, [#allocation8], %s5223_s6, %s5223_s6, %s5225_s7  }
  0x25   : > { %s207_s13 = sand.u32 1, %s4628_s23   ;;  %s5260_s12 = smov (!%p84_p10, %s2897_s12), 0 }
  0x26   : > { %p98_p13 = por %p97_p11, %p96_p9  ;;  %s86_s14 = ssub.s32 %s5258_s10, %s5260_s12 }
  0x27   : > { %s209_s18 = sand.u32 1, %s4616_s20   ;;  %p87_p0 = scmp.eq.s32.totalorder %s86_s14, 0 }
  0x28   : > { %s3915_s27 = smul.u32 192, %s209_s18  ;;  %p4761_p2 = pnand %p5227_p12, %p98_p13 }
  0x29   : > { %s3916_s28 = smul.u32 3072, %s5258_s10  ;;  %s4771_s12 = scalar_lea.sflag [#allocation8], %s207_s13 }
  0x2a   : > { %s4766_s8 = scalar_select %p87_p0, %s4616_s20, %s89_s11  }
  0x2b   : > { %s220_s7 = scalar_lea.hbm %s5220_s2, %s3916_s28  ;;  %s211_s0 = scalar_lea.vmem [#allocation12], %s3915_s27 }
  0x2c   : > { %s221_s4 = sshll.u32 %s211_s0, 4  ;;  %p4434_p3 = pneg %p4761_p2  ;;  %s222_s4 = int_to_ptr.vmem [resolvable:$true] %s221_s4 }
  0x2d   : > { %s4445_s10 = scalar_lea.vmem %s222_s4, 3072  ;;  %s4633_s14 = smov [#allocation12]  }
  0x2e   : > { %p4446_p6 = scmp.ne.s32.totalorder %s222_s4, %s4445_s10  ;;  %s4450_s18 = sshll.u32 %s4633_s14, 4  ;;  %s4451_s18 = int_to_ptr.vmem [resolvable:$false] %s4450_s18 }
  0x2f   : > { %s4452_s11 = scalar_lea.vmem %s4451_s18, 6144  ;;  %p4453_p13 = scmp.lt.s32.totalorder %s222_s4, %s4451_s18 }
  0x30   : > { %p4448_p9 = pnand %p4446_p6, %p4434_p3  ;;  %p4454_p0 = scmp.lt.s32.totalorder %s4452_s11, %s4445_s10 }
  0x32   : > { %p4449_p10 = pneg %p4448_p9  ;;  %p4455_p12 = por %p4454_p0, %p4453_p13 }
  0x34   : > { %p4456_p1 = pnand %p4455_p12, %p4449_p10 }
  0x36   : > { %4459 = shalt.err (!%p4456_p1)
}
  0x37   : > { %s5236_s0 = smov 4   ;;  %s5237_s6 = smov 64  }
  0x38   : > { %3944 = dma.hbm_to_vmem [thread:$0]  (!%p4761_p2), %s220_s7, 3072, %s222_s4, %s4771_s12, %s5237_s6, %s5237_s6, %s5236_s0  }
  0x39   : > { %s4634_s13 = smov [#allocation10]  }
  0x3a   : > { %s193_s27 = sshll.u32 %s4634_s13, 4  ;;  %s194_s27 = int_to_ptr.vmem [resolvable:$true] %s193_s27 }
  0x3b   : > { %s4471_s28 = scalar_lea.vmem %s194_s27, 4096  ;;  %p4479_p13 = scmp.lt.s32.totalorder %s194_s27, %s194_s27 }
  0x3c   : > { %p4472_p3 = scmp.ne.s32.totalorder %s194_s27, %s4471_s28  ;;  %p4480_p12 = scmp.lt.s32.totalorder %s4471_s28, %s4471_s28 }
  0x3e   : > { %p4474_p6 = pnand %p4472_p3, %p4408_p8  ;;  %p4481_p1 = por %p4480_p12, %p4479_p13 }
  0x40   : > { %p4475_p9 = pneg %p4474_p6 }
  0x42   : > { %p4482_p10 = pnand %p4481_p1, %p4475_p9 }
  0x44   : > { %4485 = shalt.err (!%p4482_p10)
}
  0x45   : > { %3940 = dma.hbm_to_vmem [thread:$0]  (!%p4728_p7), %s5219_s1, 4096, %s194_s27, [#allocation11], %s5237_s6, %s5237_s6, %s5236_s0  }
  0x46   : > { %s112_s29 = ssub.s32 %s4624_s22, %s5256_s30  ;;  %s115_s5 = sadd.s32 1, %s4604_s17 }
  0x47   : > { %p113_p8 = scmp.eq.s32.totalorder %s112_s29, 0  ;;  %p122_p2 = scmp.ne.s32.totalorder %s4604_s17, %s4600_s16 }
  0x48   : > { %p128_p0 = scmp.ne.s32.totalorder %s4600_s16, %s4596_s15  ;;  %s233_s9 = sand.u32 1, %s4604_s17  }
  0x49   : > { %s4801_s10 = scalar_select %p113_p8, %s4604_s17, %s115_s5  }
  0x4a   : > { %p124_p3 = por %p122_p2, %p97_p11  ;;  %p5238_p6 = scmp.eq.s32.totalorder %s4708_s24, 0 }
  0x4b   : > { %s2904_s18 = sshll.u32 %s233_s9, 1  ;;  %s2905_s11 = sshll.u32 %s4624_s22, 5 }
  0x4c   : > { %p4807_p9 = por %p128_p0, %p5238_p6  ;;  %s240_s0 = scalar_lea.hbm %s5221_s3, %s2905_s11 }
  0x4d   : > { %s235_s6 = scalar_lea.vmem [#allocation13], %s2904_s18  ;;  %p5240_p7 = scmp.lt.s32.totalorder %s4628_s23, 4 }
  0x4e   : > { %s242_s27 = sshll.u32 %s235_s6, 4  ;;  %s4635_s7 = smov [#allocation13]   ;;  %s243_s27 = int_to_ptr.vmem [resolvable:$true] %s242_s27 }
  0x4f   : > { %p4817_p13 = pnand %p5240_p7, %p124_p3  ;;  %s4499_s4 = scalar_lea.vmem %s243_s27, 32 }
  0x50   : > { %p4500_p12 = scmp.ne.s32.totalorder %s243_s27, %s4499_s4  ;;  %s4504_s29 = sshll.u32 %s4635_s7, 4  ;;  %s4505_s29 = int_to_ptr.vmem [resolvable:$false] %s4504_s29 }
  0x51   : > { %p4488_p11 = pneg %p4817_p13  ;;  %s4506_s5 = scalar_lea.vmem %s4505_s29, 64 }
  0x52   : > { %p4507_p8 = scmp.lt.s32.totalorder %s243_s27, %s4505_s29  ;;  %p4508_p2 = scmp.lt.s32.totalorder %s4506_s5, %s4499_s4 }
  0x53   : > { %p4502_p1 = pnand %p4500_p12, %p4488_p11 }
  0x54   : > { %p4509_p0 = por %p4508_p2, %p4507_p8 }
  0x55   : > { %p4503_p10 = pneg %p4502_p1 }
  0x57   : > { %p4510_p6 = pnand %p4509_p0, %p4503_p10 }
  0x59   : > { %4513 = shalt.err (!%p4510_p6)
}
  0x5a   : > { %3947 = dma.hbm_to_vmem [thread:$0]  (!%p4817_p13), %s240_s0, 32, %s243_s27, %s4771_s12  }
  0x5b   : > { %251 = sbr.rel (%p4720_p5) target bundleno = 1032 (0x408), region = 36  ;;  %p5242_p3 = scmp.eq.s32.totalorder (!%p4720_p5), %s4708_s24, 0 }
  0x60   : > { %4575 = dma.done.wait (%p5242_p3), [#allocation8], 1024   ;;  %p5243_p7 = pmov %p5242_p3 }
  0x61   : > { %p5244_p11 = pmov %p5242_p3 }
  0x62   : > { %4577 = vsyncadd (%p5243_p7), [#allocation8], 4294966272 }
  0x63   : > { %4579 = dma.done.wait (%p5244_p11), [#allocation11], 4096   ;;  %p5245_p12 = pmov %p5242_p3 }
  0x64   : > { %s261_s9 = sand.u32 1, %s4708_s24   ;;  %s263_s12 = sand.u32 1, %s4612_s19  }
  0x65   : > { %4581 = vsyncadd (%p5245_p12), [#allocation11], 4294963200  ;;  %s3917_s18 = smul.u32 192, %s263_s12  ;;  %s262_s26 = scalar_lea.sflag [#allocation8], %s261_s9 }
  0x67   : > { %s4838_s11 = scalar_lea.vmem [#allocation12], %s3917_s18 }
  0x68   : > { %4583 = dma.done.wait (%p4716_p4), %s262_s26, 3072  }
  0x69   : > { %4585 = vsyncadd (%p4716_p4), %s262_s26, 4294964224  ;;  %s272_s13 = sand.u32 1, %s4600_s16  }
  0x6a   : > { %s2909_s28 = sshll.u32 %s272_s13, 1 }
  0x6b   : > { %s274_s0 = scalar_lea.vmem [#allocation13], %s2909_s28 }
  0x6c   : > { %4587 = dma.done.wait (%p4807_p9), %s262_s26, 32  }
  0x6d   : > { %4589 = vsyncadd (%p4807_p9), %s262_s26, 4294967264  ;;  %v4849_v0 = vld [vmem:[%s274_s0] sm:$0x1]  ;;  %v4851_v1 = vld [vmem:[%s274_s0 + $0x1] sm:$0x1]  ;;  %p2910_p5 = scmp.ne.s32.totalorder %s4620_s21, 0 }
  0x6f   : > { %310 = sbr.rel (%p2910_p5) target bundleno = 446 (0x1be), region = 56 }
  0x74   : > { %v4034_v2 = vld [vmem:[#allocation10 + $0x78] sm:$0xff]   ;;  %v4035_v3 = vld [vmem:[#allocation10 + $0x70] sm:$0xff]   ;;  %v4036_v4 = vld [vmem:[#allocation10 + $0x68] sm:$0xff]   ;;  %v344_v42 = vlaneseq }
  0x75   : > { %3675 = vmatprep.subr.bf16.mxu0 %v4034_v2  ;;  %v4037_v5 = vld [vmem:[#allocation10 + $0x60] sm:$0xff]   ;;  %v4043_v7 = vld [vmem:[#allocation10 + $0x38] sm:$0xff]   ;;  %v4046_v9 = vld [vmem:[#allocation10 + $0x30] sm:$0xff]  }
  0x76   : > { %3676 = vmatpush3.bf16.msra.mxu0 %v4034_v2  ;;  %v4854_v6 = vld [vmem:[#allocation7] sm:$0xff]   ;;  %v4038_v8 = vld [vmem:[#allocation10 + $0x58] sm:$0xff]   ;;  %3707 = vmatprep.subr.bf16.mxu1 %v4043_v7  ;;  %v4049_v10 = vld [vmem:[#allocation10 + $0x28] sm:$0xff]   ;;  %v4884_v43 = vshrl.u32 %v344_v42, 7 }
  0x77   : > { %3677 = vmatprep.subr.bf16.mxu0 %v4035_v3  ;;  %3691 = vmatprep.mubr.bf16.mxu0 %v4854_v6  ;;  %v4039_v11 = vld [vmem:[#allocation10 + $0x50] sm:$0xff]   ;;  %v4052_v12 = vld [vmem:[#allocation10 + $0x20] sm:$0xff]   ;;  %v4040_v13 = vld [vmem:[#allocation10 + $0x48] sm:$0xff]  }
  0x78   : > { %3723 = vmatprep.mubr.bf16.mxu1 %v4854_v6  ;;  %3708 = vmatpush3.bf16.msra.mxu1 %v4043_v7  ;;  %v4055_v14 = vld [vmem:[#allocation10 + $0x18] sm:$0xff]   ;;  %v4041_v15 = vld [vmem:[#allocation10 + $0x40] sm:$0xff]   ;;  %v4058_v16 = vld [vmem:[#allocation10 + $0x10] sm:$0xff]   ;;  %v346_v44 = vsub.s32 0, %v4884_v43 }
  0x79   : > { %3709 = vmatprep.subr.bf16.mxu1 %v4046_v9  ;;  %v4045_v17 = vld [vmem:[#allocation10 + $0xb8] sm:$0xff]   ;;  %v4061_v18 = vld [vmem:[#allocation10 + $0x8] sm:$0xff]   ;;  %v4860_v20 = vld [vmem:[#allocation7 + $0x10] sm:$0xff]  }
  0x7a   : > { %3678 = vmatpush3.bf16.msra.mxu0 %v4035_v3  ;;  %v4858_v19 = vld [vmem:[#allocation7 + $0x8] sm:$0xff]   ;;  %v4047_v21 = vld [vmem:[#allocation10 + $0xb0] sm:$0xff]   ;;  %v4064_v22 = vld [vmem:[#allocation10] sm:$0xff]   ;;  %v4890_v45 = vrot.slane %v4849_v0, %v346_v44 }
  0x7b   : > { %3679 = vmatprep.subr.bf16.mxu0 %v4036_v4  ;;  %v4051_v23 = vld [vmem:[#allocation10 + $0xa8] sm:$0xff]   ;;  %v4066_v24 = vld [vmem:[#allocation10 + $0xf8] sm:$0xff]   ;;  %v4866_v26 = vld [vmem:[#allocation7 + $0x20] sm:$0xff]  }
  0x7c   : > { %3710 = vmatpush3.bf16.msra.mxu1 %v4046_v9  ;;  %v4864_v25 = vld [vmem:[#allocation7 + $0x18] sm:$0xff]   ;;  %v4053_v27 = vld [vmem:[#allocation10 + $0xa0] sm:$0xff]   ;;  %v4067_v28 = vld [vmem:[#allocation10 + $0xf0] sm:$0xff]  }
  0x7d   : > { %3711 = vmatprep.subr.bf16.mxu1 %v4049_v10  ;;  %v4057_v29 = vld [vmem:[#allocation10 + $0x98] sm:$0xff]   ;;  %v4056_v30 = vld [vmem:[#allocation7 + $0x28] sm:$0xff]   ;;  %v4060_v32 = vld [vmem:[#allocation7 + $0x30] sm:$0xff]  }
  0x7e   : > { %3680 = vmatpush3.bf16.msra.mxu0 %v4036_v4  ;;  %v4068_v31 = vld [vmem:[#allocation10 + $0xe8] sm:$0xff]   ;;  %v4059_v33 = vld [vmem:[#allocation10 + $0x90] sm:$0xff]   ;;  %v4069_v34 = vld [vmem:[#allocation10 + $0xe0] sm:$0xff]  }
  0x7f   : > { %3681 = vmatprep.subr.bf16.mxu0 %v4037_v5  ;;  %v4063_v35 = vld [vmem:[#allocation10 + $0x88] sm:$0xff]   ;;  %v4062_v36 = vld [vmem:[#allocation7 + $0x38] sm:$0xff]   ;;  %v4065_v38 = vld [vmem:[#allocation10 + $0x80] sm:$0xff]  }
  0x80   : > { %3712 = vmatpush3.bf16.msra.mxu1 %v4049_v10  ;;  %v4070_v37 = vld [vmem:[#allocation10 + $0xd8] sm:$0xff]   ;;  %v4071_v39 = vld [vmem:[#allocation10 + $0xd0] sm:$0xff]   ;;  %v4072_v40 = vld [vmem:[#allocation10 + $0xc8] sm:$0xff]  }
  0x81   : > { %3713 = vmatprep.subr.bf16.mxu1 %v4052_v12  ;;  %v4073_v41 = vld [vmem:[#allocation10 + $0xc0] sm:$0xff]  }
  0x82   : > { %3682 = vmatpush3.bf16.msra.mxu0 %v4037_v5 }
  0x83   : > { %3683 = vmatprep.subr.bf16.mxu0 %v4038_v8 }
  0x84   : > { %3714 = vmatpush3.bf16.msra.mxu1 %v4052_v12 }
  0x85   : > { %3715 = vmatprep.subr.bf16.mxu1 %v4055_v14 }
  0x86   : > { %3684 = vmatpush3.bf16.msra.mxu0 %v4038_v8 }
  0x87   : > { %3685 = vmatprep.subr.bf16.mxu0 %v4039_v11 }
  0x88   : > { %3716 = vmatpush3.bf16.msra.mxu1 %v4055_v14 }
  0x89   : > { %3717 = vmatprep.subr.bf16.mxu1 %v4058_v16 }
  0x8a   : > { %3686 = vmatpush3.bf16.msra.mxu0 %v4039_v11 }
  0x8b   : > { %3687 = vmatprep.subr.bf16.mxu0 %v4040_v13 }
  0x8c   : > { %3718 = vmatpush3.bf16.msra.mxu1 %v4058_v16 }
  0x8d   : > { %3719 = vmatprep.subr.bf16.mxu1 %v4061_v18 }
  0x8e   : > { %3688 = vmatpush3.bf16.msra.mxu0 %v4040_v13 }
  0x8f   : > { %3689 = vmatprep.subr.bf16.mxu0 %v4041_v15 }
  0x90   : > { %3720 = vmatpush3.bf16.msra.mxu1 %v4061_v18 }
  0x91   : > { %3721 = vmatprep.subr.bf16.mxu1 %v4064_v22 }
  0x92   : > { %3690 = vmatpush3.bf16.msra.mxu0 %v4041_v15 }
  0x93   : > { %3739 = vmatprep.subr.bf16.mxu0 %v4045_v17 }
  0x94   : > { %3722 = vmatpush3.bf16.msra.mxu1 %v4064_v22 }
  0x95   : > { %3692 = vmatmul.mubr.bf16.vlgmr.msra.gmra.mxu0 %v4858_v19  ;;  %3771 = vmatprep.subr.bf16.mxu1 %v4066_v24 }
  0x96   : > { %3740 = vmatpush3.bf16.msra.mxu0 %v4045_v17  ;;  %3695 = vmatprep.mubr.bf16.mxu0 %v4860_v20 }
  0x97   : > { %3741 = vmatprep.subr.bf16.mxu0 %v4047_v21  ;;  %3724 = vmatmul.mubr.bf16.vlgmr.msra.gmra.mxu1 %v4858_v19 }
  0x98   : > { %3772 = vmatpush3.bf16.msra.mxu1 %v4066_v24  ;;  %3727 = vmatprep.mubr.bf16.mxu1 %v4860_v20 }
  0x99   : > { %3773 = vmatprep.subr.bf16.mxu1 %v4067_v28 }
  0x9a   : > { %3742 = vmatpush3.bf16.msra.mxu0 %v4047_v21 }
  0x9b   : > { %3743 = vmatprep.subr.bf16.mxu0 %v4051_v23 }
  0x9c   : > { %3774 = vmatpush3.bf16.msra.mxu1 %v4067_v28 }
  0x9d   : > { %3696 = vmatmul.mubr.bf16.gmra.mxu0 %v4864_v25  ;;  %3775 = vmatprep.subr.bf16.mxu1 %v4068_v31 }
  0x9e   : > { %3744 = vmatpush3.bf16.msra.mxu0 %v4051_v23  ;;  %3699 = vmatprep.mubr.bf16.mxu0 %v4866_v26 }
  0x9f   : > { %3745 = vmatprep.subr.bf16.mxu0 %v4053_v27  ;;  %3728 = vmatmul.mubr.bf16.gmra.mxu1 %v4864_v25 }
  0xa0   : > { %3776 = vmatpush3.bf16.msra.mxu1 %v4068_v31  ;;  %3731 = vmatprep.mubr.bf16.mxu1 %v4866_v26 }
  0xa1   : > { %3777 = vmatprep.subr.bf16.mxu1 %v4069_v34 }
  0xa2   : > { %3746 = vmatpush3.bf16.msra.mxu0 %v4053_v27 }
  0xa3   : > { %3747 = vmatprep.subr.bf16.mxu0 %v4057_v29 }
  0xa4   : > { %3778 = vmatpush3.bf16.msra.mxu1 %v4069_v34 }
  0xa5   : > { %3700 = vmatmul.mubr.bf16.gmra.mxu0 %v4056_v30  ;;  %3779 = vmatprep.subr.bf16.mxu1 %v4070_v37 }
  0xa6   : > { %3748 = vmatpush3.bf16.msra.mxu0 %v4057_v29  ;;  %3703 = vmatprep.mubr.bf16.mxu0 %v4060_v32 }
  0xa7   : > { %3749 = vmatprep.subr.bf16.mxu0 %v4059_v33  ;;  %3732 = vmatmul.mubr.bf16.gmra.mxu1 %v4056_v30 }
  0xa8   : > { %3780 = vmatpush3.bf16.msra.mxu1 %v4070_v37  ;;  %3735 = vmatprep.mubr.bf16.mxu1 %v4060_v32 }
  0xa9   : > { %3781 = vmatprep.subr.bf16.mxu1 %v4071_v39 }
  0xaa   : > { %3750 = vmatpush3.bf16.msra.mxu0 %v4059_v33 }
  0xab   : > { %3751 = vmatprep.subr.bf16.mxu0 %v4063_v35 }
  0xac   : > { %3782 = vmatpush3.bf16.msra.mxu1 %v4071_v39 }
  0xad   : > { %3704 = vmatmul.mubr.bf16.gmra.mxu0 %v4062_v36  ;;  %3783 = vmatprep.subr.bf16.mxu1 %v4072_v40 }
  0xae   : > { %3752 = vmatpush3.bf16.msra.mxu0 %v4063_v35  ;;  %3755 = vmatprep.mubr.bf16.mxu0 %v4854_v6 }
  0xaf   : > { %3753 = vmatprep.subr.bf16.mxu0 %v4065_v38  ;;  %3736 = vmatmul.mubr.bf16.gmra.mxu1 %v4062_v36 }
  0xb0   : > { %3784 = vmatpush3.bf16.msra.mxu1 %v4072_v40  ;;  %3787 = vmatprep.mubr.bf16.mxu1 %v4854_v6 }
  0xb1   : > { %3785 = vmatprep.subr.bf16.mxu1 %v4073_v41 }
  0xb2   : > { %3754 = vmatpush3.bf16.msra.mxu0 %v4065_v38 }
  0xb4   : > { %3786 = vmatpush3.bf16.msra.mxu1 %v4073_v41 }
  0xb5   : > { %3756 = vmatmul.mubr.bf16.vlgmr.msra.gmra.mxu0 %v4858_v19 }
  0xb6   : > { %3759 = vmatprep.mubr.bf16.mxu0 %v4860_v20 }
  0xb7   : > { %3788 = vmatmul.mubr.bf16.vlgmr.msra.gmra.mxu1 %v4858_v19 }
  0xb8   : > { %3791 = vmatprep.mubr.bf16.mxu1 %v4860_v20 }
  0xbd   : > { %3760 = vmatmul.mubr.bf16.gmra.mxu0 %v4864_v25 }
  0xbe   : > { %3763 = vmatprep.mubr.bf16.mxu0 %v4866_v26 }
  0xbf   : > { %3792 = vmatmul.mubr.bf16.gmra.mxu1 %v4864_v25 }
  0xc0   : > { %3795 = vmatprep.mubr.bf16.mxu1 %v4866_v26 }
  0xc5   : > { %3764 = vmatmul.mubr.bf16.gmra.mxu0 %v4056_v30 }
  0xc6   : > { %3767 = vmatprep.mubr.bf16.mxu0 %v4060_v32 }
  0xc7   : > { %3796 = vmatmul.mubr.bf16.gmra.mxu1 %v4056_v30 }
  0xc8   : > { %3799 = vmatprep.mubr.bf16.mxu1 %v4060_v32 }
  0xcd   : > { %3768 = vmatmul.mubr.bf16.gmra.mxu0 %v4062_v36 }
  0xcf   : > { %3800 = vmatmul.mubr.bf16.gmra.mxu1 %v4062_v36 }
 0x155   : > { %v3693_v46 = vpop.f32.mrf.mxu0 }
 0x156   : > { %v487_v47 = vadd.f32 %v3693_v46, %v4890_v45 }
 0x157   : > { %v478_v48 = vpop.f32.mrf.mxu0  ;;  %v4897_v61 = vpop.f32.mrf.mxu1 }
 0x158   : > { %v2929_v49 = vmul.f32 -1.442695, %v487_v47  ;;  %v479_v50 = vadd.f32 %v478_v48, %v4890_v45 }
 0x159   : > { %v3694_v51 = vpop.f32.mrf.mxu0  ;;  %v4900_v3 = vpop.f32.mrf.mxu1 }
 0x15a   : > { %4074 = vpow2.f32 %v2929_v49  ;;  %v2927_v52 = vmul.f32 -1.442695, %v479_v50  ;;  %v490_v53 = vadd.f32 %v3694_v51, %v4890_v45  ;;  %v4927_v49 = vrot.slane %v4851_v1, %v346_v44 }
 0x15b   : > { %v481_v54 = vpop.f32.mrf.mxu0  ;;  %v4903_v7 = vpop.f32.mrf.mxu1 }
 0x15c   : > { %4076 = vpow2.f32 %v2927_v52  ;;  %v2930_v55 = vmul.f32 -1.442695, %v490_v53  ;;  %v482_v56 = vadd.f32 %v481_v54, %v4890_v45 }
 0x15d   : > { %v3697_v57 = vpop.f32.mrf.mxu0  ;;  %v4906_v11 = vpop.f32.mrf.mxu1 }
 0x15e   : > { %4078 = vpow2.f32 %v2930_v55  ;;  %v2928_v58 = vmul.f32 -1.442695, %v482_v56  ;;  %v503_v59 = vadd.f32 %v3697_v57, %v4890_v45 }
 0x15f   : > { %v494_v60 = vpop.f32.mrf.mxu0  ;;  %v4909_v16 = vpop.f32.mrf.mxu1 }
 0x160   : > { %4080 = vpow2.f32 %v2928_v58  ;;  %v2933_v62 = vmul.f32 -1.442695, %v503_v59  ;;  %v495_v63 = vadd.f32 %v494_v60, %v4890_v45 }
 0x161   : > { %v3698_v2 = vpop.f32.mrf.mxu0  ;;  %v4912_v22 = vpop.f32.mrf.mxu1 }
 0x162   : > { %4082 = vpow2.f32 %v2933_v62  ;;  %v2931_v4 = vmul.f32 -1.442695, %v495_v63  ;;  %v506_v5 = vadd.f32 %v3698_v2, %v4890_v45 }
 0x163   : > { %v497_v6 = vpop.f32.mrf.mxu0  ;;  %v4915_v28 = vpop.f32.mrf.mxu1 }
 0x164   : > { %4084 = vpow2.f32 %v2931_v4  ;;  %v2934_v8 = vmul.f32 -1.442695, %v506_v5  ;;  %v498_v9 = vadd.f32 %v497_v6, %v4890_v45 }
 0x165   : > { %v3701_v10 = vpop.f32.mrf.mxu0  ;;  %v4918_v34 = vpop.f32.mrf.mxu1 }
 0x166   : > { %4086 = vpow2.f32 %v2934_v8  ;;  %v2932_v12 = vmul.f32 -1.442695, %v498_v9  ;;  %v519_v13 = vadd.f32 %v3701_v10, %v4890_v45 }
 0x167   : > { %v4075_v14 = vpop.eup %4074  ;;  %v510_v15 = vpop.f32.mrf.mxu0 }
 0x168   : > { %v591_v17 = vadd.f32 1.0, %v4075_v14  ;;  %4088 = vpow2.f32 %v2932_v12  ;;  %v2937_v18 = vmul.f32 -1.442695, %v519_v13  ;;  %v511_v19 = vadd.f32 %v510_v15, %v4890_v45  ;;  %v4921_v40 = vpop.f32.mrf.mxu1 }
 0x169   : > { %v4077_v20 = vpop.eup %4076  ;;  %v3702_v21 = vpop.f32.mrf.mxu0 }
 0x16a   : > { %4090 = vrcp.f32 %v591_v17  ;;  %v589_v23 = vadd.f32 1.0, %v4077_v20  ;;  %v2935_v24 = vmul.f32 -1.442695, %v511_v19  ;;  %v522_v25 = vadd.f32 %v3702_v21, %v4890_v45  ;;  %v4929_v50 = vpop.f32.mrf.mxu1 }
 0x16b   : > { %v4079_v26 = vpop.eup %4078  ;;  %4092 = vpow2.f32 %v2937_v18  ;;  %v513_v27 = vpop.f32.mrf.mxu0 }
 0x16c   : > { %4094 = vrcp.f32 %v589_v23  ;;  %v592_v29 = vadd.f32 1.0, %v4079_v26  ;;  %v2938_v30 = vmul.f32 -1.442695, %v522_v25  ;;  %v514_v31 = vadd.f32 %v513_v27, %v4890_v45  ;;  %v4932_v56 = vpop.f32.mrf.mxu1 }
 0x16d   : > { %v4081_v32 = vpop.eup %4080  ;;  %4096 = vpow2.f32 %v2935_v24  ;;  %v3705_v33 = vpop.f32.mrf.mxu0 }
 0x16e   : > { %4098 = vrcp.f32 %v592_v29  ;;  %v590_v35 = vadd.f32 1.0, %v4081_v32  ;;  %v2936_v36 = vmul.f32 -1.442695, %v514_v31  ;;  %v535_v37 = vadd.f32 %v3705_v33, %v4890_v45  ;;  %v4935_v60 = vpop.f32.mrf.mxu1 }
 0x16f   : > { %v4083_v38 = vpop.eup %4082  ;;  %4100 = vpow2.f32 %v2938_v30  ;;  %v526_v39 = vpop.f32.mrf.mxu0 }
 0x170   : > { %4102 = vrcp.f32 %v590_v35  ;;  %v595_v41 = vadd.f32 1.0, %v4083_v38  ;;  %v2941_v42 = vmul.f32 -1.442695, %v535_v37  ;;  %v527_v46 = vadd.f32 %v526_v39, %v4890_v45  ;;  %v4938_v6 = vpop.f32.mrf.mxu1 }
 0x171   : > { %v4085_v47 = vpop.eup %4084  ;;  %4104 = vpow2.f32 %v2936_v36  ;;  %v3706_v48 = vpop.f32.mrf.mxu0 }
 0x172   : > { %4106 = vrcp.f32 %v595_v41  ;;  %v593_v51 = vadd.f32 1.0, %v4085_v47  ;;  %v2939_v52 = vmul.f32 -1.442695, %v527_v46  ;;  %v538_v53 = vadd.f32 %v3706_v48, %v4890_v45  ;;  %v4941_v15 = vpop.f32.mrf.mxu1 }
 0x173   : > { %v4087_v54 = vpop.eup %4086  ;;  %4108 = vpow2.f32 %v2941_v42  ;;  %v529_v55 = vpop.f32.mrf.mxu0 }
 0x174   : > { %4110 = vrcp.f32 %v593_v51  ;;  %v596_v57 = vadd.f32 1.0, %v4087_v54  ;;  %v2942_v58 = vmul.f32 -1.442695, %v538_v53  ;;  %v530_v43 = vadd.f32 %v529_v55, %v4890_v45  ;;  %v4945_v26 = vpop.f32.mrf.mxu1 }
 0x175   : > { %v4089_v59 = vpop.eup %4088  ;;  %4112 = vpow2.f32 %v2939_v52  ;;  %v3757_v44 = vpop.f32.mrf.mxu0 }
 0x176   : > { %4114 = vrcp.f32 %v596_v57  ;;  %v594_v62 = vadd.f32 1.0, %v4089_v59  ;;  %v2940_v63 = vmul.f32 -1.442695, %v530_v43  ;;  %v974_v2 = vadd.f32 %v3757_v44, %v4927_v49  ;;  %v4949_v36 = vpop.f32.mrf.mxu1 }
 0x177   : > { %v4091_v4 = vpop.eup %4090  ;;  %4116 = vpow2.f32 %v2942_v58  ;;  %v965_v5 = vpop.f32.mrf.mxu0 }
 0x178   : > { %v4093_v8 = vpop.eup %4092  ;;  %639 = vst [vmem:[#allocation3 + $0x58] sm:$0xff] %v4091_v4  ;;  %4118 = vrcp.f32 %v594_v62  ;;  %v655_v9 = vsub.f32 1.0, %v4091_v4  ;;  %v2961_v45 = vmul.f32 -1.442695, %v974_v2  ;;  %v966_v10 = vadd.f32 %v965_v5, %v4927_v49  ;;  %v4953_v48 = vpop.f32.mrf.mxu1 }
 0x179   : > { %v4095_v12 = vpop.eup %4094  ;;  %v599_v13 = vadd.f32 1.0, %v4093_v8  ;;  %4120 = vpow2.f32 %v2940_v63  ;;  %v3758_v14 = vpop.f32.mrf.mxu0 }
 0x17a   : > { %v4097_v17 = vpop.eup %4096  ;;  %637 = vst [vmem:[#allocation3 + $0x30] sm:$0xff] %v4095_v12  ;;  %v832_v18 = vmul.f32 %v4897_v61, %v655_v9  ;;  %4122 = vpow2.f32 %v2961_v45  ;;  %v653_v19 = vsub.f32 1.0, %v4095_v12  ;;  %v2959_v20 = vmul.f32 -1.442695, %v966_v10  ;;  %v4957_v43 = vpop.f32.mrf.mxu1 }
 0x17b   : > { %v4099_v21 = vpop.eup %4098  ;;  %4124 = vrcp.f32 %v599_v13  ;;  %v597_v23 = vadd.f32 1.0, %v4097_v17  ;;  %v977_v24 = vadd.f32 %v3758_v14, %v4927_v49  ;;  %v968_v25 = vpop.f32.mrf.mxu0 }
 0x17c   : > { %v4101_v27 = vpop.eup %4100  ;;  %640 = vst [vmem:[#allocation3 + $0x18] sm:$0xff] %v4099_v21  ;;  %848 = vst [vmem:[#allocation4 + $0x10] sm:$0xff] %v832_v18  ;;  %v830_v29 = vmul.f32 %v4900_v3, %v653_v19  ;;  %4126 = vpow2.f32 %v2959_v20  ;;  %v656_v30 = vsub.f32 1.0, %v4099_v21  ;;  %v969_v61 = vadd.f32 %v968_v25, %v4927_v49  ;;  %v4962_v12 = vpop.f32.mrf.mxu1 }
 0x17d   : > { %v4103_v31 = vpop.eup %4102  ;;  %4128 = vrcp.f32 %v597_v23  ;;  %v600_v32 = vadd.f32 1.0, %v4101_v27  ;;  %v2962_v33 = vmul.f32 -1.442695, %v977_v24  ;;  %v3761_v35 = vpop.f32.mrf.mxu0 }
 0x17e   : > { %v4105_v37 = vpop.eup %4104  ;;  %638 = vst [vmem:[#allocation3] sm:$0xff] %v4103_v31  ;;  %846 = vst [vmem:[#allocation4 + $0x28] sm:$0xff] %v830_v29  ;;  %v833_v38 = vmul.f32 %v4903_v7, %v656_v30  ;;  %v654_v39 = vsub.f32 1.0, %v4103_v31  ;;  %v2960_v41 = vmul.f32 -1.442695, %v969_v61  ;;  %v990_v3 = vadd.f32 %v3761_v35, %v4927_v49  ;;  %v4968_v61 = vpop.f32.mrf.mxu1 }
 0x17f   : > { %v4107_v42 = vpop.eup %4106  ;;  %4130 = vrcp.f32 %v600_v32  ;;  %v598_v46 = vadd.f32 1.0, %v4105_v37  ;;  %v981_v47 = vpop.f32.mrf.mxu0 }
 0x180   : > { %v4109_v51 = vpop.eup %4108  ;;  %643 = vst [vmem:[#allocation3 + $0x8] sm:$0xff] %v4107_v42  ;;  %849 = vst [vmem:[#allocation4 + $0x40] sm:$0xff] %v833_v38  ;;  %4132 = vpow2.f32 %v2962_v33  ;;  %v831_v52 = vmul.f32 %v4906_v11, %v654_v39  ;;  %v659_v53 = vsub.f32 1.0, %v4107_v42  ;;  %v2965_v54 = vmul.f32 -1.442695, %v990_v3 }
 0x181   : > { %v4111_v55 = vpop.eup %4110  ;;  %4134 = vrcp.f32 %v598_v46  ;;  %v603_v7 = vadd.f32 1.0, %v4109_v51  ;;  %v982_v57 = vadd.f32 %v981_v47, %v4927_v49  ;;  %v3762_v58 = vpop.f32.mrf.mxu0 }
 0x182   : > { %v4113_v59 = vpop.eup %4112  ;;  %641 = vst [vmem:[#allocation3 + $0x50] sm:$0xff] %v4111_v55  ;;  %847 = vst [vmem:[#allocation4 + $0x68] sm:$0xff] %v831_v52  ;;  %4136 = vpow2.f32 %v2960_v41  ;;  %v836_v44 = vmul.f32 %v4909_v16, %v659_v53  ;;  %v657_v62 = vsub.f32 1.0, %v4111_v55  ;;  %v993_v63 = vadd.f32 %v3762_v58, %v4927_v49  ;;  %v4974_v52 = vpop.f32.mrf.mxu1 }
 0x183   : > { %v4115_v11 = vpop.eup %4114  ;;  %4138 = vrcp.f32 %v603_v7  ;;  %v601_v2 = vadd.f32 1.0, %v4113_v59  ;;  %v2963_v4 = vmul.f32 -1.442695, %v982_v57  ;;  %v984_v5 = vpop.f32.mrf.mxu0 }
 0x184   : > { %v4117_v8 = vpop.eup %4116  ;;  %644 = vst [vmem:[#allocation3 + $0x48] sm:$0xff] %v4115_v11  ;;  %852 = vst [vmem:[#allocation4 + $0x70] sm:$0xff] %v836_v44  ;;  %4140 = vpow2.f32 %v2965_v54  ;;  %v834_v9 = vmul.f32 %v4912_v22, %v657_v62  ;;  %v660_v45 = vsub.f32 1.0, %v4115_v11  ;;  %v2966_v10 = vmul.f32 -1.442695, %v993_v63 }
 0x185   : > { %v4119_v13 = vpop.eup %4118  ;;  %4142 = vrcp.f32 %v601_v2  ;;  %v604_v16 = vadd.f32 1.0, %v4117_v8  ;;  %v985_v14 = vadd.f32 %v984_v5, %v4927_v49  ;;  %v3765_v17 = vpop.f32.mrf.mxu0 }
 0x186   : > { %v4121_v18 = vpop.eup %4120  ;;  %642 = vst [vmem:[#allocation3 + $0x68] sm:$0xff] %v4119_v13  ;;  %850 = vst [vmem:[#allocation4 + $0x48] sm:$0xff] %v834_v9  ;;  %4144 = vpow2.f32 %v2963_v4  ;;  %v837_v19 = vmul.f32 %v4915_v28, %v660_v45  ;;  %v658_v20 = vsub.f32 1.0, %v4119_v13  ;;  %v1006_v21 = vadd.f32 %v3765_v17, %v4927_v49  ;;  %v4980_v8 = vpop.f32.mrf.mxu1 }
 0x187   : > { %v4123_v22 = vpop.eup %4122  ;;  %4146 = vrcp.f32 %v604_v16  ;;  %v602_v23 = vadd.f32 1.0, %v4121_v18  ;;  %v2964_v24 = vmul.f32 -1.442695, %v985_v14  ;;  %v997_v25 = vpop.f32.mrf.mxu0 }
 0x188   : > { %v4125_v27 = vpop.eup %4124  ;;  %v1078_v29 = vadd.f32 1.0, %v4123_v22  ;;  %853 = vst [vmem:[#allocation4 + $0x38] sm:$0xff] %v837_v19  ;;  %4148 = vpow2.f32 %v2966_v10  ;;  %v835_v30 = vmul.f32 %v4918_v34, %v658_v20  ;;  %v2969_v32 = vmul.f32 -1.442695, %v1006_v21 }
 0x189   : > { %v4127_v31 = vpop.eup %4126  ;;  %647 = vst [vmem:[#allocation3 + $0x10] sm:$0xff] %v4125_v27  ;;  %4150 = vrcp.f32 %v602_v23  ;;  %v663_v28 = vsub.f32 1.0, %v4125_v27  ;;  %v998_v33 = vadd.f32 %v997_v25, %v4927_v49  ;;  %v3766_v35 = vpop.f32.mrf.mxu0 }
 0x18a   : > { %v4129_v37 = vpop.eup %4128  ;;  %4152 = vrcp.f32 %v1078_v29  ;;  %v1076_v38 = vadd.f32 1.0, %v4127_v31  ;;  %851 = vst [vmem:[#allocation4 + $0x30] sm:$0xff] %v835_v30  ;;  %v1009_v39 = vadd.f32 %v3766_v35, %v4927_v49  ;;  %v4986_v25 = vpop.f32.mrf.mxu1 }
 0x18b   : > { %645 = vst [vmem:[#allocation3 + $0x40] sm:$0xff] %v4129_v37  ;;  %4154 = vpow2.f32 %v2964_v24  ;;  %v840_v34 = vmul.f32 %v4921_v40, %v663_v28  ;;  %v661_v41 = vsub.f32 1.0, %v4129_v37  ;;  %v2967_v3 = vmul.f32 -1.442695, %v998_v33  ;;  %v1000_v42 = vpop.f32.mrf.mxu0 }
 0x18c   : > { %v4131_v46 = vpop.eup %4130  ;;  %4156 = vrcp.f32 %v1076_v38  ;;  %v2970_v47 = vmul.f32 -1.442695, %v1009_v39  ;;  %v1001_v51 = vadd.f32 %v1000_v42, %v4927_v49  ;;  %v4990_v37 = vpop.f32.mrf.mxu1 }
 0x18d   : > { %v4133_v53 = vpop.eup %4132  ;;  %648 = vst [vmem:[#allocation3 + $0x38] sm:$0xff] %v4131_v46  ;;  %856 = vst [vmem:[#allocation4 + $0x18] sm:$0xff] %v840_v34  ;;  %4158 = vpow2.f32 %v2969_v32  ;;  %v838_v54 = vmul.f32 %v4929_v50, %v661_v41  ;;  %v664_v55 = vsub.f32 1.0, %v4131_v46  ;;  %v3769_v7 = vpop.f32.mrf.mxu0 }
 0x18e   : > { %v4135_v57 = vpop.eup %4134  ;;  %v1079_v40 = vadd.f32 1.0, %v4133_v53  ;;  %4160 = vpow2.f32 %v2967_v3  ;;  %v2968_v58 = vmul.f32 -1.442695, %v1001_v51  ;;  %v1022_v59 = vadd.f32 %v3769_v7, %v4927_v49 }
 0x18f   : > { %v4137_v44 = vpop.eup %4136  ;;  %646 = vst [vmem:[#allocation3 + $0x20] sm:$0xff] %v4135_v57  ;;  %854 = vst [vmem:[#allocation4 + $0x20] sm:$0xff] %v838_v54  ;;  %v841_v62 = vmul.f32 %v4932_v56, %v664_v55  ;;  %4162 = vpow2.f32 %v2970_v47  ;;  %v662_v63 = vsub.f32 1.0, %v4135_v57  ;;  %v1013_v11 = vpop.f32.mrf.mxu0 }
 0x190   : > { %v4139_v2 = vpop.eup %4138  ;;  %4164 = vrcp.f32 %v1079_v40  ;;  %v1077_v4 = vadd.f32 1.0, %v4137_v44  ;;  %v2973_v50 = vmul.f32 -1.442695, %v1022_v59  ;;  %v1014_v5 = vadd.f32 %v1013_v11, %v4927_v49  ;;  %v4993_v47 = vpop.f32.mrf.mxu1 }
 0x191   : > { %v4141_v9 = vpop.eup %4140  ;;  %651 = vst [vmem:[#allocation3 + $0x78] sm:$0xff] %v4139_v2  ;;  %857 = vst [vmem:[#allocation4 + $0x58] sm:$0xff] %v841_v62  ;;  %v839_v45 = vmul.f32 %v4935_v60, %v662_v63  ;;  %4166 = vpow2.f32 %v2968_v58  ;;  %v667_v10 = vsub.f32 1.0, %v4139_v2  ;;  %v3770_v13 = vpop.f32.mrf.mxu0 }
 0x192   : > { %v4143_v56 = vpop.eup %4142  ;;  %4168 = vrcp.f32 %v1077_v4  ;;  %v1082_v16 = vadd.f32 1.0, %v4141_v9  ;;  %v2971_v14 = vmul.f32 -1.442695, %v1014_v5  ;;  %v1025_v17 = vadd.f32 %v3770_v13, %v4927_v49  ;;  %v1335_v11 = vpop.f32.mrf.mxu1 }
 0x193   : > { %v4145_v18 = vpop.eup %4144  ;;  %649 = vst [vmem:[#allocation3 + $0x60] sm:$0xff] %v4143_v56  ;;  %855 = vst [vmem:[#allocation4 + $0x78] sm:$0xff] %v839_v45  ;;  %v844_v19 = vmul.f32 %v4938_v6, %v667_v10  ;;  %4170 = vpow2.f32 %v2973_v50  ;;  %v665_v20 = vsub.f32 1.0, %v4143_v56  ;;  %v1016_v21 = vpop.f32.mrf.mxu0 }
 0x194   : > { %v4147_v22 = vpop.eup %4146  ;;  %4172 = vrcp.f32 %v1082_v16  ;;  %v1080_v60 = vadd.f32 1.0, %v4145_v18  ;;  %v2974_v23 = vmul.f32 -1.442695, %v1025_v17  ;;  %v1017_v24 = vadd.f32 %v1016_v21, %v4927_v49 }
 0x195   : > { %v4149_v27 = vpop.eup %4148  ;;  %652 = vst [vmem:[#allocation3 + $0x28] sm:$0xff] %v4147_v22  ;;  %860 = vst [vmem:[#allocation4 + $0x60] sm:$0xff] %v844_v19  ;;  %v842_v29 = vmul.f32 %v4941_v15, %v665_v20  ;;  %4174 = vpow2.f32 %v2971_v14  ;;  %v668_v30 = vsub.f32 1.0, %v4147_v22 }
 0x196   : > { %v4151_v31 = vpop.eup %4150  ;;  %4176 = vrcp.f32 %v1080_v60  ;;  %v1083_v6 = vadd.f32 1.0, %v4149_v27  ;;  %v2972_v28 = vmul.f32 -1.442695, %v1017_v24 }
 0x197   : > { %v4153_v32 = vpop.eup %4152  ;;  %650 = vst [vmem:[#allocation3 + $0x70] sm:$0xff] %v4151_v31  ;;  %858 = vst [vmem:[#allocation4] sm:$0xff] %v842_v29  ;;  %v845_v33 = vmul.f32 %v4945_v26, %v668_v30  ;;  %4178 = vpow2.f32 %v2974_v23  ;;  %v666_v49 = vsub.f32 1.0, %v4151_v31 }
 0x198   : > { %v4155_v35 = vpop.eup %4154  ;;  %4180 = vrcp.f32 %v1083_v6  ;;  %v1368_v26 = vsub.f32 1.0, %v4153_v32 }
 0x199   : > { %v4157_v38 = vpop.eup %4156  ;;  %v1081_v39 = vadd.f32 1.0, %v4155_v35  ;;  %861 = vst [vmem:[#allocation4 + $0x50] sm:$0xff] %v845_v33  ;;  %v843_v15 = vmul.f32 %v4949_v36, %v666_v49  ;;  %4182 = vpow2.f32 %v2972_v28 }
 0x19a   : > { %v4159_v34 = vpop.eup %4158  ;;  %v1366_v7 = vsub.f32 1.0, %v4157_v38  ;;  %v1384_v44 = vmul.f32 %v4953_v48, %v1368_v26 }
 0x19b   : > { %v4161_v41 = vpop.eup %4160  ;;  %4184 = vrcp.f32 %v1081_v39  ;;  %v1086_v3 = vadd.f32 1.0, %v4159_v34  ;;  %859 = vst [vmem:[#allocation4 + $0x8] sm:$0xff] %v843_v15 }
 0x19c   : > { %v4163_v42 = vpop.eup %4162  ;;  %v1084_v46 = vadd.f32 1.0, %v4161_v41  ;;  %v1382_v5 = vmul.f32 %v1366_v7, %v4957_v43 }
 0x19d   : > { %v4165_v51 = vpop.eup %4164  ;;  %4186 = vrcp.f32 %v1086_v3  ;;  %v1087_v53 = vadd.f32 1.0, %v4163_v42 }
 0x19e   : > { %v4167_v54 = vpop.eup %4166  ;;  %v3253_v55 = vpack.c.bf16 %v4165_v51, %v4153_v32  ;;  %4188 = vrcp.f32 %v1084_v46  ;;  %v1369_v57 = vsub.f32 1.0, %v4165_v51 }
 0x19f   : > { %v4169_v36 = vpop.eup %4168  ;;  %4190 = vrcp.f32 %v1087_v53  ;;  %v1085_v40 = vadd.f32 1.0, %v4167_v54 }
 0x1a0   : > { %v4171_v58 = vpop.eup %4170  ;;  %3513 = vst [vmem:[#allocation5] sm:$0xff] %v3253_v55   ;;  %v3248_v59 = vpack.c.bf16 %v4169_v36, %v4157_v38  ;;  %v1385_v62 = vmul.f32 %v4962_v12, %v1369_v57  ;;  %v1367_v63 = vsub.f32 1.0, %v4169_v36  ;;  %v3798_v12 = vpop.f32.mrf.mxu1 }
 0x1a1   : > { %v4173_v2 = vpop.eup %4172  ;;  %4192 = vrcp.f32 %v1085_v40  ;;  %v1090_v4 = vadd.f32 1.0, %v4171_v58 }
 0x1a2   : > { %v4175_v50 = vpop.eup %4174  ;;  %3249 = vst [vmem:[#allocation5 + $0x8] sm:$0xff] %v3248_v59   ;;  %v3293_v9 = vpack.c.bf16 %v1385_v62, %v1384_v44  ;;  %v1383_v45 = vmul.f32 %v1367_v63, %v4968_v61  ;;  %v1372_v16 = vsub.f32 1.0, %v4173_v2  ;;  %v1338_v23 = vpop.f32.mrf.mxu1 }
 0x1a3   : > { %v4177_v10 = vpop.eup %4176  ;;  %4194 = vrcp.f32 %v1090_v4  ;;  %v1088_v13 = vadd.f32 1.0, %v4175_v50 }
 0x1a4   : > { %v4179_v56 = vpop.eup %4178  ;;  %3520 = vst [vmem:[#allocation6 + $0x8] sm:$0xff] %v3293_v9   ;;  %v3288_v48 = vpack.c.bf16 %v1383_v45, %v1382_v5  ;;  %v1370_v21 = vsub.f32 1.0, %v4177_v10  ;;  %v1388_v61 = vmul.f32 %v4974_v52, %v1372_v16  ;;  %v3801_v49 = vpop.f32.mrf.mxu1 }
 0x1a5   : > { %v4181_v14 = vpop.eup %4180  ;;  %4196 = vrcp.f32 %v1088_v13  ;;  %v1091_v17 = vadd.f32 1.0, %v4179_v56 }
 0x1a6   : > { %v4183_v18 = vpop.eup %4182  ;;  %v3263_v19 = vpack.c.bf16 %v4181_v14, %v4173_v2  ;;  %3289 = vst [vmem:[#allocation6 + $0x18] sm:$0xff] %v3288_v48   ;;  %v1373_v20 = vsub.f32 1.0, %v4181_v14  ;;  %v1386_v6 = vmul.f32 %v1370_v21, %v4980_v8  ;;  %v1351_v8 = vpop.f32.mrf.mxu1 }
 0x1a7   : > { %4198 = vrcp.f32 %v1091_v17  ;;  %v1089_v43 = vadd.f32 1.0, %v4183_v18 }
 0x1a8   : > { %v4185_v22 = vpop.eup %4184  ;;  %3515 = vst [vmem:[#allocation5 + $0x20] sm:$0xff] %v3263_v19   ;;  %v1389_v60 = vmul.f32 %v4986_v25, %v1373_v20  ;;  %v3802_v7 = vpop.f32.mrf.mxu1 }
 0x1a9   : > { %v3258_v24 = vpack.c.bf16 %v4185_v22, %v4177_v10  ;;  %4200 = vrcp.f32 %v1089_v43  ;;  %v1371_v27 = vsub.f32 1.0, %v4185_v22 }
 0x1aa   : > { %v4187_v29 = vpop.eup %4186  ;;  %v3303_v30 = vpack.c.bf16 %v1389_v60, %v1388_v61  ;;  %v1354_v63 = vpop.f32.mrf.mxu1 }
 0x1ab   : > { %v4189_v31 = vpop.eup %4188  ;;  %3514 = vst [vmem:[#allocation5 + $0x18] sm:$0xff] %v3258_v24   ;;  %v1387_v28 = vmul.f32 %v1371_v27, %v4990_v37  ;;  %v1376_v32 = vsub.f32 1.0, %v4187_v29 }
 0x1ac   : > { %v4191_v33 = vpop.eup %4190  ;;  %3522 = vst [vmem:[#allocation6 + $0x30] sm:$0xff] %v3303_v30   ;;  %v1374_v38 = vsub.f32 1.0, %v4189_v31 }
 0x1ad   : > { %v3273_v35 = vpack.c.bf16 %v4191_v33, %v4187_v29  ;;  %v3298_v52 = vpack.c.bf16 %v1387_v28, %v1386_v6  ;;  %v1377_v25 = vsub.f32 1.0, %v4191_v33  ;;  %v1392_v34 = vmul.f32 %v4993_v47, %v1376_v32 }
 0x1ae   : > { %v4193_v39 = vpop.eup %4192  ;;  %v1390_v37 = vmul.f32 %v1374_v38, %v1335_v11 }
 0x1af   : > { %3517 = vst [vmem:[#allocation5 + $0x28] sm:$0xff] %v3273_v35   ;;  %v3268_v15 = vpack.c.bf16 %v4193_v39, %v4189_v31  ;;  %3521 = vst [vmem:[#allocation6 + $0x10] sm:$0xff] %v3298_v52   ;;  %v1393_v41 = vmul.f32 %v3798_v12, %v1377_v25  ;;  %v1375_v3 = vsub.f32 1.0, %v4193_v39 }
 0x1b0   : > { %v4195_v42 = vpop.eup %4194 }
 0x1b1   : > { %3516 = vst [vmem:[#allocation5 + $0x38] sm:$0xff] %v3268_v15   ;;  %v3313_v46 = vpack.c.bf16 %v1393_v41, %v1392_v34  ;;  %v1391_v26 = vmul.f32 %v1375_v3, %v1338_v23  ;;  %v1380_v54 = vsub.f32 1.0, %v4195_v42 }
 0x1b2   : > { %v4197_v51 = vpop.eup %4196 }
 0x1b3   : > { %3524 = vst [vmem:[#allocation6] sm:$0xff] %v3313_v46   ;;  %v3308_v53 = vpack.c.bf16 %v1391_v26, %v1390_v37  ;;  %v1378_v36 = vsub.f32 1.0, %v4197_v51  ;;  %v1396_v59 = vmul.f32 %v3801_v49, %v1380_v54 }
 0x1b4   : > { %v4199_v55 = vpop.eup %4198 }
 0x1b5   : > { %v3283_v57 = vpack.c.bf16 %v4199_v55, %v4195_v42  ;;  %3523 = vst [vmem:[#allocation6 + $0x20] sm:$0xff] %v3308_v53   ;;  %v1381_v40 = vsub.f32 1.0, %v4199_v55  ;;  %v1394_v11 = vmul.f32 %v1378_v36, %v1351_v8 }
 0x1b6   : > { %v4201_v58 = vpop.eup %4200 }
 0x1b7   : > { %3519 = vst [vmem:[#allocation5 + $0x10] sm:$0xff] %v3283_v57   ;;  %v3278_v47 = vpack.c.bf16 %v4201_v58, %v4197_v51  ;;  %v1397_v44 = vmul.f32 %v3802_v7, %v1381_v40  ;;  %v1379_v62 = vsub.f32 1.0, %v4201_v58 }
 0x1b9   : > { %3518 = vst [vmem:[#allocation5 + $0x30] sm:$0xff] %v3278_v47   ;;  %v3323_v2 = vpack.c.bf16 %v1397_v44, %v1396_v59  ;;  %v1395_v4 = vmul.f32 %v1379_v62, %v1354_v63 }
 0x1bb   : > { %3526 = vst [vmem:[#allocation6 + $0x28] sm:$0xff] %v3323_v2   ;;  %v3318_v50 = vpack.c.bf16 %v1395_v4, %v1394_v11 }
 0x1bd   : > { %3525 = vst [vmem:[#allocation6 + $0x38] sm:$0xff] %v3318_v50  }
 0x1be PF: > { %p3015_p4 = scmp.le.s32.totalorder %s4620_s21, 0 }
 0x1c0   : > { %1481 = sbr.rel (%p3015_p4) target bundleno = 783 (0x30f), region = 60 }
 0x1c5   : > { %v4202_v5 = vld [vmem:[%s4838_s11 + $0x78] sm:$0xff]   ;;  %v4204_v45 = vld [vmem:[%s4838_s11 + $0x70] sm:$0xff]   ;;  %v4206_v13 = vld [vmem:[%s4838_s11 + $0x68] sm:$0xff]   ;;  %v1515_v38 = vlaneseq }
 0x1c6   : > { %v4203_v9 = vld [vmem:[%s4838_s11 + $0x38] sm:$0xff]   ;;  %3803 = vmatprep.subr.bf16.mxu0 %v4202_v5  ;;  %v4205_v10 = vld [vmem:[%s4838_s11 + $0x30] sm:$0xff]   ;;  %v4207_v56 = vld [vmem:[%s4838_s11 + $0x28] sm:$0xff]  }
 0x1c7   : > { %3835 = vmatprep.subr.bf16.mxu1 %v4203_v9  ;;  %3804 = vmatpush3.bf16.msra.mxu0 %v4202_v5  ;;  %v4208_v48 = vld [vmem:[%s4838_s11 + $0x60] sm:$0xff]   ;;  %v4210_v12 = vld [vmem:[%s4838_s11 + $0x58] sm:$0xff]   ;;  %v4212_v17 = vld [vmem:[%s4838_s11 + $0x50] sm:$0xff]   ;;  %v5069_v25 = vshrl.u32 %v1515_v38, 7 }
 0x1c8   : > { %3836 = vmatpush3.bf16.msra.mxu1 %v4203_v9  ;;  %3805 = vmatprep.subr.bf16.mxu0 %v4204_v45  ;;  %v4209_v16 = vld [vmem:[%s4838_s11 + $0x20] sm:$0xff]   ;;  %v4211_v14 = vld [vmem:[%s4838_s11 + $0x18] sm:$0xff]   ;;  %v4213_v19 = vld [vmem:[%s4838_s11 + $0x10] sm:$0xff]  }
 0x1c9   : > { %3837 = vmatprep.subr.bf16.mxu1 %v4205_v10  ;;  %v5016_v18 = vld [vmem:[#allocation2] sm:$0xff]   ;;  %v4214_v20 = vld [vmem:[%s4838_s11 + $0x48] sm:$0xff]   ;;  %v4220_v60 = vld [vmem:[%s4838_s11 + $0xb8] sm:$0xff]   ;;  %v1517_v39 = vsub.s32 0, %v5069_v25 }
 0x1ca   : > { %3819 = vmatprep.mubr.bf16.mxu0 %v5016_v18  ;;  %v4215_v43 = vld [vmem:[%s4838_s11 + $0x8] sm:$0xff]   ;;  %3851 = vmatprep.mubr.bf16.mxu1 %v5016_v18  ;;  %v4216_v21 = vld [vmem:[%s4838_s11 + $0x40] sm:$0xff]   ;;  %v5028_v23 = vld [vmem:[#allocation2 + $0x10] sm:$0xff]  }
 0x1cb   : > { %3806 = vmatpush3.bf16.msra.mxu0 %v4204_v45  ;;  %v4217_v22 = vld [vmem:[%s4838_s11] sm:$0xff]   ;;  %v5025_v61 = vld [vmem:[#allocation2 + $0x8] sm:$0xff]   ;;  %v4221_v24 = vld [vmem:[%s4838_s11 + $0xb0] sm:$0xff]   ;;  %v5075_v15 = vrot.slane %v4849_v0, %v1517_v39 }
 0x1cc   : > { %3838 = vmatpush3.bf16.msra.mxu1 %v4205_v10  ;;  %3807 = vmatprep.subr.bf16.mxu0 %v4206_v13  ;;  %v5033_v27 = vld [vmem:[#allocation2 + $0x18] sm:$0xff]   ;;  %v4224_v29 = vld [vmem:[%s4838_s11 + $0xa8] sm:$0xff]   ;;  %v5038_v30 = vld [vmem:[#allocation2 + $0x20] sm:$0xff]  }
 0x1cd   : > { %3839 = vmatprep.subr.bf16.mxu1 %v4207_v56  ;;  %v4225_v31 = vld [vmem:[%s4838_s11 + $0xa0] sm:$0xff]   ;;  %v5043_v6 = vld [vmem:[#allocation2 + $0x28] sm:$0xff]   ;;  %v4228_v28 = vld [vmem:[%s4838_s11 + $0x98] sm:$0xff]  }
 0x1ce   : > { %v5048_v32 = vld [vmem:[#allocation2 + $0x30] sm:$0xff]   ;;  %v5053_v49 = vld [vmem:[#allocation2 + $0x38] sm:$0xff]   ;;  %v4232_v35 = vld [vmem:[%s4838_s11 + $0x88] sm:$0xff]  }
 0x1cf   : > { %3808 = vmatpush3.bf16.msra.mxu0 %v4206_v13  ;;  %v4229_v33 = vld [vmem:[%s4838_s11 + $0x90] sm:$0xff]   ;;  %v4233_v52 = vld [vmem:[%s4838_s11 + $0x80] sm:$0xff]  }
 0x1d0   : > { %3840 = vmatpush3.bf16.msra.mxu1 %v4207_v56  ;;  %3809 = vmatprep.subr.bf16.mxu0 %v4208_v48 }
 0x1d1   : > { %3841 = vmatprep.subr.bf16.mxu1 %v4209_v16 }
 0x1d3   : > { %3810 = vmatpush3.bf16.msra.mxu0 %v4208_v48 }
 0x1d4   : > { %3842 = vmatpush3.bf16.msra.mxu1 %v4209_v16  ;;  %3811 = vmatprep.subr.bf16.mxu0 %v4210_v12 }
 0x1d5   : > { %3843 = vmatprep.subr.bf16.mxu1 %v4211_v14 }
 0x1d7   : > { %3812 = vmatpush3.bf16.msra.mxu0 %v4210_v12 }
 0x1d8   : > { %3844 = vmatpush3.bf16.msra.mxu1 %v4211_v14  ;;  %3813 = vmatprep.subr.bf16.mxu0 %v4212_v17 }
 0x1d9   : > { %3845 = vmatprep.subr.bf16.mxu1 %v4213_v19 }
 0x1db   : > { %3814 = vmatpush3.bf16.msra.mxu0 %v4212_v17 }
 0x1dc   : > { %3846 = vmatpush3.bf16.msra.mxu1 %v4213_v19  ;;  %3815 = vmatprep.subr.bf16.mxu0 %v4214_v20 }
 0x1dd   : > { %3847 = vmatprep.subr.bf16.mxu1 %v4215_v43 }
 0x1df   : > { %3816 = vmatpush3.bf16.msra.mxu0 %v4214_v20 }
 0x1e0   : > { %3848 = vmatpush3.bf16.msra.mxu1 %v4215_v43  ;;  %3817 = vmatprep.subr.bf16.mxu0 %v4216_v21 }
 0x1e1   : > { %3849 = vmatprep.subr.bf16.mxu1 %v4217_v22 }
 0x1e3   : > { %3818 = vmatpush3.bf16.msra.mxu0 %v4216_v21 }
 0x1e4   : > { %3850 = vmatpush3.bf16.msra.mxu1 %v4217_v22  ;;  %3867 = vmatprep.subr.bf16.mxu0 %v4220_v60 }
 0x1e5   : > { %3899 = vmatprep.subr.bf16.mxu1 %v4220_v60 }
 0x1e6   : > { %3820 = vmatmul.mubr.bf16.vlgmr.msra.gmra.mxu0 %v5025_v61 }
 0x1e7   : > { %3852 = vmatmul.mubr.bf16.vlgmr.msra.gmra.mxu1 %v5025_v61  ;;  %3868 = vmatpush3.bf16.msra.mxu0 %v4220_v60 }
 0x1e8   : > { %3907 = vmatpush3.bf16.msra.mxu1 %v4220_v60  ;;  %3869 = vmatprep.subr.bf16.mxu0 %v4221_v24 }
 0x1e9   : > { %3900 = vmatprep.subr.bf16.mxu1 %v4221_v24  ;;  %3823 = vmatprep.mubr.bf16.mxu0 %v5028_v23 }
 0x1ea   : > { %3855 = vmatprep.mubr.bf16.mxu1 %v5028_v23 }
 0x1eb   : > { %3870 = vmatpush3.bf16.msra.mxu0 %v4221_v24 }
 0x1ec   : > { %3908 = vmatpush3.bf16.msra.mxu1 %v4221_v24  ;;  %3871 = vmatprep.subr.bf16.mxu0 %v4224_v29 }
 0x1ed   : > { %3901 = vmatprep.subr.bf16.mxu1 %v4224_v29 }
 0x1ee   : > { %3824 = vmatmul.mubr.bf16.gmra.mxu0 %v5033_v27 }
 0x1ef   : > { %3856 = vmatmul.mubr.bf16.gmra.mxu1 %v5033_v27  ;;  %3872 = vmatpush3.bf16.msra.mxu0 %v4224_v29 }
 0x1f0   : > { %3909 = vmatpush3.bf16.msra.mxu1 %v4224_v29  ;;  %3873 = vmatprep.subr.bf16.mxu0 %v4225_v31 }
 0x1f1   : > { %3902 = vmatprep.subr.bf16.mxu1 %v4225_v31  ;;  %3827 = vmatprep.mubr.bf16.mxu0 %v5038_v30 }
 0x1f2   : > { %3859 = vmatprep.mubr.bf16.mxu1 %v5038_v30 }
 0x1f3   : > { %3874 = vmatpush3.bf16.msra.mxu0 %v4225_v31 }
 0x1f4   : > { %3910 = vmatpush3.bf16.msra.mxu1 %v4225_v31  ;;  %3875 = vmatprep.subr.bf16.mxu0 %v4228_v28 }
 0x1f5   : > { %3903 = vmatprep.subr.bf16.mxu1 %v4228_v28 }
 0x1f6   : > { %3828 = vmatmul.mubr.bf16.gmra.mxu0 %v5043_v6 }
 0x1f7   : > { %3860 = vmatmul.mubr.bf16.gmra.mxu1 %v5043_v6  ;;  %3876 = vmatpush3.bf16.msra.mxu0 %v4228_v28 }
 0x1f8   : > { %3911 = vmatpush3.bf16.msra.mxu1 %v4228_v28  ;;  %3877 = vmatprep.subr.bf16.mxu0 %v4229_v33 }
 0x1f9   : > { %3904 = vmatprep.subr.bf16.mxu1 %v4229_v33  ;;  %3831 = vmatprep.mubr.bf16.mxu0 %v5048_v32 }
 0x1fa   : > { %3863 = vmatprep.mubr.bf16.mxu1 %v5048_v32 }
 0x1fb   : > { %3878 = vmatpush3.bf16.msra.mxu0 %v4229_v33 }
 0x1fc   : > { %3912 = vmatpush3.bf16.msra.mxu1 %v4229_v33  ;;  %3879 = vmatprep.subr.bf16.mxu0 %v4232_v35 }
 0x1fd   : > { %3905 = vmatprep.subr.bf16.mxu1 %v4232_v35 }
 0x1fe   : > { %3832 = vmatmul.mubr.bf16.gmra.mxu0 %v5053_v49 }
 0x1ff   : > { %3864 = vmatmul.mubr.bf16.gmra.mxu1 %v5053_v49  ;;  %3880 = vmatpush3.bf16.msra.mxu0 %v4232_v35 }
 0x200   : > { %3913 = vmatpush3.bf16.msra.mxu1 %v4232_v35  ;;  %3881 = vmatprep.subr.bf16.mxu0 %v4233_v52 }
 0x201   : > { %3906 = vmatprep.subr.bf16.mxu1 %v4233_v52  ;;  %3883 = vmatprep.mubr.bf16.mxu0 %v5016_v18 }
 0x202   : > { %3891 = vmatprep.mubr.bf16.mxu1 %v5038_v30 }
 0x203   : > { %3882 = vmatpush3.bf16.msra.mxu0 %v4233_v52 }
 0x204   : > { %3914 = vmatpush3.bf16.msra.mxu1 %v4233_v52 }
 0x206   : > { %3884 = vmatmul.mubr.bf16.vlgmr.msra.gmra.mxu0 %v5025_v61 }
 0x207   : > { %3892 = vmatmul.mubr.bf16.vlgmr.msra.gmra.mxu1 %v5043_v6  ;;  %3887 = vmatprep.mubr.bf16.mxu0 %v5028_v23 }
 0x208   : > { %3895 = vmatprep.mubr.bf16.mxu1 %v5048_v32 }
 0x20e   : > { %3888 = vmatmul.mubr.bf16.gmra.mxu0 %v5033_v27 }
 0x20f   : > { %3896 = vmatmul.mubr.bf16.gmra.mxu1 %v5053_v49 }
 0x2a6   : > { %v3821_v34 = vpop.f32.mrf.mxu0 }
 0x2a7   : > { %v1658_v41 = vadd.f32 %v3821_v34, %v5075_v15  ;;  %v5078_v3 = vpop.f32.mrf.mxu1 }
 0x2a8   : > { %v1649_v42 = vpop.f32.mrf.mxu0 }
 0x2a9   : > { %v3050_v8 = vmul.f32 -1.442695, %v1658_v41  ;;  %v1650_v37 = vadd.f32 %v1649_v42, %v5075_v15  ;;  %v5081_v46 = vpop.f32.mrf.mxu1 }
 0x2aa   : > { %v3822_v26 = vpop.f32.mrf.mxu0 }
 0x2ab   : > { %4242 = vpow2.f32 %v3050_v8  ;;  %v3048_v51 = vmul.f32 -1.442695, %v1650_v37  ;;  %v1661_v53 = vadd.f32 %v3822_v26, %v5075_v15  ;;  %v5084_v54 = vpop.f32.mrf.mxu1 }
 0x2ac   : > { %v1652_v0 = vpop.f32.mrf.mxu0 }
 0x2ad   : > { %4244 = vpow2.f32 %v3048_v51  ;;  %v3051_v55 = vmul.f32 -1.442695, %v1661_v53  ;;  %v1653_v7 = vadd.f32 %v1652_v0, %v5075_v15  ;;  %v5087_v57 = vpop.f32.mrf.mxu1 }
 0x2ae   : > { %v3825_v36 = vpop.f32.mrf.mxu0 }
 0x2af   : > { %4246 = vpow2.f32 %v3051_v55  ;;  %v3049_v40 = vmul.f32 -1.442695, %v1653_v7  ;;  %v1674_v58 = vadd.f32 %v3825_v36, %v5075_v15  ;;  %v5090_v47 = vpop.f32.mrf.mxu1 }
 0x2b0   : > { %v1665_v59 = vpop.f32.mrf.mxu0 }
 0x2b1   : > { %4248 = vpow2.f32 %v3049_v40  ;;  %v3054_v44 = vmul.f32 -1.442695, %v1674_v58  ;;  %v1666_v62 = vadd.f32 %v1665_v59, %v5075_v15  ;;  %v5093_v63 = vpop.f32.mrf.mxu1 }
 0x2b2   : > { %v3826_v11 = vpop.f32.mrf.mxu0 }
 0x2b3   : > { %4250 = vpow2.f32 %v3054_v44  ;;  %v3052_v2 = vmul.f32 -1.442695, %v1666_v62  ;;  %v1677_v4 = vadd.f32 %v3826_v11, %v5075_v15  ;;  %v5096_v50 = vpop.f32.mrf.mxu1  ;;  %v5122_v44 = vrot.slane %v4851_v1, %v1517_v39 }
 0x2b4   : > { %v1668_v5 = vpop.f32.mrf.mxu0 }
 0x2b5   : > { %4252 = vpow2.f32 %v3052_v2  ;;  %v3055_v9 = vmul.f32 -1.442695, %v1677_v4  ;;  %v1669_v45 = vadd.f32 %v1668_v5, %v5075_v15  ;;  %v5099_v10 = vpop.f32.mrf.mxu1 }
 0x2b6   : > { %v3829_v13 = vpop.f32.mrf.mxu0 }
 0x2b7   : > { %4254 = vpow2.f32 %v3055_v9  ;;  %v3053_v56 = vmul.f32 -1.442695, %v1669_v45  ;;  %v1690_v48 = vadd.f32 %v3829_v13, %v5075_v15  ;;  %v5102_v16 = vpop.f32.mrf.mxu1 }
 0x2b8   : > { %v4243_v12 = vpop.eup %4242  ;;  %v1681_v14 = vpop.f32.mrf.mxu0 }
 0x2b9   : > { %v1762_v17 = vadd.f32 1.0, %v4243_v12  ;;  %4256 = vpow2.f32 %v3053_v56  ;;  %v3058_v19 = vmul.f32 -1.442695, %v1690_v48  ;;  %v1682_v20 = vadd.f32 %v1681_v14, %v5075_v15  ;;  %v5105_v43 = vpop.f32.mrf.mxu1 }
 0x2ba   : > { %v4245_v21 = vpop.eup %4244  ;;  %v3830_v22 = vpop.f32.mrf.mxu0 }
 0x2bb   : > { %4258 = vrcp.f32 %v1762_v17  ;;  %v1760_v60 = vadd.f32 1.0, %v4245_v21  ;;  %v3056_v24 = vmul.f32 -1.442695, %v1682_v20  ;;  %v1693_v29 = vadd.f32 %v3830_v22, %v5075_v15  ;;  %v5108_v31 = vpop.f32.mrf.mxu1 }
 0x2bc   : > { %v4247_v28 = vpop.eup %4246  ;;  %4260 = vpow2.f32 %v3058_v19  ;;  %v1684_v33 = vpop.f32.mrf.mxu0 }
 0x2bd   : > { %4262 = vrcp.f32 %v1760_v60  ;;  %v1763_v35 = vadd.f32 1.0, %v4247_v28  ;;  %v3059_v52 = vmul.f32 -1.442695, %v1693_v29  ;;  %v1685_v38 = vadd.f32 %v1684_v33, %v5075_v15  ;;  %v5111_v34 = vpop.f32.mrf.mxu1 }
 0x2be   : > { %v4249_v41 = vpop.eup %4248  ;;  %4264 = vpow2.f32 %v3056_v24  ;;  %v3833_v42 = vpop.f32.mrf.mxu0 }
 0x2bf   : > { %4266 = vrcp.f32 %v1763_v35  ;;  %v1761_v8 = vadd.f32 1.0, %v4249_v41  ;;  %v3057_v37 = vmul.f32 -1.442695, %v1685_v38  ;;  %v1706_v26 = vadd.f32 %v3833_v42, %v5075_v15  ;;  %v5114_v51 = vpop.f32.mrf.mxu1 }
 0x2c0   : > { %v4251_v53 = vpop.eup %4250  ;;  %4268 = vpow2.f32 %v3059_v52  ;;  %v1697_v0 = vpop.f32.mrf.mxu0 }
 0x2c1   : > { %4270 = vrcp.f32 %v1761_v8  ;;  %v1766_v55 = vadd.f32 1.0, %v4251_v53  ;;  %v3062_v7 = vmul.f32 -1.442695, %v1706_v26  ;;  %v1698_v36 = vadd.f32 %v1697_v0, %v5075_v15  ;;  %v5117_v40 = vpop.f32.mrf.mxu1 }
 0x2c2   : > { %v4253_v58 = vpop.eup %4252  ;;  %4272 = vpow2.f32 %v3057_v37  ;;  %v3834_v59 = vpop.f32.mrf.mxu0 }
 0x2c3   : > { %4274 = vrcp.f32 %v1766_v55  ;;  %v1764_v62 = vadd.f32 1.0, %v4253_v58  ;;  %v3060_v11 = vmul.f32 -1.442695, %v1698_v36  ;;  %v1709_v2 = vadd.f32 %v3834_v59, %v5075_v15  ;;  %v5125_v4 = vpop.f32.mrf.mxu1 }
 0x2c4   : > { %v4255_v5 = vpop.eup %4254  ;;  %4276 = vpow2.f32 %v3062_v7  ;;  %v1700_v9 = vpop.f32.mrf.mxu0 }
 0x2c5   : > { %4278 = vrcp.f32 %v1764_v62  ;;  %v1767_v45 = vadd.f32 1.0, %v4255_v5  ;;  %v3063_v13 = vmul.f32 -1.442695, %v1709_v2  ;;  %v1701_v56 = vadd.f32 %v1700_v9, %v5075_v15  ;;  %v5128_v48 = vpop.f32.mrf.mxu1 }
 0x2c6   : > { %v4257_v25 = vpop.eup %4256  ;;  %4280 = vpow2.f32 %v3060_v11  ;;  %v3885_v1 = vpop.f32.mrf.mxu0 }
 0x2c7   : > { %4282 = vrcp.f32 %v1767_v45  ;;  %v1765_v39 = vadd.f32 1.0, %v4257_v25  ;;  %v3061_v12 = vmul.f32 -1.442695, %v1701_v56  ;;  %v2145_v14 = vadd.f32 %v3885_v1, %v5122_v44  ;;  %v3893_v17 = vpop.f32.mrf.mxu1 }
 0x2c8   : > { %v4259_v19 = vpop.eup %4258  ;;  %4284 = vpow2.f32 %v3063_v13  ;;  %v2177_v20 = vadd.f32 %v3893_v17, %v5122_v44  ;;  %v2136_v21 = vpop.f32.mrf.mxu0 }
 0x2c9   : > { %v4261_v22 = vpop.eup %4260  ;;  %1810 = vst [vmem:[#allocation3 + $0x58] sm:$0xff] %v4259_v19  ;;  %v1826_v60 = vsub.f32 1.0, %v4259_v19  ;;  %4286 = vrcp.f32 %v1765_v39  ;;  %v3098_v15 = vmul.f32 -1.442695, %v2145_v14  ;;  %v2137_v24 = vadd.f32 %v2136_v21, %v5122_v44  ;;  %v2168_v29 = vpop.f32.mrf.mxu1 }
 0x2ca   : > { %v4263_v28 = vpop.eup %4262  ;;  %v1770_v33 = vadd.f32 1.0, %v4261_v22  ;;  %4288 = vpow2.f32 %v3061_v12  ;;  %v3106_v35 = vmul.f32 -1.442695, %v2177_v20  ;;  %v2169_v52 = vadd.f32 %v2168_v29, %v5122_v44  ;;  %v3886_v38 = vpop.f32.mrf.mxu0 }
 0x2cb   : > { %v4265_v41 = vpop.eup %4264  ;;  %v2003_v42 = vmul.f32 %v5078_v3, %v1826_v60  ;;  %1808 = vst [vmem:[#allocation3 + $0x30] sm:$0xff] %v4263_v28  ;;  %v1824_v8 = vsub.f32 1.0, %v4263_v28  ;;  %4290 = vpow2.f32 %v3098_v15  ;;  %v3096_v37 = vmul.f32 -1.442695, %v2137_v24  ;;  %v3894_v26 = vpop.f32.mrf.mxu1 }
 0x2cc   : > { %v4267_v53 = vpop.eup %4266  ;;  %4292 = vrcp.f32 %v1770_v33  ;;  %v1768_v0 = vadd.f32 1.0, %v4265_v41  ;;  %v3104_v55 = vmul.f32 -1.442695, %v2169_v52  ;;  %v2148_v7 = vadd.f32 %v3886_v38, %v5122_v44  ;;  %v2139_v36 = vpop.f32.mrf.mxu0 }
 0x2cd   : > { %v4269_v58 = vpop.eup %4268  ;;  %2019 = vst [vmem:[#allocation4 + $0x10] sm:$0xff] %v2003_v42  ;;  %v2001_v59 = vmul.f32 %v5081_v46, %v1824_v8  ;;  %1811 = vst [vmem:[#allocation3 + $0x18] sm:$0xff] %v4267_v53  ;;  %v1827_v62 = vsub.f32 1.0, %v4267_v53  ;;  %4294 = vpow2.f32 %v3106_v35  ;;  %v2180_v3 = vadd.f32 %v3894_v26, %v5122_v44  ;;  %v2171_v9 = vpop.f32.mrf.mxu1 }
 0x2ce   : > { %v4271_v11 = vpop.eup %4270  ;;  %4296 = vrcp.f32 %v1768_v0  ;;  %v1771_v2 = vadd.f32 1.0, %v4269_v58  ;;  %v3099_v5 = vmul.f32 -1.442695, %v2148_v7  ;;  %v2140_v25 = vadd.f32 %v2139_v36, %v5122_v44  ;;  %v3889_v12 = vpop.f32.mrf.mxu0 }
 0x2cf   : > { %v4273_v45 = vpop.eup %4272  ;;  %2017 = vst [vmem:[#allocation4 + $0x28] sm:$0xff] %v2001_v59  ;;  %v2004_v13 = vmul.f32 %v5084_v54, %v1827_v62  ;;  %1809 = vst [vmem:[#allocation3] sm:$0xff] %v4271_v11  ;;  %v1825_v56 = vsub.f32 1.0, %v4271_v11  ;;  %4298 = vpow2.f32 %v3096_v37  ;;  %v3107_v39 = vmul.f32 -1.442695, %v2180_v3  ;;  %v3897_v22 = vpop.f32.mrf.mxu1 }
 0x2d0   : > { %v4275_v46 = vpop.eup %4274  ;;  %4300 = vrcp.f32 %v1771_v2  ;;  %v1769_v1 = vadd.f32 1.0, %v4273_v45  ;;  %v2172_v20 = vadd.f32 %v2171_v9, %v5122_v44  ;;  %v3097_v29 = vmul.f32 -1.442695, %v2140_v25  ;;  %v2152_v35 = vpop.f32.mrf.mxu0 }
 0x2d1   : > { %v4277_v14 = vpop.eup %4276  ;;  %2020 = vst [vmem:[#allocation4 + $0x40] sm:$0xff] %v2004_v13  ;;  %v2002_v17 = vmul.f32 %v5087_v57, %v1825_v56  ;;  %1814 = vst [vmem:[#allocation3 + $0x8] sm:$0xff] %v4275_v46  ;;  %v1830_v19 = vsub.f32 1.0, %v4275_v46  ;;  %4302 = vpow2.f32 %v3104_v55  ;;  %v2161_v33 = vadd.f32 %v3889_v12, %v5122_v44  ;;  %v2184_v26 = vpop.f32.mrf.mxu1 }
 0x2d2   : > { %v4279_v54 = vpop.eup %4278  ;;  %4304 = vrcp.f32 %v1769_v1  ;;  %v1774_v21 = vadd.f32 1.0, %v4277_v14  ;;  %v3105_v42 = vmul.f32 -1.442695, %v2172_v20  ;;  %v2193_v37 = vadd.f32 %v3897_v22, %v5122_v44  ;;  %v3890_v59 = vpop.f32.mrf.mxu0 }
 0x2d3   : > { %v4281_v60 = vpop.eup %4280  ;;  %2018 = vst [vmem:[#allocation4 + $0x68] sm:$0xff] %v2002_v17  ;;  %v2007_v15 = vmul.f32 %v5090_v47, %v1830_v19  ;;  %1812 = vst [vmem:[#allocation3 + $0x50] sm:$0xff] %v4279_v54  ;;  %v1828_v24 = vsub.f32 1.0, %v4279_v54  ;;  %4306 = vpow2.f32 %v3099_v5  ;;  %v3102_v36 = vmul.f32 -1.442695, %v2161_v33  ;;  %v3898_v45 = vpop.f32.mrf.mxu1 }
 0x2d4   : > { %v4283_v28 = vpop.eup %4282  ;;  %4308 = vrcp.f32 %v1774_v21  ;;  %v1772_v57 = vadd.f32 1.0, %v4281_v60  ;;  %v2153_v58 = vadd.f32 %v2152_v35, %v5122_v44  ;;  %v2185_v9 = vadd.f32 %v2184_v26, %v5122_v44  ;;  %v2155_v19 = vpop.f32.mrf.mxu0 }
 0x2d5   : > { %v4285_v52 = vpop.eup %4284  ;;  %2023 = vst [vmem:[#allocation4 + $0x70] sm:$0xff] %v2007_v15  ;;  %v2005_v38 = vmul.f32 %v5093_v63, %v1828_v24  ;;  %1815 = vst [vmem:[#allocation3 + $0x48] sm:$0xff] %v4283_v28  ;;  %v1831_v41 = vsub.f32 1.0, %v4283_v28  ;;  %4310 = vpow2.f32 %v3107_v39  ;;  %v2164_v25 = vadd.f32 %v3890_v59, %v5122_v44  ;;  %v2187_v24 = vpop.f32.mrf.mxu1 }
 0x2d6   : > { %v4287_v8 = vpop.eup %4286  ;;  %4312 = vrcp.f32 %v1772_v57  ;;  %v1775_v47 = vadd.f32 1.0, %v4285_v52  ;;  %v3100_v39 = vmul.f32 -1.442695, %v2153_v58  ;;  %v2196_v17 = vadd.f32 %v3898_v45, %v5122_v44 }
 0x2d7   : > { %v4289_v53 = vpop.eup %4288  ;;  %2021 = vst [vmem:[#allocation4 + $0x48] sm:$0xff] %v2005_v38  ;;  %v2008_v0 = vmul.f32 %v5096_v50, %v1831_v41  ;;  %1813 = vst [vmem:[#allocation3 + $0x68] sm:$0xff] %v4287_v8  ;;  %v1829_v55 = vsub.f32 1.0, %v4287_v8  ;;  %4314 = vpow2.f32 %v3097_v29  ;;  %v3110_v50 = vmul.f32 -1.442695, %v2193_v37 }
 0x2d8   : > { %v4291_v7 = vpop.eup %4290  ;;  %4316 = vrcp.f32 %v1775_v47  ;;  %v1773_v63 = vadd.f32 1.0, %v4289_v53  ;;  %v3108_v22 = vmul.f32 -1.442695, %v2185_v9  ;;  %v3103_v15 = vmul.f32 -1.442695, %v2164_v25 }
 0x2d9   : > { %v4293_v62 = vpop.eup %4292  ;;  %2024 = vst [vmem:[#allocation4 + $0x38] sm:$0xff] %v2008_v0  ;;  %v2006_v3 = vmul.f32 %v5099_v10, %v1829_v55  ;;  %v2249_v11 = vadd.f32 1.0, %v4291_v7  ;;  %4318 = vpow2.f32 %v3105_v42  ;;  %v2156_v33 = vadd.f32 %v2155_v19, %v5122_v44 }
 0x2da   : > { %v4295_v2 = vpop.eup %4294  ;;  %1818 = vst [vmem:[#allocation3 + $0x10] sm:$0xff] %v4293_v62  ;;  %v1834_v5 = vsub.f32 1.0, %v4293_v62  ;;  %4320 = vrcp.f32 %v1773_v63  ;;  %v3111_v52 = vmul.f32 -1.442695, %v2196_v17  ;;  %v2188_v8 = vadd.f32 %v2187_v24, %v5122_v44 }
 0x2db   : > { %v4297_v13 = vpop.eup %4296  ;;  %2022 = vst [vmem:[#allocation4 + $0x30] sm:$0xff] %v2006_v3  ;;  %4322 = vrcp.f32 %v2249_v11  ;;  %v2257_v56 = vadd.f32 1.0, %v4295_v2  ;;  %v3101_v0 = vmul.f32 -1.442695, %v2156_v33  ;;  %v2391_v25 = vunpack.c.l.bf16 %v5016_v18 }
 0x2dc   : > { %v4299_v46 = vpop.eup %4298  ;;  %v2011_v1 = vmul.f32 %v5102_v16, %v1834_v5  ;;  %1816 = vst [vmem:[#allocation3 + $0x40] sm:$0xff] %v4297_v13  ;;  %v1832_v10 = vsub.f32 1.0, %v4297_v13  ;;  %4324 = vpow2.f32 %v3102_v36  ;;  %v3109_v36 = vmul.f32 -1.442695, %v2188_v8 }
 0x2dd   : > { %v4301_v12 = vpop.eup %4300  ;;  %4326 = vrcp.f32 %v2257_v56  ;;  %v2247_v14 = vadd.f32 1.0, %v4299_v46  ;;  %v2401_v19 = vunpack.c.l.bf16 %v5043_v6 }
 0x2de   : > { %v4303_v20 = vpop.eup %4302  ;;  %2027 = vst [vmem:[#allocation4 + $0x18] sm:$0xff] %v2011_v1  ;;  %v2009_v54 = vmul.f32 %v5105_v43, %v1832_v10  ;;  %1819 = vst [vmem:[#allocation3 + $0x38] sm:$0xff] %v4301_v12  ;;  %v1835_v21 = vsub.f32 1.0, %v4301_v12  ;;  %4328 = vpow2.f32 %v3110_v50  ;;  %v2394_v12 = vunpack.c.h.bf16 %v5025_v61 }
 0x2df   : > { %v4305_v60 = vpop.eup %4304  ;;  %4330 = vrcp.f32 %v2247_v14  ;;  %v2255_v16 = vadd.f32 1.0, %v4303_v20  ;;  %v2400_v14 = vunpack.c.h.bf16 %v5038_v30 }
 0x2e0   : > { %v4307_v29 = vpop.eup %4306  ;;  %2025 = vst [vmem:[#allocation4 + $0x20] sm:$0xff] %v2009_v54  ;;  %v2012_v28 = vmul.f32 %v5108_v31, %v1835_v21  ;;  %1817 = vst [vmem:[#allocation3 + $0x20] sm:$0xff] %v4305_v60  ;;  %v1833_v57 = vsub.f32 1.0, %v4305_v60  ;;  %4332 = vpow2.f32 %v3100_v39  ;;  %v2392_v39 = vunpack.c.h.bf16 %v5016_v18 }
 0x2e1   : > { %v4309_v35 = vpop.eup %4308  ;;  %4334 = vrcp.f32 %v2255_v16  ;;  %v2250_v43 = vadd.f32 1.0, %v4307_v29 }
 0x2e2   : > { %v4311_v38 = vpop.eup %4310  ;;  %2028 = vst [vmem:[#allocation4 + $0x58] sm:$0xff] %v2012_v28  ;;  %v2010_v41 = vmul.f32 %v5111_v34, %v1833_v57  ;;  %1822 = vst [vmem:[#allocation3 + $0x78] sm:$0xff] %v4309_v35  ;;  %v1838_v42 = vsub.f32 1.0, %v4309_v35  ;;  %4336 = vpow2.f32 %v3108_v22  ;;  %v2402_v22 = vunpack.c.h.bf16 %v5043_v6 }
 0x2e3   : > { %v4313_v47 = vpop.eup %4312  ;;  %4338 = vrcp.f32 %v2250_v43  ;;  %v2258_v31 = vadd.f32 1.0, %v4311_v38 }
 0x2e4   : > { %v4315_v37 = vpop.eup %4314  ;;  %2026 = vst [vmem:[#allocation4 + $0x78] sm:$0xff] %v2010_v41  ;;  %v2015_v26 = vmul.f32 %v5114_v51, %v1838_v42  ;;  %1820 = vst [vmem:[#allocation3 + $0x60] sm:$0xff] %v4313_v47  ;;  %v1836_v53 = vsub.f32 1.0, %v4313_v47  ;;  %4340 = vpow2.f32 %v3103_v15 }
 0x2e5   : > { %v4317_v55 = vpop.eup %4316  ;;  %4342 = vrcp.f32 %v2258_v31  ;;  %v2248_v7 = vadd.f32 1.0, %v4315_v37 }
 0x2e6   : > { %v4319_v34 = vpop.eup %4318  ;;  %2031 = vst [vmem:[#allocation4 + $0x60] sm:$0xff] %v2015_v26  ;;  %v2013_v63 = vmul.f32 %v5117_v40, %v1836_v53  ;;  %1823 = vst [vmem:[#allocation3 + $0x28] sm:$0xff] %v4317_v55  ;;  %v1839_v44 = vsub.f32 1.0, %v4317_v55  ;;  %4344 = vpow2.f32 %v3111_v52 }
 0x2e7   : > { %v4321_v58 = vpop.eup %4320  ;;  %4346 = vrcp.f32 %v2248_v7  ;;  %v2256_v59 = vadd.f32 1.0, %v4319_v34 }
 0x2e8   : > { %v4323_v62 = vpop.eup %4322  ;;  %2029 = vst [vmem:[#allocation4] sm:$0xff] %v2013_v63  ;;  %v2016_v51 = vmul.f32 %v5125_v4, %v1839_v44  ;;  %1821 = vst [vmem:[#allocation3 + $0x70] sm:$0xff] %v4321_v58  ;;  %v1837_v3 = vsub.f32 1.0, %v4321_v58  ;;  %4348 = vpow2.f32 %v3101_v0  ;;  %v2393_v4 = vunpack.c.l.bf16 %v5025_v61 }
 0x2e9   : > { %v4325_v11 = vpop.eup %4324  ;;  %4350 = vrcp.f32 %v2256_v59  ;;  %v2377_v46 = vsub.f32 1.0, %v4323_v62 }
 0x2ea   : > { %v4327_v2 = vpop.eup %4326  ;;  %2032 = vst [vmem:[#allocation4 + $0x50] sm:$0xff] %v2016_v51  ;;  %v2014_v40 = vmul.f32 %v5128_v48, %v1837_v3  ;;  %4352 = vpow2.f32 %v3109_v36  ;;  %v2253_v9 = vadd.f32 1.0, %v4325_v11  ;;  %v2399_v48 = vunpack.c.l.bf16 %v5038_v30 }
 0x2eb   : > { %v4329_v5 = vpop.eup %4328  ;;  %v2385_v20 = vsub.f32 1.0, %v4327_v2  ;;  %v2409_v18 = vmul.f32 %v2393_v4, %v2377_v46  ;;  %v2397_v11 = vunpack.c.l.bf16 %v5033_v27  ;;  %v2395_v4 = vunpack.c.l.bf16 %v5028_v23 }
 0x2ec   : > { %v4331_v50 = vpop.eup %4330  ;;  %2030 = vst [vmem:[#allocation4 + $0x8] sm:$0xff] %v2014_v40  ;;  %v2261_v13 = vadd.f32 1.0, %v4329_v5  ;;  %4354 = vrcp.f32 %v2253_v9  ;;  %v2396_v46 = vunpack.c.h.bf16 %v5028_v23 }
 0x2ed   : > { %v4333_v45 = vpop.eup %4332  ;;  %v2375_v24 = vsub.f32 1.0, %v4331_v50  ;;  %v2417_v35 = vmul.f32 %v2401_v19, %v2385_v20 }
 0x2ee   : > { %v4335_v56 = vpop.eup %4334  ;;  %v2251_v1 = vadd.f32 1.0, %v4333_v45  ;;  %4356 = vrcp.f32 %v2261_v13  ;;  %v2406_v45 = vunpack.c.h.bf16 %v5053_v49 }
 0x2ef   : > { %v4337_v10 = vpop.eup %4336  ;;  %v2383_v43 = vsub.f32 1.0, %v4335_v56  ;;  %v2407_v31 = vmul.f32 %v2391_v25, %v2375_v24 }
 0x2f0   : > { %v4339_v17 = vpop.eup %4338  ;;  %v2259_v54 = vadd.f32 1.0, %v4337_v10  ;;  %4358 = vrcp.f32 %v2251_v1 }
 0x2f1   : > { %v4341_v21 = vpop.eup %4340  ;;  %v3333_v60 = vpack.c.bf16 %v4339_v17, %v4323_v62  ;;  %v2378_v16 = vsub.f32 1.0, %v4339_v17  ;;  %v2415_v63 = vmul.f32 %v2399_v48, %v2383_v43  ;;  %v2404_v17 = vunpack.c.h.bf16 %v5048_v32 }
 0x2f2   : > { %v4343_v15 = vpop.eup %4342  ;;  %v2254_v61 = vadd.f32 1.0, %v4341_v21  ;;  %4360 = vrcp.f32 %v2259_v54 }
 0x2f3   : > { %v4345_v29 = vpop.eup %4344  ;;  %3527 = vst [vmem:[#allocation5] sm:$0xff] %v3333_v60   ;;  %v2410_v30 = vmul.f32 %v2394_v12, %v2378_v16  ;;  %v3353_v28 = vpack.c.bf16 %v4343_v15, %v4327_v2  ;;  %v2386_v57 = vsub.f32 1.0, %v4343_v15  ;;  %v2398_v2 = vunpack.c.h.bf16 %v5033_v27 }
 0x2f4   : > { %v4347_v33 = vpop.eup %4346  ;;  %4362 = vrcp.f32 %v2254_v61  ;;  %v2262_v52 = vadd.f32 1.0, %v4345_v29 }
 0x2f5   : > { %v4349_v6 = vpop.eup %4348  ;;  %v3373_v38 = vpack.c.bf16 %v2410_v30, %v2409_v18  ;;  %3531 = vst [vmem:[#allocation5 + $0x28] sm:$0xff] %v3353_v28   ;;  %v2418_v41 = vmul.f32 %v2402_v22, %v2386_v57  ;;  %v3328_v42 = vpack.c.bf16 %v4347_v33, %v4331_v50  ;;  %v2376_v8 = vsub.f32 1.0, %v4347_v33 }
 0x2f6   : > { %v4351_v47 = vpop.eup %4350  ;;  %4364 = vrcp.f32 %v2262_v52  ;;  %v2252_v37 = vadd.f32 1.0, %v4349_v6  ;;  %v2405_v50 = vunpack.c.l.bf16 %v5053_v49 }
 0x2f7   : > { %v4353_v26 = vpop.eup %4352  ;;  %3534 = vst [vmem:[#allocation6 + $0x8] sm:$0xff] %v3373_v38   ;;  %v3393_v53 = vpack.c.bf16 %v2418_v41, %v2417_v35  ;;  %3329 = vst [vmem:[#allocation5 + $0x8] sm:$0xff] %v3328_v42   ;;  %v2408_v0 = vmul.f32 %v2392_v39, %v2376_v8  ;;  %v3348_v55 = vpack.c.bf16 %v4351_v47, %v4335_v56  ;;  %v2384_v7 = vsub.f32 1.0, %v4351_v47 }
 0x2f8   : > { %4366 = vrcp.f32 %v2252_v37  ;;  %v2260_v34 = vadd.f32 1.0, %v4353_v26 }
 0x2f9   : > { %3538 = vst [vmem:[#allocation6] sm:$0xff] %v3393_v53   ;;  %v3368_v44 = vpack.c.bf16 %v2408_v0, %v2407_v31  ;;  %3530 = vst [vmem:[#allocation5 + $0x38] sm:$0xff] %v3348_v55   ;;  %v2416_v36 = vmul.f32 %v2400_v14, %v2384_v7  ;;  %v4355_v59 = vpop.eup %4354  ;;  %v2403_v14 = vunpack.c.l.bf16 %v5048_v32 }
 0x2fa   : > { %4368 = vrcp.f32 %v2260_v34  ;;  %v2381_v40 = vsub.f32 1.0, %v4355_v59 }
 0x2fb   : > { %3369 = vst [vmem:[#allocation6 + $0x18] sm:$0xff] %v3368_v44   ;;  %v3388_v58 = vpack.c.bf16 %v2416_v36, %v2415_v63  ;;  %v4357_v62 = vpop.eup %4356 }
 0x2fc   : > { %v2389_v9 = vsub.f32 1.0, %v4357_v62  ;;  %v2413_v10 = vmul.f32 %v2397_v11, %v2381_v40 }
 0x2fd   : > { %3537 = vst [vmem:[#allocation6 + $0x20] sm:$0xff] %v3388_v58   ;;  %v4359_v51 = vpop.eup %4358 }
 0x2fe   : > { %v2379_v1 = vsub.f32 1.0, %v4359_v51  ;;  %v2421_v19 = vmul.f32 %v2405_v50, %v2389_v9 }
 0x2ff   : > { %v4361_v3 = vpop.eup %4360 }
 0x300   : > { %v2387_v49 = vsub.f32 1.0, %v4361_v3  ;;  %v2411_v23 = vmul.f32 %v2395_v4, %v2379_v1 }
 0x301   : > { %v4363_v5 = vpop.eup %4362 }
 0x302   : > { %v3343_v13 = vpack.c.bf16 %v4363_v5, %v4355_v59  ;;  %v2382_v56 = vsub.f32 1.0, %v4363_v5  ;;  %v2419_v61 = vmul.f32 %v2403_v14, %v2387_v49 }
 0x303   : > { %v4365_v25 = vpop.eup %4364 }
 0x304   : > { %3529 = vst [vmem:[#allocation5 + $0x20] sm:$0xff] %v3343_v13   ;;  %v2414_v39 = vmul.f32 %v2398_v2, %v2382_v56  ;;  %v3363_v12 = vpack.c.bf16 %v4365_v25, %v4357_v62  ;;  %v2390_v27 = vsub.f32 1.0, %v4365_v25 }
 0x305   : > { %v4367_v48 = vpop.eup %4366 }
 0x306   : > { %v3383_v20 = vpack.c.bf16 %v2414_v39, %v2413_v10  ;;  %3533 = vst [vmem:[#allocation5 + $0x10] sm:$0xff] %v3363_v12   ;;  %v2422_v54 = vmul.f32 %v2406_v45, %v2390_v27  ;;  %v3338_v21 = vpack.c.bf16 %v4367_v48, %v4359_v51  ;;  %v2380_v22 = vsub.f32 1.0, %v4367_v48 }
 0x307   : > { %v4369_v60 = vpop.eup %4368 }
 0x308   : > { %3536 = vst [vmem:[#allocation6 + $0x30] sm:$0xff] %v3383_v20   ;;  %v3403_v16 = vpack.c.bf16 %v2422_v54, %v2421_v19  ;;  %3528 = vst [vmem:[#allocation5 + $0x18] sm:$0xff] %v3338_v21   ;;  %v2412_v15 = vmul.f32 %v2396_v46, %v2380_v22  ;;  %v3358_v18 = vpack.c.bf16 %v4369_v60, %v4361_v3  ;;  %v2388_v24 = vsub.f32 1.0, %v4369_v60 }
 0x30a   : > { %3540 = vst [vmem:[#allocation6 + $0x28] sm:$0xff] %v3403_v16   ;;  %v3378_v29 = vpack.c.bf16 %v2412_v15, %v2411_v23  ;;  %3532 = vst [vmem:[#allocation5 + $0x30] sm:$0xff] %v3358_v18   ;;  %v2420_v32 = vmul.f32 %v2404_v17, %v2388_v24 }
 0x30c   : > { %3535 = vst [vmem:[#allocation6 + $0x10] sm:$0xff] %v3378_v29   ;;  %v3398_v30 = vpack.c.bf16 %v2420_v32, %v2419_v61 }
 0x30e   : > { %3539 = vst [vmem:[#allocation6 + $0x38] sm:$0xff] %v3398_v30  }
 0x30f PF: > { %v2503_v28 = vld [vmem:[#allocation3 + $0x30] sm:$0xff]  ;;  %v2504_v57 = vld [vmem:[#allocation3] sm:$0xff]  ;;  %v2507_v33 = vld [vmem:[#allocation4 + $0x28] sm:$0xff]  ;;  %p3160_p9 = scmp.ne.s32.totalorder %s4620_s21, 3 }
 0x310   : > { %v2505_v35 = vmul.f32 0.0, %v2503_v28  ;;  %v2506_v43 = vmul.f32 0.0, %v2504_v57  ;;  %v2508_v52 = vld [vmem:[#allocation4 + $0x68] sm:$0xff]  ;;  %v2535_v6 = vld [vmem:[#allocation3 + $0x58] sm:$0xff]  ;;  %v2539_v8 = vld [vmem:[#allocation4 + $0x10] sm:$0xff] }
 0x311   : > { %v2536_v38 = vld [vmem:[#allocation3 + $0x18] sm:$0xff]  ;;  %v2540_v47 = vld [vmem:[#allocation4 + $0x40] sm:$0xff]  ;;  %v2567_v26 = vld [vmem:[#allocation3 + $0x50] sm:$0xff] }
 0x312   : > { %v2509_v41 = vadd.f32 %v2507_v33, %v2505_v35  ;;  %v2510_v42 = vadd.f32 %v2508_v52, %v2506_v43  ;;  %v2568_v53 = vld [vmem:[#allocation3 + $0x68] sm:$0xff]  ;;  %v2572_v34 = vld [vmem:[#allocation4 + $0x30] sm:$0xff]  ;;  %v2604_v11 = vld [vmem:[#allocation4 + $0x38] sm:$0xff] }
 0x313   : > { %v2571_v7 = vld [vmem:[#allocation4 + $0x48] sm:$0xff]  ;;  %v2603_v3 = vld [vmem:[#allocation4 + $0x70] sm:$0xff]  ;;  %v3410_v5 = vld [vmem:[#allocation6 + $0x18] sm:$0xff]  }
 0x314   : > { %4370 = vtanh.f32 %v2509_v41  ;;  %v2537_v31 = vmul.f32 %v2535_v6, %v2509_v41  ;;  %v2538_v37 = vmul.f32 %v2536_v38, %v2510_v42  ;;  %v2599_v36 = vld [vmem:[#allocation3 + $0x8] sm:$0xff]  ;;  %v2631_v50 = vld [vmem:[#allocation3 + $0x40] sm:$0xff]  ;;  %v2636_v1 = vld [vmem:[#allocation4 + $0x78] sm:$0xff]  ;;  %v3411_v10 = vunpack.c.l.bf16 %v3410_v5 }
 0x315   : > { %4372 = vtanh.f32 %v2510_v42  ;;  %v2600_v58 = vld [vmem:[#allocation3 + $0x48] sm:$0xff]  ;;  %v2632_v9 = vld [vmem:[#allocation3 + $0x20] sm:$0xff]  ;;  %v3412_v14 = vunpack.c.h.bf16 %v3410_v5  ;;  %v2663_v17 = vld [vmem:[#allocation3 + $0x10] sm:$0xff] }
 0x316   : > { %v2541_v0 = vadd.f32 %v2539_v8, %v2537_v31  ;;  %v2542_v55 = vadd.f32 %v2540_v47, %v2538_v37  ;;  %v3406_v51 = vld [vmem:[#allocation5 + $0x8] sm:$0xff]   ;;  %v3541_v4 = vld [vmem:[#allocation5] sm:$0xff]   ;;  %v2664_v19 = vld [vmem:[#allocation3 + $0x38] sm:$0xff] }
 0x317   : > { %v3407_v45 = vunpack.c.l.bf16 %v3406_v51  ;;  %v3408_v25 = vunpack.c.h.bf16 %v3406_v51  ;;  %v2635_v46 = vld [vmem:[#allocation4 + $0x20] sm:$0xff]  ;;  %v3542_v39 = vld [vmem:[#allocation6 + $0x8] sm:$0xff]   ;;  %v3420_v54 = vunpack.c.l.bf16 %v3541_v4  ;;  %v3421_v23 = vunpack.c.h.bf16 %v3541_v4  ;;  %v3544_v15 = vld [vmem:[#allocation5 + $0x18] sm:$0xff]  }
 0x318   : > { %4374 = vtanh.f32 %v2541_v0  ;;  %v2569_v63 = vmul.f32 %v2567_v26, %v2541_v0  ;;  %v2570_v44 = vmul.f32 %v2568_v53, %v2542_v55  ;;  %v3424_v16 = vunpack.c.l.bf16 %v3542_v39  ;;  %v2667_v18 = vld [vmem:[#allocation4 + $0x18] sm:$0xff]  ;;  %v3545_v29 = vld [vmem:[#allocation6 + $0x10] sm:$0xff]   ;;  %v2695_v35 = vld [vmem:[#allocation3 + $0x60] sm:$0xff] }
 0x319   : > { %4376 = vtanh.f32 %v2542_v55  ;;  %v2668_v24 = vld [vmem:[#allocation4 + $0x58] sm:$0xff]  ;;  %v3425_v33 = vunpack.c.h.bf16 %v3542_v39  ;;  %v2696_v43 = vld [vmem:[#allocation3 + $0x70] sm:$0xff]  ;;  %v3433_v38 = vunpack.c.l.bf16 %v3544_v15  ;;  %v3434_v31 = vunpack.c.h.bf16 %v3544_v15  ;;  %v3547_v26 = vld [vmem:[#allocation5 + $0x20] sm:$0xff]  }
 0x31a   : > { %v2573_v59 = vadd.f32 %v2571_v7, %v2569_v63  ;;  %v2574_v62 = vadd.f32 %v2572_v34, %v2570_v44  ;;  %v3437_v37 = vunpack.c.l.bf16 %v3545_v29  ;;  %v2699_v53 = vld [vmem:[#allocation4] sm:$0xff]  ;;  %v2700_v0 = vld [vmem:[#allocation4 + $0x8] sm:$0xff]  ;;  %v3548_v7 = vld [vmem:[#allocation6 + $0x30] sm:$0xff]  }
 0x31c   : > { %4378 = vtanh.f32 %v2573_v59  ;;  %v2601_v2 = vmul.f32 %v2599_v36, %v2573_v59  ;;  %v2602_v40 = vmul.f32 %v2600_v58, %v2574_v62  ;;  %v3438_v58 = vunpack.c.h.bf16 %v3545_v29  ;;  %v2727_v59 = vld [vmem:[#allocation3 + $0x78] sm:$0xff] }
 0x31d   : > { %4380 = vtanh.f32 %v2574_v62  ;;  %v2728_v62 = vld [vmem:[#allocation3 + $0x28] sm:$0xff] }
 0x31e   : > { %v2605_v13 = vadd.f32 %v2603_v3, %v2601_v2  ;;  %v2606_v56 = vadd.f32 %v2604_v11, %v2602_v40  ;;  %v3446_v11 = vunpack.c.l.bf16 %v3547_v26 }
 0x320   : > { %4382 = vtanh.f32 %v2605_v13  ;;  %v2633_v12 = vmul.f32 %v2631_v50, %v2605_v13  ;;  %v2634_v27 = vmul.f32 %v2632_v9, %v2606_v56  ;;  %v3447_v9 = vunpack.c.h.bf16 %v3547_v26  ;;  %v3550_v13 = vld [vmem:[#allocation5 + $0x38] sm:$0xff]  }
 0x321   : > { %v4371_v48 = vpop.eup %4370  ;;  %4384 = vtanh.f32 %v2606_v56  ;;  %v2731_v56 = vld [vmem:[#allocation4 + $0x60] sm:$0xff] }
 0x322   : > { %v4373_v49 = vpop.eup %4372  ;;  %v2521_v20 = vmul.f32 %v4371_v48, %v3407_v45  ;;  %v2637_v21 = vadd.f32 %v2635_v46, %v2633_v12  ;;  %v2638_v22 = vadd.f32 %v2636_v1, %v2634_v27  ;;  %v3450_v45 = vunpack.c.l.bf16 %v3548_v7  ;;  %v3551_v27 = vld [vmem:[#allocation6 + $0x20] sm:$0xff]  }
 0x323   : > { %v2522_v60 = vmul.f32 %v4373_v49, %v3408_v25  ;;  %v2732_v25 = vld [vmem:[#allocation4 + $0x50] sm:$0xff]  ;;  %v3451_v12 = vunpack.c.h.bf16 %v3548_v7 }
 0x324   : > { %v2523_v61 = vadd.f32 %v3411_v10, %v2521_v20  ;;  %4386 = vtanh.f32 %v2637_v21  ;;  %v2665_v32 = vmul.f32 %v2663_v17, %v2637_v21  ;;  %v2666_v30 = vmul.f32 %v2664_v19, %v2638_v22 }
 0x325   : > { %v4375_v28 = vpop.eup %4374  ;;  %v2524_v57 = vadd.f32 %v3412_v14, %v2522_v60  ;;  %4388 = vtanh.f32 %v2638_v22  ;;  %v3459_v17 = vunpack.c.l.bf16 %v3550_v13  ;;  %v3460_v21 = vunpack.c.h.bf16 %v3550_v13  ;;  %v3553_v22 = vld [vmem:[#allocation5 + $0x28] sm:$0xff]  }
 0x326   : > { %v4377_v52 = vpop.eup %4376  ;;  %v2553_v6 = vmul.f32 %v4375_v28, %v3420_v54  ;;  %v2669_v41 = vadd.f32 %v2667_v18, %v2665_v32  ;;  %v2670_v42 = vadd.f32 %v2668_v24, %v2666_v30  ;;  %v3464_v18 = vunpack.c.h.bf16 %v3551_v27  ;;  %v3554_v24 = vld [vmem:[#allocation6] sm:$0xff]  }
 0x327   : > { %v3416_v8 = vpack.c.bf16 %v2524_v57, %v2523_v61  ;;  %v2554_v47 = vmul.f32 %v4377_v52, %v3421_v23  ;;  %v3463_v23 = vunpack.c.l.bf16 %v3551_v27  ;;  %v3472_v32 = vunpack.c.l.bf16 %v3553_v22 }
 0x328   : > { %v2555_v55 = vadd.f32 %v3424_v16, %v2553_v6  ;;  %4390 = vtanh.f32 %v2669_v41  ;;  %v2697_v34 = vmul.f32 %v2695_v35, %v2669_v41  ;;  %v2698_v63 = vmul.f32 %v2696_v43, %v2670_v42  ;;  %v3557_v41 = vld [vmem:[#allocation6 + $0x38] sm:$0xff]  }
 0x329   : > { %v4379_v44 = vpop.eup %4378  ;;  %3417 = vst [vmem:[#allocation2] sm:$0xff] %v3416_v8   ;;  %v2556_v36 = vadd.f32 %v3425_v33, %v2554_v47  ;;  %4392 = vtanh.f32 %v2670_v42  ;;  %v3473_v57 = vunpack.c.h.bf16 %v3553_v22  ;;  %v3556_v33 = vld [vmem:[#allocation5 + $0x30] sm:$0xff]   ;;  %v3476_v43 = vunpack.c.l.bf16 %v3554_v24 }
 0x32a   : > { %v4381_v51 = vpop.eup %4380  ;;  %v2585_v3 = vmul.f32 %v4379_v44, %v3433_v38  ;;  %v2701_v2 = vadd.f32 %v2699_v53, %v2697_v34  ;;  %v2702_v40 = vadd.f32 %v2700_v0, %v2698_v63  ;;  %v3477_v38 = vunpack.c.h.bf16 %v3554_v24  ;;  %v3559_v53 = vld [vmem:[#allocation5 + $0x10] sm:$0xff]   ;;  %v3560_v44 = vld [vmem:[#allocation6 + $0x28] sm:$0xff]  }
 0x32b   : > { %v3429_v5 = vpack.c.bf16 %v2556_v36, %v2555_v55  ;;  %v2586_v50 = vmul.f32 %v4381_v51, %v3434_v31  ;;  %v3485_v47 = vunpack.c.l.bf16 %v3556_v33  ;;  %v3486_v26 = vunpack.c.h.bf16 %v3556_v33 }
 0x32c   : > { %v2587_v4 = vadd.f32 %v3437_v37, %v2585_v3  ;;  %4394 = vtanh.f32 %v2701_v2  ;;  %v2729_v46 = vmul.f32 %v2727_v59, %v2701_v2  ;;  %v2730_v1 = vmul.f32 %v2728_v62, %v2702_v40 }
 0x32d   : > { %v4383_v10 = vpop.eup %4382  ;;  %3543 = vst [vmem:[#allocation2 + $0x8] sm:$0xff] %v3429_v5   ;;  %v2588_v39 = vadd.f32 %v3438_v58, %v2586_v50  ;;  %4396 = vtanh.f32 %v2702_v40  ;;  %v3489_v55 = vunpack.c.l.bf16 %v3557_v41  ;;  %v3490_v63 = vunpack.c.h.bf16 %v3557_v41 }
 0x32e   : > { %v4385_v48 = vpop.eup %4384  ;;  %v2617_v14 = vmul.f32 %v4383_v10, %v3446_v11  ;;  %v2733_v19 = vadd.f32 %v2731_v56, %v2729_v46  ;;  %v2734_v49 = vadd.f32 %v2732_v25, %v2730_v1  ;;  %v3498_v59 = vunpack.c.l.bf16 %v3559_v53 }
 0x32f   : > { %v3442_v20 = vpack.c.bf16 %v2588_v39, %v2587_v4  ;;  %v2618_v54 = vmul.f32 %v4385_v48, %v3447_v9  ;;  %v3499_v3 = vunpack.c.h.bf16 %v3559_v53  ;;  %v3502_v2 = vunpack.c.l.bf16 %v3560_v44 }
 0x330   : > { %v2619_v60 = vadd.f32 %v3450_v45, %v2617_v14  ;;  %4398 = vtanh.f32 %v2733_v19  ;;  %v3503_v50 = vunpack.c.h.bf16 %v3560_v44 }
 0x331   : > { %v4387_v16 = vpop.eup %4386  ;;  %3546 = vst [vmem:[#allocation2 + $0x10] sm:$0xff] %v3442_v20   ;;  %v2620_v15 = vadd.f32 %v3451_v12, %v2618_v54  ;;  %4400 = vtanh.f32 %v2734_v49 }
 0x332   : > { %v4389_v61 = vpop.eup %4388  ;;  %v2649_v29 = vmul.f32 %v4387_v16, %v3459_v17 }
 0x333   : > { %v3455_v30 = vpack.c.bf16 %v2620_v15, %v2619_v60  ;;  %v2650_v28 = vmul.f32 %v4389_v61, %v3460_v21 }
 0x334   : > { %v2651_v35 = vadd.f32 %v3463_v23, %v2649_v29 }
 0x335   : > { %v4391_v52 = vpop.eup %4390  ;;  %3549 = vst [vmem:[#allocation2 + $0x18] sm:$0xff] %v3455_v30   ;;  %v2652_v6 = vadd.f32 %v3464_v18, %v2650_v28 }
 0x336   : > { %v4393_v42 = vpop.eup %4392  ;;  %v2681_v8 = vmul.f32 %v4391_v52, %v3472_v32 }
 0x337   : > { %v3468_v31 = vpack.c.bf16 %v2652_v6, %v2651_v35  ;;  %v2682_v37 = vmul.f32 %v4393_v42, %v3473_v57 }
 0x338   : > { %v2683_v0 = vadd.f32 %v3476_v43, %v2681_v8 }
 0x339   : > { %v4395_v7 = vpop.eup %4394  ;;  %3552 = vst [vmem:[#allocation2 + $0x20] sm:$0xff] %v3468_v31   ;;  %v2684_v34 = vadd.f32 %v3477_v38, %v2682_v37 }
 0x33a   : > { %v4397_v36 = vpop.eup %4396  ;;  %v2713_v58 = vmul.f32 %v4395_v7, %v3485_v47 }
 0x33b   : > { %v3481_v62 = vpack.c.bf16 %v2684_v34, %v2683_v0  ;;  %v2714_v51 = vmul.f32 %v4397_v36, %v3486_v26 }
 0x33c   : > { %v2715_v11 = vadd.f32 %v3489_v55, %v2713_v58 }
 0x33d   : > { %v4399_v40 = vpop.eup %4398  ;;  %3555 = vst [vmem:[#allocation2 + $0x28] sm:$0xff] %v3481_v62   ;;  %v2716_v5 = vadd.f32 %v3490_v63, %v2714_v51 }
 0x33e   : > { %v4401_v9 = vpop.eup %4400  ;;  %v2745_v45 = vmul.f32 %v4399_v40, %v3498_v59 }
 0x33f   : > { %v3494_v13 = vpack.c.bf16 %v2716_v5, %v2715_v11  ;;  %v2746_v56 = vmul.f32 %v4401_v9, %v3499_v3 }
 0x340   : > { %v2747_v25 = vadd.f32 %v3502_v2, %v2745_v45 }
 0x341   : > { %3558 = vst [vmem:[#allocation2 + $0x30] sm:$0xff] %v3494_v13   ;;  %v2748_v4 = vadd.f32 %v3503_v50, %v2746_v56  ;;  %2762 = sbr.rel (%p3160_p9) target bundleno = 1010 (0x3f2), region = 64 }
 0x343   : > { %v3507_v46 = vpack.c.bf16 %v2748_v4, %v2747_v25 }
 0x345   : > { %3561 = vst [vmem:[#allocation2 + $0x38] sm:$0xff] %v3507_v46  }
 0x34c   : > { %v3562_v1 = vld [vmem:[#allocation2 + $0x38] sm:$0xff]  }
 0x34d   : > { %v3511_v10 = vunpack.c.l.bf16 %v3562_v1  ;;  %v3512_v39 = vunpack.c.h.bf16 %v3562_v1 }
 0x34f   : > { %v2767_v12 = vmul.f32 %v3511_v10, %v3511_v10  ;;  %v2768_v27 = vmul.f32 %v3512_v39, %v3512_v39 }
 0x351   : > { %2769 = vadd.xlane.f32.xlu0 %v2767_v12 }
 0x355   : > { %2771 = vadd.xlane.f32.xlu0 %v2768_v27 }
 0x3da   : > { %v2770_v48 = vpop.xlane.xlu0 %2769 }
 0x3db   : > { %v2773_v14 = vmax.f32 %v2770_v48, 1e-12 }
 0x3dd   : > { %4402 = vrsqrt.f32 %v2773_v14 }
 0x3de   : > { %v2772_v17 = vpop.xlane.xlu0 %2771 }
 0x3df   : > { %v2774_v19 = vmax.f32 %v2772_v17, 1e-12 }
 0x3e1   : > { %4404 = vrsqrt.f32 %v2774_v19 }
 0x3ea   : > { %v4403_v49 = vpop.eup %4402 }
 0x3eb   : > { %v2777_v20 = vmul.f32 %v4403_v49, %v3511_v10 }
 0x3ed   : > { %2779 = vst [vmem:[#allocation14] sm:$0xff] %v2777_v20 }
 0x3ee   : > { %v4405_v54 = vpop.eup %4404 }
 0x3ef   : > { %v2778_v21 = vmul.f32 %v4405_v54, %v3512_v39 }
 0x3f1   : > { %2780 = vst [vmem:[#allocation14 + $0x8] sm:$0xff] %v2778_v21 }
 0x3f2 PF: > { %p3953_p13 = scmp.eq.s32.totalorder %s4708_s24, 3  ;;  %s4636_s21 = smov [#allocation14]  }
 0x3f3   : > { %s2790_s25 = sshll.u32 %s4636_s21, 4  ;;  %s2791_s25 = int_to_ptr.vmem [resolvable:$true] %s2790_s25 }
 0x3f4   : > { %s4514_s14 = scalar_lea.vmem %s2791_s25, 256  ;;  %p4521_p2 = scmp.lt.s32.totalorder %s2791_s25, %s2791_s25 }
 0x3f5   : > { %p4515_p1 = scmp.ne.s32.totalorder %s2791_s25, %s4514_s14  ;;  %p4522_p0 = scmp.lt.s32.totalorder %s4514_s14, %s4514_s14 }
 0x3f7   : > { %p4516_p10 = pnand %p4515_p1, %p3953_p13  ;;  %p4523_p6 = por %p4522_p0, %p4521_p2 }
 0x3f9   : > { %p4517_p8 = pneg %p4516_p10 }
 0x3fb   : > { %p4524_p3 = pnand %p4523_p6, %p4517_p8 }
 0x3fd   : > { %4527 = shalt.err (!%p4524_p3)
}
 0x3fe   : > { %s4637_s6 = smov 128   ;;  %s4638_s27 = smov 8  }
 0x3ff   : > { %s5246_s7 = sld [smem:[#allocation21_spill]] }
 0x405   : > { %3931 = dma.vmem_to_hbm [thread:$0]  (%p3953_p13), %s2791_s25, 256, %s5246_s7, [#allocation9], %s4637_s6, %s4637_s6, %s4638_s27  }
 0x406   : > { %4591 = dma.done.wait (%p3953_p13), [#allocation9], 256  }
 0x407   : > { %4593 = vsyncadd (%p3953_p13), [#allocation9], 4294967040 }
 0x408 PF: > { %s17_s23 = sadd.s32 1, %s4628_s23   ;;  %s5247_s15 = smov %s4600_s16 }
 0x409   : > { %p14_p7 = scmp.ge.s32.totalorder %s17_s23, 6   ;;  %s5248_s16 = smov %s4604_s17 }
 0x40a   : > { %s5249_s17 = smov %s4801_s10  ;;  %s5250_s18 = smov %s4612_s19 }
 0x40b   : > { %s5251_s19 = smov %s4616_s20  ;;  %s5252_s20 = smov %s4766_s8 }
 0x40c   : > { %s5253_s21 = smov %s4624_s22  ;;  %s5254_s22 = smov %s5256_s30 }
 0x40d   :  { %16 = sbr.rel (!%p14_p7) target bundleno = 10 (0xa), region = 110 }
 0x412   :  { %2806 = vsyncpa [#allocation8], 1 }
 0x413   :  { %2808 = vsyncpa [#allocation8 + $0x1], 1 }
 0x414   :  { %2809 = vsyncpa [#allocation11], 1 }
 0x415   :  { %2810 = vsyncpa [#allocation9], 1 }
 0x416   :  { %2812 = vsyncpa [#allocation9 + $0x1], 1 }

// kernel: tpu_custom_call.1
= control target key start
LH: loop header
LB: loop body
LE: loop exit
PB: predicated region body
PF: predicated region fallthrough
CT: control target
= control target key end

     0   :  { %s5218_s0 = inlined_call_operand.hbm [shape: bf16[8,16,128], index: 0, kind: input, shape index: {}]   ;;  %s5219_s1 = inlined_call_operand.hbm [shape: bf16[4,128,128], index: 1, kind: input, shape index: {}]   ;;  %s5220_s2 = inlined_call_operand.hbm [shape: bf16[3,3,128,128], index: 2, kind: input, shape index: {}]   ;;  %s5221_s3 = inlined_call_operand.hbm [shape: f32[4,2,128], index: 3, kind: input, shape index: {}]   ;;  %s5222_s4 = inlined_call_operand.hbm [shape: f32[16,128], index: 4, kind: output, shape index: {}]  }
   0x1   :  { %5229 = sst [smem:[#allocation20_spill]] %s5218_s0 }
   0x2   :  { %5230 = sst [smem:[#allocation21_spill]] %s5222_s4 }
   0x3   :  { %9 = vsyncpa [#allocation8], 0 }
   0x4   :  { %10 = vsyncpa [#allocation11], 0 }
   0x5   :  { %11 = vsyncpa [#allocation9], 0  ;;  %s4664_s15 = smov 0   ;;  %s4666_s16 = smov 0  }
   0x6   :  { %s4668_s17 = smov 0   ;;  %s4670_s18 = smov 0  }
   0x7   :  { %s4672_s19 = smov 0   ;;  %s4674_s20 = smov 0  }
   0x8   :  { %s4676_s21 = smov 0   ;;  %s4678_s22 = smov 0  }
   0x9   :  { %s4680_s23 = smov 0  }
   0xa LB: > { %s4708_s24 = sadd.s32 4294967295, %s4628_s23   ;;  %p102_p0 = scmp.ne.s32.totalorder %s4612_s19, %s4608_s18  ;;  %s4628_s23 = sphi %s4680_s23, %s17_s23   ;;  %s4624_s22 = sphi %s4678_s22, %s5254_s22   ;;  %s4620_s21 = sphi %s4676_s21, %s5253_s21   ;;  %s4616_s20 = sphi %s4674_s20, %s5252_s20   ;;  %s4612_s19 = sphi %s4672_s19, %s5251_s19   ;;  %s4608_s18 = sphi %s4670_s18, %s5250_s18   ;;  %s4604_s17 = sphi %s4668_s17, %s5249_s17   ;;  %s4600_s16 = sphi %s4666_s16, %s5248_s16   ;;  %s4596_s15 = sphi %s4664_s15, %s5247_s15  }
   0xb   : > { %p5228_p1 = scmp.eq.s32.totalorder %s4708_s24, 0  ;;  %p2898_p2 = scmp.ge.s32.totalorder %s4628_s23, 1 }
   0xc   : > { %p165_p3 = scmp.lt.s32.totalorder %s4628_s23, 5  ;;  %s4630_s27 = smov [#allocation7]  }
   0xd   : > { %p4716_p4 = por %p5228_p1, %p102_p0  ;;  %s180_s28 = sshll.u32 %s4630_s27, 4  ;;  %s181_s28 = int_to_ptr.vmem [resolvable:$true] %s180_s28 }
   0xe   : > { %p4720_p5 = pnand %p2898_p2, %p165_p3  ;;  %s26_s30 = sadd.s32 1, %s4624_s22 }
   0xf   : > { %s4417_s5 = scalar_lea.vmem %s181_s28, 1024  ;;  %p4425_p12 = scmp.lt.s32.totalorder %s181_s28, %s181_s28 }
  0x10   : > { %p3934_p6 = pneg %p4720_p5  ;;  %p4418_p9 = scmp.ne.s32.totalorder %s181_s28, %s4417_s5 }
  0x11   : > { %p4426_p13 = scmp.lt.s32.totalorder %s4417_s5, %s4417_s5 }
  0x12   : > { %p4728_p7 = pnand %p3934_p6, %p5228_p1 }
  0x13   : > { %p4427_p0 = por %p4426_p13, %p4425_p12 }
  0x14   : > { %p4408_p8 = pneg %p4728_p7 }
  0x16   : > { %p4420_p10 = pnand %p4418_p9, %p4408_p8 }
  0x18   : > { %p4421_p11 = pneg %p4420_p10 }
  0x1a   : > { %p4428_p2 = pnand %p4427_p0, %p4421_p11 }
  0x1c   : > { %4431 = shalt.err (!%p4428_p2)
}
  0x1d   : > { %s5223_s6 = smov 64   ;;  %s5225_s7 = smov 4  }
  0x1e   : > { %s5234_s0 = sld [smem:[#allocation20_spill]]  ;;  %p27_p3 = scmp.ge.s32.totalorder %s26_s30, 4 }
  0x1f   : > { %s2896_s10 = sadd.s32 4294967295, %s4624_s22  ;;  %s89_s11 = sadd.s32 1, %s4616_s20 }
  0x20   : > { %p81_p6 = scmp.gt.s32.totalorder %s2896_s10, 0  ;;  %s5256_s30 = smov (%p27_p3, %s26_s30), 0 }
  0x21   : > { %s2897_s12 = sadd.s32 4294967295, %s5256_s30  ;;  %p96_p9 = scmp.ne.s32.totalorder %s4616_s20, %s4612_s19 }
  0x22   : > { %s5258_s10 = smov (!%p81_p6, %s2896_s10), 0  ;;  %p84_p10 = scmp.gt.s32.totalorder %s2897_s12, 0 }
  0x23   : > { %p97_p11 = scmp.eq.s32.totalorder %s4628_s23, 0  ;;  %p5227_p12 = scmp.lt.s32.totalorder %s4628_s23, 4 }
  0x24   : > { %3937 = dma.hbm_to_vmem [thread:$0]  (!%p4728_p7), %s5234_s0, 1024, %s181_s28, [#allocation8], %s5223_s6, %s5223_s6, %s5225_s7  }
  0x25   : > { %s207_s13 = sand.u32 1, %s4628_s23   ;;  %s5260_s12 = smov (!%p84_p10, %s2897_s12), 0 }
  0x26   : > { %p98_p13 = por %p97_p11, %p96_p9  ;;  %s86_s14 = ssub.s32 %s5258_s10, %s5260_s12 }
  0x27   : > { %s209_s18 = sand.u32 1, %s4616_s20   ;;  %p87_p0 = scmp.eq.s32.totalorder %s86_s14, 0 }
  0x28   : > { %s3915_s27 = smul.u32 192, %s209_s18  ;;  %p4761_p2 = pnand %p5227_p12, %p98_p13 }
  0x29   : > { %s3916_s28 = smul.u32 3072, %s5258_s10  ;;  %s4771_s12 = scalar_lea.sflag [#allocation8], %s207_s13 }
  0x2a   : > { %s4766_s8 = scalar_select %p87_p0, %s4616_s20, %s89_s11  }
  0x2b   : > { %s220_s7 = scalar_lea.hbm %s5220_s2, %s3916_s28  ;;  %s211_s0 = scalar_lea.vmem [#allocation12], %s3915_s27 }
  0x2c   : > { %s221_s4 = sshll.u32 %s211_s0, 4  ;;  %p4434_p3 = pneg %p4761_p2  ;;  %s222_s4 = int_to_ptr.vmem [resolvable:$true] %s221_s4 }
  0x2d   : > { %s4445_s10 = scalar_lea.vmem %s222_s4, 3072  ;;  %s4633_s14 = smov [#allocation12]  }
  0x2e   : > { %p4446_p6 = scmp.ne.s32.totalorder %s222_s4, %s4445_s10  ;;  %s4450_s18 = sshll.u32 %s4633_s14, 4  ;;  %s4451_s18 = int_to_ptr.vmem [resolvable:$false] %s4450_s18 }
  0x2f   : > { %s4452_s11 = scalar_lea.vmem %s4451_s18, 6144  ;;  %p4453_p13 = scmp.lt.s32.totalorder %s222_s4, %s4451_s18 }
  0x30   : > { %p4448_p9 = pnand %p4446_p6, %p4434_p3  ;;  %p4454_p0 = scmp.lt.s32.totalorder %s4452_s11, %s4445_s10 }
  0x32   : > { %p4449_p10 = pneg %p4448_p9  ;;  %p4455_p12 = por %p4454_p0, %p4453_p13 }
  0x34   : > { %p4456_p1 = pnand %p4455_p12, %p4449_p10 }
  0x36   : > { %4459 = shalt.err (!%p4456_p1)
}
  0x37   : > { %s5236_s0 = smov 4   ;;  %s5237_s6 = smov 64  }
  0x38   : > { %3944 = dma.hbm_to_vmem [thread:$0]  (!%p4761_p2), %s220_s7, 3072, %s222_s4, %s4771_s12, %s5237_s6, %s5237_s6, %s5236_s0  }
  0x39   : > { %s4634_s13 = smov [#allocation10]  }
  0x3a   : > { %s193_s27 = sshll.u32 %s4634_s13, 4  ;;  %s194_s27 = int_to_ptr.vmem [resolvable:$true] %s193_s27 }
  0x3b   : > { %s4471_s28 = scalar_lea.vmem %s194_s27, 4096  ;;  %p4479_p13 = scmp.lt.s32.totalorder %s194_s27, %s194_s27 }
  0x3c   : > { %p4472_p3 = scmp.ne.s32.totalorder %s194_s27, %s4471_s28  ;;  %p4480_p12 = scmp.lt.s32.totalorder %s4471_s28, %s4471_s28 }
  0x3e   : > { %p4474_p6 = pnand %p4472_p3, %p4408_p8  ;;  %p4481_p1 = por %p4480_p12, %p4479_p13 }
  0x40   : > { %p4475_p9 = pneg %p4474_p6 }
  0x42   : > { %p4482_p10 = pnand %p4481_p1, %p4475_p9 }
  0x44   : > { %4485 = shalt.err (!%p4482_p10)
}
  0x45   : > { %3940 = dma.hbm_to_vmem [thread:$0]  (!%p4728_p7), %s5219_s1, 4096, %s194_s27, [#allocation11], %s5237_s6, %s5237_s6, %s5236_s0  }
  0x46   : > { %s112_s29 = ssub.s32 %s4624_s22, %s5256_s30  ;;  %s115_s5 = sadd.s32 1, %s4604_s17 }
  0x47   : > { %p113_p8 = scmp.eq.s32.totalorder %s112_s29, 0  ;;  %p122_p2 = scmp.ne.s32.totalorder %s4604_s17, %s4600_s16 }
  0x48   : > { %p128_p0 = scmp.ne.s32.totalorder %s4600_s16, %s4596_s15  ;;  %s233_s9 = sand.u32 1, %s4604_s17  }
  0x49   : > { %s4801_s10 = scalar_select %p113_p8, %s4604_s17, %s115_s5  }
  0x4a   : > { %p124_p3 = por %p122_p2, %p97_p11  ;;  %p5238_p6 = scmp.eq.s32.totalorder %s4708_s24, 0 }
  0x4b   : > { %s2904_s18 = sshll.u32 %s233_s9, 1  ;;  %s2905_s11 = sshll.u32 %s4624_s22, 5 }
  0x4c   : > { %p4807_p9 = por %p128_p0, %p5238_p6  ;;  %s240_s0 = scalar_lea.hbm %s5221_s3, %s2905_s11 }
  0x4d   : > { %s235_s6 = scalar_lea.vmem [#allocation13], %s2904_s18  ;;  %p5240_p7 = scmp.lt.s32.totalorder %s4628_s23, 4 }
  0x4e   : > { %s242_s27 = sshll.u32 %s235_s6, 4  ;;  %s4635_s7 = smov [#allocation13]   ;;  %s243_s27 = int_to_ptr.vmem [resolvable:$true] %s242_s27 }
  0x4f   : > { %p4817_p13 = pnand %p5240_p7, %p124_p3  ;;  %s4499_s4 = scalar_lea.vmem %s243_s27, 32 }
  0x50   : > { %p4500_p12 = scmp.ne.s32.totalorder %s243_s27, %s4499_s4  ;;  %s4504_s29 = sshll.u32 %s4635_s7, 4  ;;  %s4505_s29 = int_to_ptr.vmem [resolvable:$false] %s4504_s29 }
  0x51   : > { %p4488_p11 = pneg %p4817_p13  ;;  %s4506_s5 = scalar_lea.vmem %s4505_s29, 64 }
  0x52   : > { %p4507_p8 = scmp.lt.s32.totalorder %s243_s27, %s4505_s29  ;;  %p4508_p2 = scmp.lt.s32.totalorder %s4506_s5, %s4499_s4 }
  0x53   : > { %p4502_p1 = pnand %p4500_p12, %p4488_p11 }
  0x54   : > { %p4509_p0 = por %p4508_p2, %p4507_p8 }
  0x55   : > { %p4503_p10 = pneg %p4502_p1 }
  0x57   : > { %p4510_p6 = pnand %p4509_p0, %p4503_p10 }
  0x59   : > { %4513 = shalt.err (!%p4510_p6)
}
  0x5a   : > { %3947 = dma.hbm_to_vmem [thread:$0]  (!%p4817_p13), %s240_s0, 32, %s243_s27, %s4771_s12  }
  0x5b   : > { %251 = sbr.rel (%p4720_p5) target bundleno = 1032 (0x408), region = 36  ;;  %p5242_p3 = scmp.eq.s32.totalorder (!%p4720_p5), %s4708_s24, 0 }
  0x60   : > { %4575 = dma.done.wait (%p5242_p3), [#allocation8], 1024   ;;  %p5243_p7 = pmov %p5242_p3 }
  0x61   : > { %p5244_p11 = pmov %p5242_p3 }
  0x62   : > { %4577 = vsyncadd (%p5243_p7), [#allocation8], 4294966272 }
  0x63   : > { %4579 = dma.done.wait (%p5244_p11), [#allocation11], 4096   ;;  %p5245_p12 = pmov %p5242_p3 }
  0x64   : > { %s261_s9 = sand.u32 1, %s4708_s24   ;;  %s263_s12 = sand.u32 1, %s4612_s19  }
  0x65   : > { %4581 = vsyncadd (%p5245_p12), [#allocation11], 4294963200  ;;  %s3917_s18 = smul.u32 192, %s263_s12  ;;  %s262_s26 = scalar_lea.sflag [#allocation8], %s261_s9 }
  0x67   : > { %s4838_s11 = scalar_lea.vmem [#allocation12], %s3917_s18 }
  0x68   : > { %4583 = dma.done.wait (%p4716_p4), %s262_s26, 3072  }
  0x69   : > { %4585 = vsyncadd (%p4716_p4), %s262_s26, 4294964224  ;;  %s272_s13 = sand.u32 1, %s4600_s16  }
  0x6a   : > { %s2909_s28 = sshll.u32 %s272_s13, 1 }
  0x6b   : > { %s274_s0 = scalar_lea.vmem [#allocation13], %s2909_s28 }
  0x6c   : > { %4587 = dma.done.wait (%p4807_p9), %s262_s26, 32  }
  0x6d   : > { %4589 = vsyncadd (%p4807_p9), %s262_s26, 4294967264  ;;  %v4849_v0 = vld [vmem:[%s274_s0] sm:$0x1]  ;;  %v4851_v1 = vld [vmem:[%s274_s0 + $0x1] sm:$0x1]  ;;  %p2910_p5 = scmp.ne.s32.totalorder %s4620_s21, 0 }
  0x6f   : > { %310 = sbr.rel (%p2910_p5) target bundleno = 446 (0x1be), region = 56 }
  0x74   : > { %v4034_v2 = vld [vmem:[#allocation10 + $0x78] sm:$0xff]   ;;  %v4035_v3 = vld [vmem:[#allocation10 + $0x70] sm:$0xff]   ;;  %v4036_v4 = vld [vmem:[#allocation10 + $0x68] sm:$0xff]   ;;  %v344_v42 = vlaneseq }
  0x75   : > { %3675 = vmatprep.subr.bf16.mxu0 %v4034_v2  ;;  %v4037_v5 = vld [vmem:[#allocation10 + $0x60] sm:$0xff]   ;;  %v4043_v7 = vld [vmem:[#allocation10 + $0x38] sm:$0xff]   ;;  %v4046_v9 = vld [vmem:[#allocation10 + $0x30] sm:$0xff]  }
  0x76   : > { %3676 = vmatpush3.bf16.msra.mxu0 %v4034_v2  ;;  %v4854_v6 = vld [vmem:[#allocation7] sm:$0xff]   ;;  %v4038_v8 = vld [vmem:[#allocation10 + $0x58] sm:$0xff]   ;;  %3707 = vmatprep.subr.bf16.mxu1 %v4043_v7  ;;  %v4049_v10 = vld [vmem:[#allocation10 + $0x28] sm:$0xff]   ;;  %v4884_v43 = vshrl.u32 %v344_v42, 7 }
  0x77   : > { %3677 = vmatprep.subr.bf16.mxu0 %v4035_v3  ;;  %3691 = vmatprep.mubr.bf16.mxu0 %v4854_v6  ;;  %v4039_v11 = vld [vmem:[#allocation10 + $0x50] sm:$0xff]   ;;  %v4052_v12 = vld [vmem:[#allocation10 + $0x20] sm:$0xff]   ;;  %v4040_v13 = vld [vmem:[#allocation10 + $0x48] sm:$0xff]  }
  0x78   : > { %3723 = vmatprep.mubr.bf16.mxu1 %v4854_v6  ;;  %3708 = vmatpush3.bf16.msra.mxu1 %v4043_v7  ;;  %v4055_v14 = vld [vmem:[#allocation10 + $0x18] sm:$0xff]   ;;  %v4041_v15 = vld [vmem:[#allocation10 + $0x40] sm:$0xff]   ;;  %v4058_v16 = vld [vmem:[#allocation10 + $0x10] sm:$0xff]   ;;  %v346_v44 = vsub.s32 0, %v4884_v43 }
  0x79   : > { %3709 = vmatprep.subr.bf16.mxu1 %v4046_v9  ;;  %v4045_v17 = vld [vmem:[#allocation10 + $0xb8] sm:$0xff]   ;;  %v4061_v18 = vld [vmem:[#allocation10 + $0x8] sm:$0xff]   ;;  %v4860_v20 = vld [vmem:[#allocation7 + $0x10] sm:$0xff]  }
  0x7a   : > { %3678 = vmatpush3.bf16.msra.mxu0 %v4035_v3  ;;  %v4858_v19 = vld [vmem:[#allocation7 + $0x8] sm:$0xff]   ;;  %v4047_v21 = vld [vmem:[#allocation10 + $0xb0] sm:$0xff]   ;;  %v4064_v22 = vld [vmem:[#allocation10] sm:$0xff]   ;;  %v4890_v45 = vrot.slane %v4849_v0, %v346_v44 }
  0x7b   : > { %3679 = vmatprep.subr.bf16.mxu0 %v4036_v4  ;;  %v4051_v23 = vld [vmem:[#allocation10 + $0xa8] sm:$0xff]   ;;  %v4066_v24 = vld [vmem:[#allocation10 + $0xf8] sm:$0xff]   ;;  %v4866_v26 = vld [vmem:[#allocation7 + $0x20] sm:$0xff]  }
  0x7c   : > { %3710 = vmatpush3.bf16.msra.mxu1 %v4046_v9  ;;  %v4864_v25 = vld [vmem:[#allocation7 + $0x18] sm:$0xff]   ;;  %v4053_v27 = vld [vmem:[#allocation10 + $0xa0] sm:$0xff]   ;;  %v4067_v28 = vld [vmem:[#allocation10 + $0xf0] sm:$0xff]  }
  0x7d   : > { %3711 = vmatprep.subr.bf16.mxu1 %v4049_v10  ;;  %v4057_v29 = vld [vmem:[#allocation10 + $0x98] sm:$0xff]   ;;  %v4056_v30 = vld [vmem:[#allocation7 + $0x28] sm:$0xff]   ;;  %v4060_v32 = vld [vmem:[#allocation7 + $0x30] sm:$0xff]  }
  0x7e   : > { %3680 = vmatpush3.bf16.msra.mxu0 %v4036_v4  ;;  %v4068_v31 = vld [vmem:[#allocation10 + $0xe8] sm:$0xff]   ;;  %v4059_v33 = vld [vmem:[#allocation10 + $0x90] sm:$0xff]   ;;  %v4069_v34 = vld [vmem:[#allocation10 + $0xe0] sm:$0xff]  }
  0x7f   : > { %3681 = vmatprep.subr.bf16.mxu0 %v4037_v5  ;;  %v4063_v35 = vld [vmem:[#allocation10 + $0x88] sm:$0xff]   ;;  %v4062_v36 = vld [vmem:[#allocation7 + $0x38] sm:$0xff]   ;;  %v4065_v38 = vld [vmem:[#allocation10 + $0x80] sm:$0xff]  }
  0x80   : > { %3712 = vmatpush3.bf16.msra.mxu1 %v4049_v10  ;;  %v4070_v37 = vld [vmem:[#allocation10 + $0xd8] sm:$0xff]   ;;  %v4071_v39 = vld [vmem:[#allocation10 + $0xd0] sm:$0xff]   ;;  %v4072_v40 = vld [vmem:[#allocation10 + $0xc8] sm:$0xff]  }
  0x81   : > { %3713 = vmatprep.subr.bf16.mxu1 %v4052_v12  ;;  %v4073_v41 = vld [vmem:[#allocation10 + $0xc0] sm:$0xff]  }
  0x82   : > { %3682 = vmatpush3.bf16.msra.mxu0 %v4037_v5 }
  0x83   : > { %3683 = vmatprep.subr.bf16.mxu0 %v4038_v8 }
  0x84   : > { %3714 = vmatpush3.bf16.msra.mxu1 %v4052_v12 }
  0x85   : > { %3715 = vmatprep.subr.bf16.mxu1 %v4055_v14 }
  0x86   : > { %3684 = vmatpush3.bf16.msra.mxu0 %v4038_v8 }
  0x87   : > { %3685 = vmatprep.subr.bf16.mxu0 %v4039_v11 }
  0x88   : > { %3716 = vmatpush3.bf16.msra.mxu1 %v4055_v14 }
  0x89   : > { %3717 = vmatprep.subr.bf16.mxu1 %v4058_v16 }
  0x8a   : > { %3686 = vmatpush3.bf16.msra.mxu0 %v4039_v11 }
  0x8b   : > { %3687 = vmatprep.subr.bf16.mxu0 %v4040_v13 }
  0x8c   : > { %3718 = vmatpush3.bf16.msra.mxu1 %v4058_v16 }
  0x8d   : > { %3719 = vmatprep.subr.bf16.mxu1 %v4061_v18 }
  0x8e   : > { %3688 = vmatpush3.bf16.msra.mxu0 %v4040_v13 }
  0x8f   : > { %3689 = vmatprep.subr.bf16.mxu0 %v4041_v15 }
  0x90   : > { %3720 = vmatpush3.bf16.msra.mxu1 %v4061_v18 }
  0x91   : > { %3721 = vmatprep.subr.bf16.mxu1 %v4064_v22 }
  0x92   : > { %3690 = vmatpush3.bf16.msra.mxu0 %v4041_v15 }
  0x93   : > { %3739 = vmatprep.subr.bf16.mxu0 %v4045_v17 }
  0x94   : > { %3722 = vmatpush3.bf16.msra.mxu1 %v4064_v22 }
  0x95   : > { %3692 = vmatmul.mubr.bf16.vlgmr.msra.gmra.mxu0 %v4858_v19  ;;  %3771 = vmatprep.subr.bf16.mxu1 %v4066_v24 }
  0x96   : > { %3740 = vmatpush3.bf16.msra.mxu0 %v4045_v17  ;;  %3695 = vmatprep.mubr.bf16.mxu0 %v4860_v20 }
  0x97   : > { %3741 = vmatprep.subr.bf16.mxu0 %v4047_v21  ;;  %3724 = vmatmul.mubr.bf16.vlgmr.msra.gmra.mxu1 %v4858_v19 }
  0x98   : > { %3772 = vmatpush3.bf16.msra.mxu1 %v4066_v24  ;;  %3727 = vmatprep.mubr.bf16.mxu1 %v4860_v20 }
  0x99   : > { %3773 = vmatprep.subr.bf16.mxu1 %v4067_v28 }
  0x9a   : > { %3742 = vmatpush3.bf16.msra.mxu0 %v4047_v21 }
  0x9b   : > { %3743 = vmatprep.subr.bf16.mxu0 %v4051_v23 }
  0x9c   : > { %3774 = vmatpush3.bf16.msra.mxu1 %v4067_v28 }
  0x9d   : > { %3696 = vmatmul.mubr.bf16.gmra.mxu0 %v4864_v25  ;;  %3775 = vmatprep.subr.bf16.mxu1 %v4068_v31 }
  0x9e   : > { %3744 = vmatpush3.bf16.msra.mxu0 %v4051_v23  ;;  %3699 = vmatprep.mubr.bf16.mxu0 %v4866_v26 }
  0x9f   : > { %3745 = vmatprep.subr.bf16.mxu0 %v4053_v27  ;;  %3728 = vmatmul.mubr.bf16.gmra.mxu1 %v4864_v25 }
  0xa0   : > { %3776 = vmatpush3.bf16.msra.mxu1 %v4068_v31  ;;  %3731 = vmatprep.mubr.bf16.mxu1 %v4866_v26 }
  0xa1   : > { %3777 = vmatprep.subr.bf16.mxu1 %v4069_v34 }
  0xa2   : > { %3746 = vmatpush3.bf16.msra.mxu0 %v4053_v27 }
  0xa3   : > { %3747 = vmatprep.subr.bf16.mxu0 %v4057_v29 }
  0xa4   : > { %3778 = vmatpush3.bf16.msra.mxu1 %v4069_v34 }
  0xa5   : > { %3700 = vmatmul.mubr.bf16.gmra.mxu0 %v4056_v30  ;;  %3779 = vmatprep.subr.bf16.mxu1 %v4070_v37 }
  0xa6   : > { %3748 = vmatpush3.bf16.msra.mxu0 %v4057_v29  ;;  %3703 = vmatprep.mubr.bf16.mxu0 %v4060_v32 }
  0xa7   : > { %3749 = vmatprep.subr.bf16.mxu0 %v4059_v33  ;;  %3732 = vmatmul.mubr.bf16.gmra.mxu1 %v4056_v30 }
  0xa8   : > { %3780 = vmatpush3.bf16.msra.mxu1 %v4070_v37  ;;  %3735 = vmatprep.mubr.bf16.mxu1 %v4060_v32 }
  0xa9   : > { %3781 = vmatprep.subr.bf16.mxu1 %v4071_v39 }
  0xaa   : > { %3750 = vmatpush3.bf16.msra.mxu0 %v4059_v33 }
  0xab   : > { %3751 = vmatprep.subr.bf16.mxu0 %v4063_v35 }
  0xac   : > { %3782 = vmatpush3.bf16.msra.mxu1 %v4071_v39 }
  0xad   : > { %3704 = vmatmul.mubr.bf16.gmra.mxu0 %v4062_v36  ;;  %3783 = vmatprep.subr.bf16.mxu1 %v4072_v40 }
  0xae   : > { %3752 = vmatpush3.bf16.msra.mxu0 %v4063_v35  ;;  %3755 = vmatprep.mubr.bf16.mxu0 %v4854_v6 }
  0xaf   : > { %3753 = vmatprep.subr.bf16.mxu0 %v4065_v38  ;;  %3736 = vmatmul.mubr.bf16.gmra.mxu1 %v4062_v36 }
  0xb0   : > { %3784 = vmatpush3.bf16.msra.mxu1 %v4072_v40  ;;  %3787 = vmatprep.mubr.bf16.mxu1 %v4854_v6 }
  0xb1   : > { %3785 = vmatprep.subr.bf16.mxu1 %v4073_v41 }
  0xb2   : > { %3754 = vmatpush3.bf16.msra.mxu0 %v4065_v38 }
  0xb4   : > { %3786 = vmatpush3.bf16.msra.mxu1 %v4073_v41 }
  0xb5   : > { %3756 = vmatmul.mubr.bf16.vlgmr.msra.gmra.mxu0 %v4858_v19 }
  0xb6   : > { %3759 = vmatprep.mubr.bf16.mxu0 %v4860_v20 }
  0xb7   : > { %3788 = vmatmul.mubr.bf16.vlgmr.msra.gmra.mxu1 %v4858_v19 }
  0xb8   : > { %3791 = vmatprep.mubr.bf16.mxu1 %v4860_v20 }
  0xbd   : > { %3760 = vmatmul.mubr.bf16.gmra.mxu0 %v4864_v25 }
  0xbe   : > { %3763 = vmatprep.mubr.bf16.mxu0 %v4866_v26 }
  0xbf   : > { %3792 = vmatmul.mubr.bf16.gmra.mxu1 %v4864_v25 }
  0xc0   : > { %3795 = vmatprep.mubr.bf16.mxu1 %v4866_v26 }
  0xc5   : > { %3764 = vmatmul.mubr.bf16.gmra.mxu0 %v4056_v30 }
  0xc6   : > { %3767 = vmatprep.mubr.bf16.mxu0 %v4060_v32 }
  0xc7   : > { %3796 = vmatmul.mubr.bf16.gmra.mxu1 %v4056_v30 }
  0xc8   : > { %3799 = vmatprep.mubr.bf16.mxu1 %v4060_v32 }
  0xcd   : > { %3768 = vmatmul.mubr.bf16.gmra.mxu0 %v4062_v36 }
  0xcf   : > { %3800 = vmatmul.mubr.bf16.gmra.mxu1 %v4062_v36 }
 0x155   : > { %v3693_v46 = vpop.f32.mrf.mxu0 }
 0x156   : > { %v487_v47 = vadd.f32 %v3693_v46, %v4890_v45 }
 0x157   : > { %v478_v48 = vpop.f32.mrf.mxu0  ;;  %v4897_v61 = vpop.f32.mrf.mxu1 }
 0x158   : > { %v2929_v49 = vmul.f32 -1.442695, %v487_v47  ;;  %v479_v50 = vadd.f32 %v478_v48, %v4890_v45 }
 0x159   : > { %v3694_v51 = vpop.f32.mrf.mxu0  ;;  %v4900_v3 = vpop.f32.mrf.mxu1 }
 0x15a   : > { %4074 = vpow2.f32 %v2929_v49  ;;  %v2927_v52 = vmul.f32 -1.442695, %v479_v50  ;;  %v490_v53 = vadd.f32 %v3694_v51, %v4890_v45  ;;  %v4927_v49 = vrot.slane %v4851_v1, %v346_v44 }
 0x15b   : > { %v481_v54 = vpop.f32.mrf.mxu0  ;;  %v4903_v7 = vpop.f32.mrf.mxu1 }
 0x15c   : > { %4076 = vpow2.f32 %v2927_v52  ;;  %v2930_v55 = vmul.f32 -1.442695, %v490_v53  ;;  %v482_v56 = vadd.f32 %v481_v54, %v4890_v45 }
 0x15d   : > { %v3697_v57 = vpop.f32.mrf.mxu0  ;;  %v4906_v11 = vpop.f32.mrf.mxu1 }
 0x15e   : > { %4078 = vpow2.f32 %v2930_v55  ;;  %v2928_v58 = vmul.f32 -1.442695, %v482_v56  ;;  %v503_v59 = vadd.f32 %v3697_v57, %v4890_v45 }
 0x15f   : > { %v494_v60 = vpop.f32.mrf.mxu0  ;;  %v4909_v16 = vpop.f32.mrf.mxu1 }
 0x160   : > { %4080 = vpow2.f32 %v2928_v58  ;;  %v2933_v62 = vmul.f32 -1.442695, %v503_v59  ;;  %v495_v63 = vadd.f32 %v494_v60, %v4890_v45 }
 0x161   : > { %v3698_v2 = vpop.f32.mrf.mxu0  ;;  %v4912_v22 = vpop.f32.mrf.mxu1 }
 0x162   : > { %4082 = vpow2.f32 %v2933_v62  ;;  %v2931_v4 = vmul.f32 -1.442695, %v495_v63  ;;  %v506_v5 = vadd.f32 %v3698_v2, %v4890_v45 }
 0x163   : > { %v497_v6 = vpop.f32.mrf.mxu0  ;;  %v4915_v28 = vpop.f32.mrf.mxu1 }
 0x164   : > { %4084 = vpow2.f32 %v2931_v4  ;;  %v2934_v8 = vmul.f32 -1.442695, %v506_v5  ;;  %v498_v9 = vadd.f32 %v497_v6, %v4890_v45 }
 0x165   : > { %v3701_v10 = vpop.f32.mrf.mxu0  ;;  %v4918_v34 = vpop.f32.mrf.mxu1 }
 0x166   : > { %4086 = vpow2.f32 %v2934_v8  ;;  %v2932_v12 = vmul.f32 -1.442695, %v498_v9  ;;  %v519_v13 = vadd.f32 %v3701_v10, %v4890_v45 }
 0x167   : > { %v4075_v14 = vpop.eup %4074  ;;  %v510_v15 = vpop.f32.mrf.mxu0 }
 0x168   : > { %v591_v17 = vadd.f32 1.0, %v4075_v14  ;;  %4088 = vpow2.f32 %v2932_v12  ;;  %v2937_v18 = vmul.f32 -1.442695, %v519_v13  ;;  %v511_v19 = vadd.f32 %v510_v15, %v4890_v45  ;;  %v4921_v40 = vpop.f32.mrf.mxu1 }
 0x169   : > { %v4077_v20 = vpop.eup %4076  ;;  %v3702_v21 = vpop.f32.mrf.mxu0 }
 0x16a   : > { %4090 = vrcp.f32 %v591_v17  ;;  %v589_v23 = vadd.f32 1.0, %v4077_v20  ;;  %v2935_v24 = vmul.f32 -1.442695, %v511_v19  ;;  %v522_v25 = vadd.f32 %v3702_v21, %v4890_v45  ;;  %v4929_v50 = vpop.f32.mrf.mxu1 }
 0x16b   : > { %v4079_v26 = vpop.eup %4078  ;;  %4092 = vpow2.f32 %v2937_v18  ;;  %v513_v27 = vpop.f32.mrf.mxu0 }
 0x16c   : > { %4094 = vrcp.f32 %v589_v23  ;;  %v592_v29 = vadd.f32 1.0, %v4079_v26  ;;  %v2938_v30 = vmul.f32 -1.442695, %v522_v25  ;;  %v514_v31 = vadd.f32 %v513_v27, %v4890_v45  ;;  %v4932_v56 = vpop.f32.mrf.mxu1 }
 0x16d   : > { %v4081_v32 = vpop.eup %4080  ;;  %4096 = vpow2.f32 %v2935_v24  ;;  %v3705_v33 = vpop.f32.mrf.mxu0 }
 0x16e   : > { %4098 = vrcp.f32 %v592_v29  ;;  %v590_v35 = vadd.f32 1.0, %v4081_v32  ;;  %v2936_v36 = vmul.f32 -1.442695, %v514_v31  ;;  %v535_v37 = vadd.f32 %v3705_v33, %v4890_v45  ;;  %v4935_v60 = vpop.f32.mrf.mxu1 }
 0x16f   : > { %v4083_v38 = vpop.eup %4082  ;;  %4100 = vpow2.f32 %v2938_v30  ;;  %v526_v39 = vpop.f32.mrf.mxu0 }
 0x170   : > { %4102 = vrcp.f32 %v590_v35  ;;  %v595_v41 = vadd.f32 1.0, %v4083_v38  ;;  %v2941_v42 = vmul.f32 -1.442695, %v535_v37  ;;  %v527_v46 = vadd.f32 %v526_v39, %v4890_v45  ;;  %v4938_v6 = vpop.f32.mrf.mxu1 }
 0x171   : > { %v4085_v47 = vpop.eup %4084  ;;  %4104 = vpow2.f32 %v2936_v36  ;;  %v3706_v48 = vpop.f32.mrf.mxu0 }
 0x172   : > { %4106 = vrcp.f32 %v595_v41  ;;  %v593_v51 = vadd.f32 1.0, %v4085_v47  ;;  %v2939_v52 = vmul.f32 -1.442695, %v527_v46  ;;  %v538_v53 = vadd.f32 %v3706_v48, %v4890_v45  ;;  %v4941_v15 = vpop.f32.mrf.mxu1 }
 0x173   : > { %v4087_v54 = vpop.eup %4086  ;;  %4108 = vpow2.f32 %v2941_v42  ;;  %v529_v55 = vpop.f32.mrf.mxu0 }
 0x174   : > { %4110 = vrcp.f32 %v593_v51  ;;  %v596_v57 = vadd.f32 1.0, %v4087_v54  ;;  %v2942_v58 = vmul.f32 -1.442695, %v538_v53  ;;  %v530_v43 = vadd.f32 %v529_v55, %v4890_v45  ;;  %v4945_v26 = vpop.f32.mrf.mxu1 }
 0x175   : > { %v4089_v59 = vpop.eup %4088  ;;  %4112 = vpow2.f32 %v2939_v52  ;;  %v3757_v44 = vpop.f32.mrf.mxu0 }
 0x176   : > { %4114 = vrcp.f32 %v596_v57  ;;  %v594_v62 = vadd.f32 1.0, %v4089_v59  ;;  %v2940_v63 = vmul.f32 -1.442695, %v530_v43  ;;  %v974_v2 = vadd.f32 %v3757_v44, %v4927_v49  ;;  %v4949_v36 = vpop.f32.mrf.mxu1 }
 0x177   : > { %v4091_v4 = vpop.eup %4090  ;;  %4116 = vpow2.f32 %v2942_v58  ;;  %v965_v5 = vpop.f32.mrf.mxu0 }
 0x178   : > { %v4093_v8 = vpop.eup %4092  ;;  %639 = vst [vmem:[#allocation3 + $0x58] sm:$0xff] %v4091_v4  ;;  %4118 = vrcp.f32 %v594_v62  ;;  %v655_v9 = vsub.f32 1.0, %v4091_v4  ;;  %v2961_v45 = vmul.f32 -1.442695, %v974_v2  ;;  %v966_v10 = vadd.f32 %v965_v5, %v4927_v49  ;;  %v4953_v48 = vpop.f32.mrf.mxu1 }
 0x179   : > { %v4095_v12 = vpop.eup %4094  ;;  %v599_v13 = vadd.f32 1.0, %v4093_v8  ;;  %4120 = vpow2.f32 %v2940_v63  ;;  %v3758_v14 = vpop.f32.mrf.mxu0 }
 0x17a   : > { %v4097_v17 = vpop.eup %4096  ;;  %637 = vst [vmem:[#allocation3 + $0x30] sm:$0xff] %v4095_v12  ;;  %v832_v18 = vmul.f32 %v4897_v61, %v655_v9  ;;  %4122 = vpow2.f32 %v2961_v45  ;;  %v653_v19 = vsub.f32 1.0, %v4095_v12  ;;  %v2959_v20 = vmul.f32 -1.442695, %v966_v10  ;;  %v4957_v43 = vpop.f32.mrf.mxu1 }
 0x17b   : > { %v4099_v21 = vpop.eup %4098  ;;  %4124 = vrcp.f32 %v599_v13  ;;  %v597_v23 = vadd.f32 1.0, %v4097_v17  ;;  %v977_v24 = vadd.f32 %v3758_v14, %v4927_v49  ;;  %v968_v25 = vpop.f32.mrf.mxu0 }
 0x17c   : > { %v4101_v27 = vpop.eup %4100  ;;  %640 = vst [vmem:[#allocation3 + $0x18] sm:$0xff] %v4099_v21  ;;  %848 = vst [vmem:[#allocation4 + $0x10] sm:$0xff] %v832_v18  ;;  %v830_v29 = vmul.f32 %v4900_v3, %v653_v19  ;;  %4126 = vpow2.f32 %v2959_v20  ;;  %v656_v30 = vsub.f32 1.0, %v4099_v21  ;;  %v969_v61 = vadd.f32 %v968_v25, %v4927_v49  ;;  %v4962_v12 = vpop.f32.mrf.mxu1 }
 0x17d   : > { %v4103_v31 = vpop.eup %4102  ;;  %4128 = vrcp.f32 %v597_v23  ;;  %v600_v32 = vadd.f32 1.0, %v4101_v27  ;;  %v2962_v33 = vmul.f32 -1.442695, %v977_v24  ;;  %v3761_v35 = vpop.f32.mrf.mxu0 }
 0x17e   : > { %v4105_v37 = vpop.eup %4104  ;;  %638 = vst [vmem:[#allocation3] sm:$0xff] %v4103_v31  ;;  %846 = vst [vmem:[#allocation4 + $0x28] sm:$0xff] %v830_v29  ;;  %v833_v38 = vmul.f32 %v4903_v7, %v656_v30  ;;  %v654_v39 = vsub.f32 1.0, %v4103_v31  ;;  %v2960_v41 = vmul.f32 -1.442695, %v969_v61  ;;  %v990_v3 = vadd.f32 %v3761_v35, %v4927_v49  ;;  %v4968_v61 = vpop.f32.mrf.mxu1 }
 0x17f   : > { %v4107_v42 = vpop.eup %4106  ;;  %4130 = vrcp.f32 %v600_v32  ;;  %v598_v46 = vadd.f32 1.0, %v4105_v37  ;;  %v981_v47 = vpop.f32.mrf.mxu0 }
 0x180   : > { %v4109_v51 = vpop.eup %4108  ;;  %643 = vst [vmem:[#allocation3 + $0x8] sm:$0xff] %v4107_v42  ;;  %849 = vst [vmem:[#allocation4 + $0x40] sm:$0xff] %v833_v38  ;;  %4132 = vpow2.f32 %v2962_v33  ;;  %v831_v52 = vmul.f32 %v4906_v11, %v654_v39  ;;  %v659_v53 = vsub.f32 1.0, %v4107_v42  ;;  %v2965_v54 = vmul.f32 -1.442695, %v990_v3 }
 0x181   : > { %v4111_v55 = vpop.eup %4110  ;;  %4134 = vrcp.f32 %v598_v46  ;;  %v603_v7 = vadd.f32 1.0, %v4109_v51  ;;  %v982_v57 = vadd.f32 %v981_v47, %v4927_v49  ;;  %v3762_v58 = vpop.f32.mrf.mxu0 }
 0x182   : > { %v4113_v59 = vpop.eup %4112  ;;  %641 = vst [vmem:[#allocation3 + $0x50] sm:$0xff] %v4111_v55  ;;  %847 = vst [vmem:[#allocation4 + $0x68] sm:$0xff] %v831_v52  ;;  %4136 = vpow2.f32 %v2960_v41  ;;  %v836_v44 = vmul.f32 %v4909_v16, %v659_v53  ;;  %v657_v62 = vsub.f32 1.0, %v4111_v55  ;;  %v993_v63 = vadd.f32 %v3762_v58, %v4927_v49  ;;  %v4974_v52 = vpop.f32.mrf.mxu1 }
 0x183   : > { %v4115_v11 = vpop.eup %4114  ;;  %4138 = vrcp.f32 %v603_v7  ;;  %v601_v2 = vadd.f32 1.0, %v4113_v59  ;;  %v2963_v4 = vmul.f32 -1.442695, %v982_v57  ;;  %v984_v5 = vpop.f32.mrf.mxu0 }
 0x184   : > { %v4117_v8 = vpop.eup %4116  ;;  %644 = vst [vmem:[#allocation3 + $0x48] sm:$0xff] %v4115_v11  ;;  %852 = vst [vmem:[#allocation4 + $0x70] sm:$0xff] %v836_v44  ;;  %4140 = vpow2.f32 %v2965_v54  ;;  %v834_v9 = vmul.f32 %v4912_v22, %v657_v62  ;;  %v660_v45 = vsub.f32 1.0, %v4115_v11  ;;  %v2966_v10 = vmul.f32 -1.442695, %v993_v63 }
 0x185   : > { %v4119_v13 = vpop.eup %4118  ;;  %4142 = vrcp.f32 %v601_v2  ;;  %v604_v16 = vadd.f32 1.0, %v4117_v8  ;;  %v985_v14 = vadd.f32 %v984_v5, %v4927_v49  ;;  %v3765_v17 = vpop.f32.mrf.mxu0 }
 0x186   : > { %v4121_v18 = vpop.eup %4120  ;;  %642 = vst [vmem:[#allocation3 + $0x68] sm:$0xff] %v4119_v13  ;;  %850 = vst [vmem:[#allocation4 + $0x48] sm:$0xff] %v834_v9  ;;  %4144 = vpow2.f32 %v2963_v4  ;;  %v837_v19 = vmul.f32 %v4915_v28, %v660_v45  ;;  %v658_v20 = vsub.f32 1.0, %v4119_v13  ;;  %v1006_v21 = vadd.f32 %v3765_v17, %v4927_v49  ;;  %v4980_v8 = vpop.f32.mrf.mxu1 }
 0x187   : > { %v4123_v22 = vpop.eup %4122  ;;  %4146 = vrcp.f32 %v604_v16  ;;  %v602_v23 = vadd.f32 1.0, %v4121_v18  ;;  %v2964_v24 = vmul.f32 -1.442695, %v985_v14  ;;  %v997_v25 = vpop.f32.mrf.mxu0 }
 0x188   : > { %v4125_v27 = vpop.eup %4124  ;;  %v1078_v29 = vadd.f32 1.0, %v4123_v22  ;;  %853 = vst [vmem:[#allocation4 + $0x38] sm:$0xff] %v837_v19  ;;  %4148 = vpow2.f32 %v2966_v10  ;;  %v835_v30 = vmul.f32 %v4918_v34, %v658_v20  ;;  %v2969_v32 = vmul.f32 -1.442695, %v1006_v21 }
 0x189   : > { %v4127_v31 = vpop.eup %4126  ;;  %647 = vst [vmem:[#allocation3 + $0x10] sm:$0xff] %v4125_v27  ;;  %4150 = vrcp.f32 %v602_v23  ;;  %v663_v28 = vsub.f32 1.0, %v4125_v27  ;;  %v998_v33 = vadd.f32 %v997_v25, %v4927_v49  ;;  %v3766_v35 = vpop.f32.mrf.mxu0 }
 0x18a   : > { %v4129_v37 = vpop.eup %4128  ;;  %4152 = vrcp.f32 %v1078_v29  ;;  %v1076_v38 = vadd.f32 1.0, %v4127_v31  ;;  %851 = vst [vmem:[#allocation4 + $0x30] sm:$0xff] %v835_v30  ;;  %v1009_v39 = vadd.f32 %v3766_v35, %v4927_v49  ;;  %v4986_v25 = vpop.f32.mrf.mxu1 }
 0x18b   : > { %645 = vst [vmem:[#allocation3 + $0x40] sm:$0xff] %v4129_v37  ;;  %4154 = vpow2.f32 %v2964_v24  ;;  %v840_v34 = vmul.f32 %v4921_v40, %v663_v28  ;;  %v661_v41 = vsub.f32 1.0, %v4129_v37  ;;  %v2967_v3 = vmul.f32 -1.442695, %v998_v33  ;;  %v1000_v42 = vpop.f32.mrf.mxu0 }
 0x18c   : > { %v4131_v46 = vpop.eup %4130  ;;  %4156 = vrcp.f32 %v1076_v38  ;;  %v2970_v47 = vmul.f32 -1.442695, %v1009_v39  ;;  %v1001_v51 = vadd.f32 %v1000_v42, %v4927_v49  ;;  %v4990_v37 = vpop.f32.mrf.mxu1 }
 0x18d   : > { %v4133_v53 = vpop.eup %4132  ;;  %648 = vst [vmem:[#allocation3 + $0x38] sm:$0xff] %v4131_v46  ;;  %856 = vst [vmem:[#allocation4 + $0x18] sm:$0xff] %v840_v34  ;;  %4158 = vpow2.f32 %v2969_v32  ;;  %v838_v54 = vmul.f32 %v4929_v50, %v661_v41  ;;  %v664_v55 = vsub.f32 1.0, %v4131_v46  ;;  %v3769_v7 = vpop.f32.mrf.mxu0 }
 0x18e   : > { %v4135_v57 = vpop.eup %4134  ;;  %v1079_v40 = vadd.f32 1.0, %v4133_v53  ;;  %4160 = vpow2.f32 %v2967_v3  ;;  %v2968_v58 = vmul.f32 -1.442695, %v1001_v51  ;;  %v1022_v59 = vadd.f32 %v3769_v7, %v4927_v49 }
 0x18f   : > { %v4137_v44 = vpop.eup %4136  ;;  %646 = vst [vmem:[#allocation3 + $0x20] sm:$0xff] %v4135_v57  ;;  %854 = vst [vmem:[#allocation4 + $0x20] sm:$0xff] %v838_v54  ;;  %v841_v62 = vmul.f32 %v4932_v56, %v664_v55  ;;  %4162 = vpow2.f32 %v2970_v47  ;;  %v662_v63 = vsub.f32 1.0, %v4135_v57  ;;  %v1013_v11 = vpop.f32.mrf.mxu0 }
 0x190   : > { %v4139_v2 = vpop.eup %4138  ;;  %4164 = vrcp.f32 %v1079_v40  ;;  %v1077_v4 = vadd.f32 1.0, %v4137_v44  ;;  %v2973_v50 = vmul.f32 -1.442695, %v1022_v59  ;;  %v1014_v5 = vadd.f32 %v1013_v11, %v4927_v49  ;;  %v4993_v47 = vpop.f32.mrf.mxu1 }
 0x191   : > { %v4141_v9 = vpop.eup %4140  ;;  %651 = vst [vmem:[#allocation3 + $0x78] sm:$0xff] %v4139_v2  ;;  %857 = vst [vmem:[#allocation4 + $0x58] sm:$0xff] %v841_v62  ;;  %v839_v45 = vmul.f32 %v4935_v60, %v662_v63  ;;  %4166 = vpow2.f32 %v2968_v58  ;;  %v667_v10 = vsub.f32 1.0, %v4139_v2  ;;  %v3770_v13 = vpop.f32.mrf.mxu0 }
 0x192   : > { %v4143_v56 = vpop.eup %4142  ;;  %4168 = vrcp.f32 %v1077_v4  ;;  %v1082_v16 = vadd.f32 1.0, %v4141_v9  ;;  %v2971_v14 = vmul.f32 -1.442695, %v1014_v5  ;;  %v1025_v17 = vadd.f32 %v3770_v13, %v4927_v49  ;;  %v1335_v11 = vpop.f32.mrf.mxu1 }
 0x193   : > { %v4145_v18 = vpop.eup %4144  ;;  %649 = vst [vmem:[#allocation3 + $0x60] sm:$0xff] %v4143_v56  ;;  %855 = vst [vmem:[#allocation4 + $0x78] sm:$0xff] %v839_v45  ;;  %v844_v19 = vmul.f32 %v4938_v6, %v667_v10  ;;  %4170 = vpow2.f32 %v2973_v50  ;;  %v665_v20 = vsub.f32 1.0, %v4143_v56  ;;  %v1016_v21 = vpop.f32.mrf.mxu0 }
 0x194   : > { %v4147_v22 = vpop.eup %4146  ;;  %4172 = vrcp.f32 %v1082_v16  ;;  %v1080_v60 = vadd.f32 1.0, %v4145_v18  ;;  %v2974_v23 = vmul.f32 -1.442695, %v1025_v17  ;;  %v1017_v24 = vadd.f32 %v1016_v21, %v4927_v49 }
 0x195   : > { %v4149_v27 = vpop.eup %4148  ;;  %652 = vst [vmem:[#allocation3 + $0x28] sm:$0xff] %v4147_v22  ;;  %860 = vst [vmem:[#allocation4 + $0x60] sm:$0xff] %v844_v19  ;;  %v842_v29 = vmul.f32 %v4941_v15, %v665_v20  ;;  %4174 = vpow2.f32 %v2971_v14  ;;  %v668_v30 = vsub.f32 1.0, %v4147_v22 }
 0x196   : > { %v4151_v31 = vpop.eup %4150  ;;  %4176 = vrcp.f32 %v1080_v60  ;;  %v1083_v6 = vadd.f32 1.0, %v4149_v27  ;;  %v2972_v28 = vmul.f32 -1.442695, %v1017_v24 }
 0x197   : > { %v4153_v32 = vpop.eup %4152  ;;  %650 = vst [vmem:[#allocation3 + $0x70] sm:$0xff] %v4151_v31  ;;  %858 = vst [vmem:[#allocation4] sm:$0xff] %v842_v29  ;;  %v845_v33 = vmul.f32 %v4945_v26, %v668_v30  ;;  %4178 = vpow2.f32 %v2974_v23  ;;  %v666_v49 = vsub.f32 1.0, %v4151_v31 }
 0x198   : > { %v4155_v35 = vpop.eup %4154  ;;  %4180 = vrcp.f32 %v1083_v6  ;;  %v1368_v26 = vsub.f32 1.0, %v4153_v32 }
 0x199   : > { %v4157_v38 = vpop.eup %4156  ;;  %v1081_v39 = vadd.f32 1.0, %v4155_v35  ;;  %861 = vst [vmem:[#allocation4 + $0x50] sm:$0xff] %v845_v33  ;;  %v843_v15 = vmul.f32 %v4949_v36, %v666_v49  ;;  %4182 = vpow2.f32 %v2972_v28 }
 0x19a   : > { %v4159_v34 = vpop.eup %4158  ;;  %v1366_v7 = vsub.f32 1.0, %v4157_v38  ;;  %v1384_v44 = vmul.f32 %v4953_v48, %v1368_v26 }
 0x19b   : > { %v4161_v41 = vpop.eup %4160  ;;  %4184 = vrcp.f32 %v1081_v39  ;;  %v1086_v3 = vadd.f32 1.0, %v4159_v34  ;;  %859 = vst [vmem:[#allocation4 + $0x8] sm:$0xff] %v843_v15 }
 0x19c   : > { %v4163_v42 = vpop.eup %4162  ;;  %v1084_v46 = vadd.f32 1.0, %v4161_v41  ;;  %v1382_v5 = vmul.f32 %v1366_v7, %v4957_v43 }
 0x19d   : > { %v4165_v51 = vpop.eup %4164  ;;  %4186 = vrcp.f32 %v1086_v3  ;;  %v1087_v53 = vadd.f32 1.0, %v4163_v42 }
 0x19e   : > { %v4167_v54 = vpop.eup %4166  ;;  %v3253_v55 = vpack.c.bf16 %v4165_v51, %v4153_v32  ;;  %4188 = vrcp.f32 %v1084_v46  ;;  %v1369_v57 = vsub.f32 1.0, %v4165_v51 }
 0x19f   : > { %v4169_v36 = vpop.eup %4168  ;;  %4190 = vrcp.f32 %v1087_v53  ;;  %v1085_v40 = vadd.f32 1.0, %v4167_v54 }
 0x1a0   : > { %v4171_v58 = vpop.eup %4170  ;;  %3513 = vst [vmem:[#allocation5] sm:$0xff] %v3253_v55   ;;  %v3248_v59 = vpack.c.bf16 %v4169_v36, %v4157_v38  ;;  %v1385_v62 = vmul.f32 %v4962_v12, %v1369_v57  ;;  %v1367_v63 = vsub.f32 1.0, %v4169_v36  ;;  %v3798_v12 = vpop.f32.mrf.mxu1 }
 0x1a1   : > { %v4173_v2 = vpop.eup %4172  ;;  %4192 = vrcp.f32 %v1085_v40  ;;  %v1090_v4 = vadd.f32 1.0, %v4171_v58 }
 0x1a2   : > { %v4175_v50 = vpop.eup %4174  ;;  %3249 = vst [vmem:[#allocation5 + $0x8] sm:$0xff] %v3248_v59   ;;  %v3293_v9 = vpack.c.bf16 %v1385_v62, %v1384_v44  ;;  %v1383_v45 = vmul.f32 %v1367_v63, %v4968_v61  ;;  %v1372_v16 = vsub.f32 1.0, %v4173_v2  ;;  %v1338_v23 = vpop.f32.mrf.mxu1 }
 0x1a3   : > { %v4177_v10 = vpop.eup %4176  ;;  %4194 = vrcp.f32 %v1090_v4  ;;  %v1088_v13 = vadd.f32 1.0, %v4175_v50 }
 0x1a4   : > { %v4179_v56 = vpop.eup %4178  ;;  %3520 = vst [vmem:[#allocation6 + $0x8] sm:$0xff] %v3293_v9   ;;  %v3288_v48 = vpack.c.bf16 %v1383_v45, %v1382_v5  ;;  %v1370_v21 = vsub.f32 1.0, %v4177_v10  ;;  %v1388_v61 = vmul.f32 %v4974_v52, %v1372_v16  ;;  %v3801_v49 = vpop.f32.mrf.mxu1 }
 0x1a5   : > { %v4181_v14 = vpop.eup %4180  ;;  %4196 = vrcp.f32 %v1088_v13  ;;  %v1091_v17 = vadd.f32 1.0, %v4179_v56 }
 0x1a6   : > { %v4183_v18 = vpop.eup %4182  ;;  %v3263_v19 = vpack.c.bf16 %v4181_v14, %v4173_v2  ;;  %3289 = vst [vmem:[#allocation6 + $0x18] sm:$0xff] %v3288_v48   ;;  %v1373_v20 = vsub.f32 1.0, %v4181_v14  ;;  %v1386_v6 = vmul.f32 %v1370_v21, %v4980_v8  ;;  %v1351_v8 = vpop.f32.mrf.mxu1 }
 0x1a7   : > { %4198 = vrcp.f32 %v1091_v17  ;;  %v1089_v43 = vadd.f32 1.0, %v4183_v18 }
 0x1a8   : > { %v4185_v22 = vpop.eup %4184  ;;  %3515 = vst [vmem:[#allocation5 + $0x20] sm:$0xff] %v3263_v19   ;;  %v1389_v60 = vmul.f32 %v4986_v25, %v1373_v20  ;;  %v3802_v7 = vpop.f32.mrf.mxu1 }
 0x1a9   : > { %v3258_v24 = vpack.c.bf16 %v4185_v22, %v4177_v10  ;;  %4200 = vrcp.f32 %v1089_v43  ;;  %v1371_v27 = vsub.f32 1.0, %v4185_v22 }
 0x1aa   : > { %v4187_v29 = vpop.eup %4186  ;;  %v3303_v30 = vpack.c.bf16 %v1389_v60, %v1388_v61  ;;  %v1354_v63 = vpop.f32.mrf.mxu1 }
 0x1ab   : > { %v4189_v31 = vpop.eup %4188  ;;  %3514 = vst [vmem:[#allocation5 + $0x18] sm:$0xff] %v3258_v24   ;;  %v1387_v28 = vmul.f32 %v1371_v27, %v4990_v37  ;;  %v1376_v32 = vsub.f32 1.0, %v4187_v29 }
 0x1ac   : > { %v4191_v33 = vpop.eup %4190  ;;  %3522 = vst [vmem:[#allocation6 + $0x30] sm:$0xff] %v3303_v30   ;;  %v1374_v38 = vsub.f32 1.0, %v4189_v31 }
 0x1ad   : > { %v3273_v35 = vpack.c.bf16 %v4191_v33, %v4187_v29  ;;  %v3298_v52 = vpack.c.bf16 %v1387_v28, %v1386_v6  ;;  %v1377_v25 = vsub.f32 1.0, %v4191_v33  ;;  %v1392_v34 = vmul.f32 %v4993_v47, %v1376_v32 }
 0x1ae   : > { %v4193_v39 = vpop.eup %4192  ;;  %v1390_v37 = vmul.f32 %v1374_v38, %v1335_v11 }
 0x1af   : > { %3517 = vst [vmem:[#allocation5 + $0x28] sm:$0xff] %v3273_v35   ;;  %v3268_v15 = vpack.c.bf16 %v4193_v39, %v4189_v31  ;;  %3521 = vst [vmem:[#allocation6 + $0x10] sm:$0xff] %v3298_v52   ;;  %v1393_v41 = vmul.f32 %v3798_v12, %v1377_v25  ;;  %v1375_v3 = vsub.f32 1.0, %v4193_v39 }
 0x1b0   : > { %v4195_v42 = vpop.eup %4194 }
 0x1b1   : > { %3516 = vst [vmem:[#allocation5 + $0x38] sm:$0xff] %v3268_v15   ;;  %v3313_v46 = vpack.c.bf16 %v1393_v41, %v1392_v34  ;;  %v1391_v26 = vmul.f32 %v1375_v3, %v1338_v23  ;;  %v1380_v54 = vsub.f32 1.0, %v4195_v42 }
 0x1b2   : > { %v4197_v51 = vpop.eup %4196 }
 0x1b3   : > { %3524 = vst [vmem:[#allocation6] sm:$0xff] %v3313_v46   ;;  %v3308_v53 = vpack.c.bf16 %v1391_v26, %v1390_v37  ;;  %v1378_v36 = vsub.f32 1.0, %v4197_v51  ;;  %v1396_v59 = vmul.f32 %v3801_v49, %v1380_v54 }
 0x1b4   : > { %v4199_v55 = vpop.eup %4198 }
 0x1b5   : > { %v3283_v57 = vpack.c.bf16 %v4199_v55, %v4195_v42  ;;  %3523 = vst [vmem:[#allocation6 + $0x20] sm:$0xff] %v3308_v53   ;;  %v1381_v40 = vsub.f32 1.0, %v4199_v55  ;;  %v1394_v11 = vmul.f32 %v1378_v36, %v1351_v8 }
 0x1b6   : > { %v4201_v58 = vpop.eup %4200 }
 0x1b7   : > { %3519 = vst [vmem:[#allocation5 + $0x10] sm:$0xff] %v3283_v57   ;;  %v3278_v47 = vpack.c.bf16 %v4201_v58, %v4197_v51  ;;  %v1397_v44 = vmul.f32 %v3802_v7, %v1381_v40  ;;  %v1379_v62 = vsub.f32 1.0, %v4201_v58 }
 0x1b9   : > { %3518 = vst [vmem:[#allocation5 + $0x30] sm:$0xff] %v3278_v47   ;;  %v3323_v2 = vpack.c.bf16 %v1397_v44, %v1396_v59  ;;  %v1395_v4 = vmul.f32 %v1379_v62, %v1354_v63 }
 0x1bb   : > { %3526 = vst [vmem:[#allocation6 + $0x28] sm:$0xff] %v3323_v2   ;;  %v3318_v50 = vpack.c.bf16 %v1395_v4, %v1394_v11 }
 0x1bd   : > { %3525 = vst [vmem:[#allocation6 + $0x38] sm:$0xff] %v3318_v50  }
 0x1be PF: > { %p3015_p4 = scmp.le.s32.totalorder %s4620_s21, 0 }
 0x1c0   : > { %1481 = sbr.rel (%p3015_p4) target bundleno = 783 (0x30f), region = 60 }
 0x1c5   : > { %v4202_v5 = vld [vmem:[%s4838_s11 + $0x78] sm:$0xff]   ;;  %v4204_v45 = vld [vmem:[%s4838_s11 + $0x70] sm:$0xff]   ;;  %v4206_v13 = vld [vmem:[%s4838_s11 + $0x68] sm:$0xff]   ;;  %v1515_v38 = vlaneseq }
 0x1c6   : > { %v4203_v9 = vld [vmem:[%s4838_s11 + $0x38] sm:$0xff]   ;;  %3803 = vmatprep.subr.bf16.mxu0 %v4202_v5  ;;  %v4205_v10 = vld [vmem:[%s4838_s11 + $0x30] sm:$0xff]   ;;  %v4207_v56 = vld [vmem:[%s4838_s11 + $0x28] sm:$0xff]  }
 0x1c7   : > { %3835 = vmatprep.subr.bf16.mxu1 %v4203_v9  ;;  %3804 = vmatpush3.bf16.msra.mxu0 %v4202_v5  ;;  %v4208_v48 = vld [vmem:[%s4838_s11 + $0x60] sm:$0xff]   ;;  %v4210_v12 = vld [vmem:[%s4838_s11 + $0x58] sm:$0xff]   ;;  %v4212_v17 = vld [vmem:[%s4838_s11 + $0x50] sm:$0xff]   ;;  %v5069_v25 = vshrl.u32 %v1515_v38, 7 }
 0x1c8   : > { %3836 = vmatpush3.bf16.msra.mxu1 %v4203_v9  ;;  %3805 = vmatprep.subr.bf16.mxu0 %v4204_v45  ;;  %v4209_v16 = vld [vmem:[%s4838_s11 + $0x20] sm:$0xff]   ;;  %v4211_v14 = vld [vmem:[%s4838_s11 + $0x18] sm:$0xff]   ;;  %v4213_v19 = vld [vmem:[%s4838_s11 + $0x10] sm:$0xff]  }
 0x1c9   : > { %3837 = vmatprep.subr.bf16.mxu1 %v4205_v10  ;;  %v5016_v18 = vld [vmem:[#allocation2] sm:$0xff]   ;;  %v4214_v20 = vld [vmem:[%s4838_s11 + $0x48] sm:$0xff]   ;;  %v4220_v60 = vld [vmem:[%s4838_s11 + $0xb8] sm:$0xff]   ;;  %v1517_v39 = vsub.s32 0, %v5069_v25 }
 0x1ca   : > { %3819 = vmatprep.mubr.bf16.mxu0 %v5016_v18  ;;  %v4215_v43 = vld [vmem:[%s4838_s11 + $0x8] sm:$0xff]   ;;  %3851 = vmatprep.mubr.bf16.mxu1 %v5016_v18  ;;  %v4216_v21 = vld [vmem:[%s4838_s11 + $0x40] sm:$0xff]   ;;  %v5028_v23 = vld [vmem:[#allocation2 + $0x10] sm:$0xff]  }
 0x1cb   : > { %3806 = vmatpush3.bf16.msra.mxu0 %v4204_v45  ;;  %v4217_v22 = vld [vmem:[%s4838_s11] sm:$0xff]   ;;  %v5025_v61 = vld [vmem:[#allocation2 + $0x8] sm:$0xff]   ;;  %v4221_v24 = vld [vmem:[%s4838_s11 + $0xb0] sm:$0xff]   ;;  %v5075_v15 = vrot.slane %v4849_v0, %v1517_v39 }
 0x1cc   : > { %3838 = vmatpush3.bf16.msra.mxu1 %v4205_v10  ;;  %3807 = vmatprep.subr.bf16.mxu0 %v4206_v13  ;;  %v5033_v27 = vld [vmem:[#allocation2 + $0x18] sm:$0xff]   ;;  %v4224_v29 = vld [vmem:[%s4838_s11 + $0xa8] sm:$0xff]   ;;  %v5038_v30 = vld [vmem:[#allocation2 + $0x20] sm:$0xff]  }
 0x1cd   : > { %3839 = vmatprep.subr.bf16.mxu1 %v4207_v56  ;;  %v4225_v31 = vld [vmem:[%s4838_s11 + $0xa0] sm:$0xff]   ;;  %v5043_v6 = vld [vmem:[#allocation2 + $0x28] sm:$0xff]   ;;  %v4228_v28 = vld [vmem:[%s4838_s11 + $0x98] sm:$0xff]  }
 0x1ce   : > { %v5048_v32 = vld [vmem:[#allocation2 + $0x30] sm:$0xff]   ;;  %v5053_v49 = vld [vmem:[#allocation2 + $0x38] sm:$0xff]   ;;  %v4232_v35 = vld [vmem:[%s4838_s11 + $0x88] sm:$0xff]  }
 0x1cf   : > { %3808 = vmatpush3.bf16.msra.mxu0 %v4206_v13  ;;  %v4229_v33 = vld [vmem:[%s4838_s11 + $0x90] sm:$0xff]   ;;  %v4233_v52 = vld [vmem:[%s4838_s11 + $0x80] sm:$0xff]  }
 0x1d0   : > { %3840 = vmatpush3.bf16.msra.mxu1 %v4207_v56  ;;  %3809 = vmatprep.subr.bf16.mxu0 %v4208_v48 }
 0x1d1   : > { %3841 = vmatprep.subr.bf16.mxu1 %v4209_v16 }
 0x1d3   : > { %3810 = vmatpush3.bf16.msra.mxu0 %v4208_v48 }
 0x1d4   : > { %3842 = vmatpush3.bf16.msra.mxu1 %v4209_v16  ;;  %3811 = vmatprep.subr.bf16.mxu0 %v4210_v12 }
 0x1d5   : > { %3843 = vmatprep.subr.bf16.mxu1 %v4211_v14 }
 0x1d7   : > { %3812 = vmatpush3.bf16.msra.mxu0 %v4210_v12 }
 0x1d8   : > { %3844 = vmatpush3.bf16.msra.mxu1 %v4211_v14  ;;  %3813 = vmatprep.subr.bf16.mxu0 %v4212_v17 }
 0x1d9   : > { %3845 = vmatprep.subr.bf16.mxu1 %v4213_v19 }
 0x1db   : > { %3814 = vmatpush3.bf16.msra.mxu0 %v4212_v17 }
 0x1dc   : > { %3846 = vmatpush3.bf16.msra.mxu1 %v4213_v19  ;;  %3815 = vmatprep.subr.bf16.mxu0 %v4214_v20 }
 0x1dd   : > { %3847 = vmatprep.subr.bf16.mxu1 %v4215_v43 }
 0x1df   : > { %3816 = vmatpush3.bf16.msra.mxu0 %v4214_v20 }
 0x1e0   : > { %3848 = vmatpush3.bf16.msra.mxu1 %v4215_v43  ;;  %3817 = vmatprep.subr.bf16.mxu0 %v4216_v21 }
 0x1e1   : > { %3849 = vmatprep.subr.bf16.mxu1 %v4217_v22 }
 0x1e3   : > { %3818 = vmatpush3.bf16.msra.mxu0 %v4216_v21 }
 0x1e4   : > { %3850 = vmatpush3.bf16.msra.mxu1 %v4217_v22  ;;  %3867 = vmatprep.subr.bf16.mxu0 %v4220_v60 }
 0x1e5   : > { %3899 = vmatprep.subr.bf16.mxu1 %v4220_v60 }
 0x1e6   : > { %3820 = vmatmul.mubr.bf16.vlgmr.msra.gmra.mxu0 %v5025_v61 }
 0x1e7   : > { %3852 = vmatmul.mubr.bf16.vlgmr.msra.gmra.mxu1 %v5025_v61  ;;  %3868 = vmatpush3.bf16.msra.mxu0 %v4220_v60 }
 0x1e8   : > { %3907 = vmatpush3.bf16.msra.mxu1 %v4220_v60  ;;  %3869 = vmatprep.subr.bf16.mxu0 %v4221_v24 }
 0x1e9   : > { %3900 = vmatprep.subr.bf16.mxu1 %v4221_v24  ;;  %3823 = vmatprep.mubr.bf16.mxu0 %v5028_v23 }
 0x1ea   : > { %3855 = vmatprep.mubr.bf16.mxu1 %v5028_v23 }
 0x1eb   : > { %3870 = vmatpush3.bf16.msra.mxu0 %v4221_v24 }
 0x1ec   : > { %3908 = vmatpush3.bf16.msra.mxu1 %v4221_v24  ;;  %3871 = vmatprep.subr.bf16.mxu0 %v4224_v29 }
 0x1ed   : > { %3901 = vmatprep.subr.bf16.mxu1 %v4224_v29 }
 0x1ee   : > { %3824 = vmatmul.mubr.bf16.gmra.mxu0 %v5033_v27 }
 0x1ef   : > { %3856 = vmatmul.mubr.bf16.gmra.mxu1 %v5033_v27  ;;  %3872 = vmatpush3.bf16.msra.mxu0 %v4224_v29 }
 0x1f0   : > { %3909 = vmatpush3.bf16.msra.mxu1 %v4224_v29  ;;  %3873 = vmatprep.subr.bf16.mxu0 %v4225_v31 }
 0x1f1   : > { %3902 = vmatprep.subr.bf16.mxu1 %v4225_v31  ;;  %3827 = vmatprep.mubr.bf16.mxu0 %v5038_v30 }
 0x1f2   : > { %3859 = vmatprep.mubr.bf16.mxu1 %v5038_v30 }
 0x1f3   : > { %3874 = vmatpush3.bf16.msra.mxu0 %v4225_v31 }
 0x1f4   : > { %3910 = vmatpush3.bf16.msra.mxu1 %v4225_v31  ;;  %3875 = vmatprep.subr.bf16.mxu0 %v4228_v28 }
 0x1f5   : > { %3903 = vmatprep.subr.bf16.mxu1 %v4228_v28 }
 0x1f6   : > { %3828 = vmatmul.mubr.bf16.gmra.mxu0 %v5043_v6 }
 0x1f7   : > { %3860 = vmatmul.mubr.bf16.gmra.mxu1 %v5043_v6  ;;  %3876 = vmatpush3.bf16.msra.mxu0 %v4228_v28 }
 0x1f8   : > { %3911 = vmatpush3.bf16.msra.mxu1 %v4228_v28  ;;  %3877 = vmatprep.subr.bf16.mxu0 %v4229_v33 }
 0x1f9   : > { %3904 = vmatprep.subr.bf16.mxu1 %v4229_v33  ;;  %3831 = vmatprep.mubr.bf16.mxu0 %v5048_v32 }
 0x1fa   : > { %3863 = vmatprep.mubr.bf16.mxu1 %v5048_v32 }
 0x1fb   : > { %3878 = vmatpush3.bf16.msra.mxu0 %v4229_v33 }
 0x1fc   : > { %3912 = vmatpush3.bf16.msra.mxu1 %v4229_v33  ;;  %3879 = vmatprep.subr.bf16.mxu0 %v4232_v35 }
 0x1fd   : > { %3905 = vmatprep.subr.bf16.mxu1 %v4232_v35 }
 0x1fe   : > { %3832 = vmatmul.mubr.bf16.gmra.mxu0 %v5053_v49 }
 0x1ff   : > { %3864 = vmatmul.mubr.bf16.gmra.mxu1 %v5053_v49  ;;  %3880 = vmatpush3.bf16.msra.mxu0 %v4232_v35 }
 0x200   : > { %3913 = vmatpush3.bf16.msra.mxu1 %v4232_v35  ;;  %3881 = vmatprep.subr.bf16.mxu0 %v4233_v52 }
 0x201   : > { %3906 = vmatprep.subr.bf16.mxu1 %v4233_v52  ;;  %3883 = vmatprep.mubr.bf16.mxu0 %v5016_v18 }
 0x202   : > { %3891 = vmatprep.mubr.bf16.mxu1 %v5038_v30 }
 0x203   : > { %3882 = vmatpush3.bf16.msra.mxu0 %v4233_v52 }
 0x204   : > { %3914 = vmatpush3.bf16.msra.mxu1 %v4233_v52 }
 0x206   : > { %3884 = vmatmul.mubr.bf16.vlgmr.msra.gmra.mxu0 %v5025_v61 }
 0x207   : > { %3892 = vmatmul.mubr.bf16.vlgmr.msra.gmra.mxu1 %v5043_v6  ;;  %3887 = vmatprep.mubr.bf16.mxu0 %v5028_v23 }
 0x208   : > { %3895 = vmatprep.mubr.bf16.mxu1 %v5048_v32 }
 0x20e   : > { %3888 = vmatmul.mubr.bf16.gmra.mxu0 %v5033_v27 }
 0x20f   : > { %3896 = vmatmul.mubr.bf16.gmra.mxu1 %v5053_v49 }
 0x2a6   : > { %v3821_v34 = vpop.f32.mrf.mxu0 }
 0x2a7   : > { %v1658_v41 = vadd.f32 %v3821_v34, %v5075_v15  ;;  %v5078_v3 = vpop.f32.mrf.mxu1 }
 0x2a8   : > { %v1649_v42 = vpop.f32.mrf.mxu0 }
 0x2a9   : > { %v3050_v8 = vmul.f32 -1.442695, %v1658_v41  ;;  %v1650_v37 = vadd.f32 %v1649_v42, %v5075_v15  ;;  %v5081_v46 = vpop.f32.mrf.mxu1 }
 0x2aa   : > { %v3822_v26 = vpop.f32.mrf.mxu0 }
 0x2ab   : > { %4242 = vpow2.f32 %v3050_v8  ;;  %v3048_v51 = vmul.f32 -1.442695, %v1650_v37  ;;  %v1661_v53 = vadd.f32 %v3822_v26, %v5075_v15  ;;  %v5084_v54 = vpop.f32.mrf.mxu1 }
 0x2ac   : > { %v1652_v0 = vpop.f32.mrf.mxu0 }
 0x2ad   : > { %4244 = vpow2.f32 %v3048_v51  ;;  %v3051_v55 = vmul.f32 -1.442695, %v1661_v53  ;;  %v1653_v7 = vadd.f32 %v1652_v0, %v5075_v15  ;;  %v5087_v57 = vpop.f32.mrf.mxu1 }
 0x2ae   : > { %v3825_v36 = vpop.f32.mrf.mxu0 }
 0x2af   : > { %4246 = vpow2.f32 %v3051_v55  ;;  %v3049_v40 = vmul.f32 -1.442695, %v1653_v7  ;;  %v1674_v58 = vadd.f32 %v3825_v36, %v5075_v15  ;;  %v5090_v47 = vpop.f32.mrf.mxu1 }
 0x2b0   : > { %v1665_v59 = vpop.f32.mrf.mxu0 }
 0x2b1   : > { %4248 = vpow2.f32 %v3049_v40  ;;  %v3054_v44 = vmul.f32 -1.442695, %v1674_v58  ;;  %v1666_v62 = vadd.f32 %v1665_v59, %v5075_v15  ;;  %v5093_v63 = vpop.f32.mrf.mxu1 }
 0x2b2   : > { %v3826_v11 = vpop.f32.mrf.mxu0 }
 0x2b3   : > { %4250 = vpow2.f32 %v3054_v44  ;;  %v3052_v2 = vmul.f32 -1.442695, %v1666_v62  ;;  %v1677_v4 = vadd.f32 %v3826_v11, %v5075_v15  ;;  %v5096_v50 = vpop.f32.mrf.mxu1  ;;  %v5122_v44 = vrot.slane %v4851_v1, %v1517_v39 }
 0x2b4   : > { %v1668_v5 = vpop.f32.mrf.mxu0 }
 0x2b5   : > { %4252 = vpow2.f32 %v3052_v2  ;;  %v3055_v9 = vmul.f32 -1.442695, %v1677_v4  ;;  %v1669_v45 = vadd.f32 %v1668_v5, %v5075_v15  ;;  %v5099_v10 = vpop.f32.mrf.mxu1 }
 0x2b6   : > { %v3829_v13 = vpop.f32.mrf.mxu0 }
 0x2b7   : > { %4254 = vpow2.f32 %v3055_v9  ;;  %v3053_v56 = vmul.f32 -1.442695, %v1669_v45  ;;  %v1690_v48 = vadd.f32 %v3829_v13, %v5075_v15  ;;  %v5102_v16 = vpop.f32.mrf.mxu1 }
 0x2b8   : > { %v4243_v12 = vpop.eup %4242  ;;  %v1681_v14 = vpop.f32.mrf.mxu0 }
 0x2b9   : > { %v1762_v17 = vadd.f32 1.0, %v4243_v12  ;;  %4256 = vpow2.f32 %v3053_v56  ;;  %v3058_v19 = vmul.f32 -1.442695, %v1690_v48  ;;  %v1682_v20 = vadd.f32 %v1681_v14, %v5075_v15  ;;  %v5105_v43 = vpop.f32.mrf.mxu1 }
 0x2ba   : > { %v4245_v21 = vpop.eup %4244  ;;  %v3830_v22 = vpop.f32.mrf.mxu0 }
 0x2bb   : > { %4258 = vrcp.f32 %v1762_v17  ;;  %v1760_v60 = vadd.f32 1.0, %v4245_v21  ;;  %v3056_v24 = vmul.f32 -1.442695, %v1682_v20  ;;  %v1693_v29 = vadd.f32 %v3830_v22, %v5075_v15  ;;  %v5108_v31 = vpop.f32.mrf.mxu1 }
 0x2bc   : > { %v4247_v28 = vpop.eup %4246  ;;  %4260 = vpow2.f32 %v3058_v19  ;;  %v1684_v33 = vpop.f32.mrf.mxu0 }
 0x2bd   : > { %4262 = vrcp.f32 %v1760_v60  ;;  %v1763_v35 = vadd.f32 1.0, %v4247_v28  ;;  %v3059_v52 = vmul.f32 -1.442695, %v1693_v29  ;;  %v1685_v38 = vadd.f32 %v1684_v33, %v5075_v15  ;;  %v5111_v34 = vpop.f32.mrf.mxu1 }
 0x2be   : > { %v4249_v41 = vpop.eup %4248  ;;  %4264 = vpow2.f32 %v3056_v24  ;;  %v3833_v42 = vpop.f32.mrf.mxu0 }
 0x2bf   : > { %4266 = vrcp.f32 %v1763_v35  ;;  %v1761_v8 = vadd.f32 1.0, %v4249_v41  ;;  %v3057_v37 = vmul.f32 -1.442695, %v1685_v38  ;;  %v1706_v26 = vadd.f32 %v3833_v42, %v5075_v15  ;;  %v5114_v51 = vpop.f32.mrf.mxu1 }
 0x2c0   : > { %v4251_v53 = vpop.eup %4250  ;;  %4268 = vpow2.f32 %v3059_v52  ;;  %v1697_v0 = vpop.f32.mrf.mxu0 }
 0x2c1   : > { %4270 = vrcp.f32 %v1761_v8  ;;  %v1766_v55 = vadd.f32 1.0, %v4251_v53  ;;  %v3062_v7 = vmul.f32 -1.442695, %v1706_v26  ;;  %v1698_v36 = vadd.f32 %v1697_v0, %v5075_v15  ;;  %v5117_v40 = vpop.f32.mrf.mxu1 }
 0x2c2   : > { %v4253_v58 = vpop.eup %4252  ;;  %4272 = vpow2.f32 %v3057_v37  ;;  %v3834_v59 = vpop.f32.mrf.mxu0 }
 0x2c3   : > { %4274 = vrcp.f32 %v1766_v55  ;;  %v1764_v62 = vadd.f32 1.0, %v4253_v58  ;;  %v3060_v11 = vmul.f32 -1.442695, %v1698_v36  ;;  %v1709_v2 = vadd.f32 %v3834_v59, %v5075_v15  ;;  %v5125_v4 = vpop.f32.mrf.mxu1 }
 0x2c4   : > { %v4255_v5 = vpop.eup %4254  ;;  %4276 = vpow2.f32 %v3062_v7  ;;  %v1700_v9 = vpop.f32.mrf.mxu0 }
 0x2c5   : > { %4278 = vrcp.f32 %v1764_v62  ;;  %v1767_v45 = vadd.f32 1.0, %v4255_v5  ;;  %v3063_v13 = vmul.f32 -1.442695, %v1709_v2  ;;  %v1701_v56 = vadd.f32 %v1700_v9, %v5075_v15  ;;  %v5128_v48 = vpop.f32.mrf.mxu1 }
 0x2c6   : > { %v4257_v25 = vpop.eup %4256  ;;  %4280 = vpow2.f32 %v3060_v11  ;;  %v3885_v1 = vpop.f32.mrf.mxu0 }
 0x2c7   : > { %4282 = vrcp.f32 %v1767_v45  ;;  %v1765_v39 = vadd.f32 1.0, %v4257_v25  ;;  %v3061_v12 = vmul.f32 -1.442695, %v1701_v56  ;;  %v2145_v14 = vadd.f32 %v3885_v1, %v5122_v44  ;;  %v3893_v17 = vpop.f32.mrf.mxu1 }
 0x2c8   : > { %v4259_v19 = vpop.eup %4258  ;;  %4284 = vpow2.f32 %v3063_v13  ;;  %v2177_v20 = vadd.f32 %v3893_v17, %v5122_v44  ;;  %v2136_v21 = vpop.f32.mrf.mxu0 }
 0x2c9   : > { %v4261_v22 = vpop.eup %4260  ;;  %1810 = vst [vmem:[#allocation3 + $0x58] sm:$0xff] %v4259_v19  ;;  %v1826_v60 = vsub.f32 1.0, %v4259_v19  ;;  %4286 = vrcp.f32 %v1765_v39  ;;  %v3098_v15 = vmul.f32 -1.442695, %v2145_v14  ;;  %v2137_v24 = vadd.f32 %v2136_v21, %v5122_v44  ;;  %v2168_v29 = vpop.f32.mrf.mxu1 }
 0x2ca   : > { %v4263_v28 = vpop.eup %4262  ;;  %v1770_v33 = vadd.f32 1.0, %v4261_v22  ;;  %4288 = vpow2.f32 %v3061_v12  ;;  %v3106_v35 = vmul.f32 -1.442695, %v2177_v20  ;;  %v2169_v52 = vadd.f32 %v2168_v29, %v5122_v44  ;;  %v3886_v38 = vpop.f32.mrf.mxu0 }
 0x2cb   : > { %v4265_v41 = vpop.eup %4264  ;;  %v2003_v42 = vmul.f32 %v5078_v3, %v1826_v60  ;;  %1808 = vst [vmem:[#allocation3 + $0x30] sm:$0xff] %v4263_v28  ;;  %v1824_v8 = vsub.f32 1.0, %v4263_v28  ;;  %4290 = vpow2.f32 %v3098_v15  ;;  %v3096_v37 = vmul.f32 -1.442695, %v2137_v24  ;;  %v3894_v26 = vpop.f32.mrf.mxu1 }
 0x2cc   : > { %v4267_v53 = vpop.eup %4266  ;;  %4292 = vrcp.f32 %v1770_v33  ;;  %v1768_v0 = vadd.f32 1.0, %v4265_v41  ;;  %v3104_v55 = vmul.f32 -1.442695, %v2169_v52  ;;  %v2148_v7 = vadd.f32 %v3886_v38, %v5122_v44  ;;  %v2139_v36 = vpop.f32.mrf.mxu0 }
 0x2cd   : > { %v4269_v58 = vpop.eup %4268  ;;  %2019 = vst [vmem:[#allocation4 + $0x10] sm:$0xff] %v2003_v42  ;;  %v2001_v59 = vmul.f32 %v5081_v46, %v1824_v8  ;;  %1811 = vst [vmem:[#allocation3 + $0x18] sm:$0xff] %v4267_v53  ;;  %v1827_v62 = vsub.f32 1.0, %v4267_v53  ;;  %4294 = vpow2.f32 %v3106_v35  ;;  %v2180_v3 = vadd.f32 %v3894_v26, %v5122_v44  ;;  %v2171_v9 = vpop.f32.mrf.mxu1 }
 0x2ce   : > { %v4271_v11 = vpop.eup %4270  ;;  %4296 = vrcp.f32 %v1768_v0  ;;  %v1771_v2 = vadd.f32 1.0, %v4269_v58  ;;  %v3099_v5 = vmul.f32 -1.442695, %v2148_v7  ;;  %v2140_v25 = vadd.f32 %v2139_v36, %v5122_v44  ;;  %v3889_v12 = vpop.f32.mrf.mxu0 }
 0x2cf   : > { %v4273_v45 = vpop.eup %4272  ;;  %2017 = vst [vmem:[#allocation4 + $0x28] sm:$0xff] %v2001_v59  ;;  %v2004_v13 = vmul.f32 %v5084_v54, %v1827_v62  ;;  %1809 = vst [vmem:[#allocation3] sm:$0xff] %v4271_v11  ;;  %v1825_v56 = vsub.f32 1.0, %v4271_v11  ;;  %4298 = vpow2.f32 %v3096_v37  ;;  %v3107_v39 = vmul.f32 -1.442695, %v2180_v3  ;;  %v3897_v22 = vpop.f32.mrf.mxu1 }
 0x2d0   : > { %v4275_v46 = vpop.eup %4274  ;;  %4300 = vrcp.f32 %v1771_v2  ;;  %v1769_v1 = vadd.f32 1.0, %v4273_v45  ;;  %v2172_v20 = vadd.f32 %v2171_v9, %v5122_v44  ;;  %v3097_v29 = vmul.f32 -1.442695, %v2140_v25  ;;  %v2152_v35 = vpop.f32.mrf.mxu0 }
 0x2d1   : > { %v4277_v14 = vpop.eup %4276  ;;  %2020 = vst [vmem:[#allocation4 + $0x40] sm:$0xff] %v2004_v13  ;;  %v2002_v17 = vmul.f32 %v5087_v57, %v1825_v56  ;;  %1814 = vst [vmem:[#allocation3 + $0x8] sm:$0xff] %v4275_v46  ;;  %v1830_v19 = vsub.f32 1.0, %v4275_v46  ;;  %4302 = vpow2.f32 %v3104_v55  ;;  %v2161_v33 = vadd.f32 %v3889_v12, %v5122_v44  ;;  %v2184_v26 = vpop.f32.mrf.mxu1 }
 0x2d2   : > { %v4279_v54 = vpop.eup %4278  ;;  %4304 = vrcp.f32 %v1769_v1  ;;  %v1774_v21 = vadd.f32 1.0, %v4277_v14  ;;  %v3105_v42 = vmul.f32 -1.442695, %v2172_v20  ;;  %v2193_v37 = vadd.f32 %v3897_v22, %v5122_v44  ;;  %v3890_v59 = vpop.f32.mrf.mxu0 }
 0x2d3   : > { %v4281_v60 = vpop.eup %4280  ;;  %2018 = vst [vmem:[#allocation4 + $0x68] sm:$0xff] %v2002_v17  ;;  %v2007_v15 = vmul.f32 %v5090_v47, %v1830_v19  ;;  %1812 = vst [vmem:[#allocation3 + $0x50] sm:$0xff] %v4279_v54  ;;  %v1828_v24 = vsub.f32 1.0, %v4279_v54  ;;  %4306 = vpow2.f32 %v3099_v5  ;;  %v3102_v36 = vmul.f32 -1.442695, %v2161_v33  ;;  %v3898_v45 = vpop.f32.mrf.mxu1 }
 0x2d4   : > { %v4283_v28 = vpop.eup %4282  ;;  %4308 = vrcp.f32 %v1774_v21  ;;  %v1772_v57 = vadd.f32 1.0, %v4281_v60  ;;  %v2153_v58 = vadd.f32 %v2152_v35, %v5122_v44  ;;  %v2185_v9 = vadd.f32 %v2184_v26, %v5122_v44  ;;  %v2155_v19 = vpop.f32.mrf.mxu0 }
 0x2d5   : > { %v4285_v52 = vpop.eup %4284  ;;  %2023 = vst [vmem:[#allocation4 + $0x70] sm:$0xff] %v2007_v15  ;;  %v2005_v38 = vmul.f32 %v5093_v63, %v1828_v24  ;;  %1815 = vst [vmem:[#allocation3 + $0x48] sm:$0xff] %v4283_v28  ;;  %v1831_v41 = vsub.f32 1.0, %v4283_v28  ;;  %4310 = vpow2.f32 %v3107_v39  ;;  %v2164_v25 = vadd.f32 %v3890_v59, %v5122_v44  ;;  %v2187_v24 = vpop.f32.mrf.mxu1 }
 0x2d6   : > { %v4287_v8 = vpop.eup %4286  ;;  %4312 = vrcp.f32 %v1772_v57  ;;  %v1775_v47 = vadd.f32 1.0, %v4285_v52  ;;  %v3100_v39 = vmul.f32 -1.442695, %v2153_v58  ;;  %v2196_v17 = vadd.f32 %v3898_v45, %v5122_v44 }
 0x2d7   : > { %v4289_v53 = vpop.eup %4288  ;;  %2021 = vst [vmem:[#allocation4 + $0x48] sm:$0xff] %v2005_v38  ;;  %v2008_v0 = vmul.f32 %v5096_v50, %v1831_v41  ;;  %1813 = vst [vmem:[#allocation3 + $0x68] sm:$0xff] %v4287_v8  ;;  %v1829_v55 = vsub.f32 1.0, %v4287_v8  ;;  %4314 = vpow2.f32 %v3097_v29  ;;  %v3110_v50 = vmul.f32 -1.442695, %v2193_v37 }
 0x2d8   : > { %v4291_v7 = vpop.eup %4290  ;;  %4316 = vrcp.f32 %v1775_v47  ;;  %v1773_v63 = vadd.f32 1.0, %v4289_v53  ;;  %v3108_v22 = vmul.f32 -1.442695, %v2185_v9  ;;  %v3103_v15 = vmul.f32 -1.442695, %v2164_v25 }
 0x2d9   : > { %v4293_v62 = vpop.eup %4292  ;;  %2024 = vst [vmem:[#allocation4 + $0x38] sm:$0xff] %v2008_v0  ;;  %v2006_v3 = vmul.f32 %v5099_v10, %v1829_v55  ;;  %v2249_v11 = vadd.f32 1.0, %v4291_v7  ;;  %4318 = vpow2.f32 %v3105_v42  ;;  %v2156_v33 = vadd.f32 %v2155_v19, %v5122_v44 }
 0x2da   : > { %v4295_v2 = vpop.eup %4294  ;;  %1818 = vst [vmem:[#allocation3 + $0x10] sm:$0xff] %v4293_v62  ;;  %v1834_v5 = vsub.f32 1.0, %v4293_v62  ;;  %4320 = vrcp.f32 %v1773_v63  ;;  %v3111_v52 = vmul.f32 -1.442695, %v2196_v17  ;;  %v2188_v8 = vadd.f32 %v2187_v24, %v5122_v44 }
 0x2db   : > { %v4297_v13 = vpop.eup %4296  ;;  %2022 = vst [vmem:[#allocation4 + $0x30] sm:$0xff] %v2006_v3  ;;  %4322 = vrcp.f32 %v2249_v11  ;;  %v2257_v56 = vadd.f32 1.0, %v4295_v2  ;;  %v3101_v0 = vmul.f32 -1.442695, %v2156_v33  ;;  %v2391_v25 = vunpack.c.l.bf16 %v5016_v18 }
 0x2dc   : > { %v4299_v46 = vpop.eup %4298  ;;  %v2011_v1 = vmul.f32 %v5102_v16, %v1834_v5  ;;  %1816 = vst [vmem:[#allocation3 + $0x40] sm:$0xff] %v4297_v13  ;;  %v1832_v10 = vsub.f32 1.0, %v4297_v13  ;;  %4324 = vpow2.f32 %v3102_v36  ;;  %v3109_v36 = vmul.f32 -1.442695, %v2188_v8 }
 0x2dd   : > { %v4301_v12 = vpop.eup %4300  ;;  %4326 = vrcp.f32 %v2257_v56  ;;  %v2247_v14 = vadd.f32 1.0, %v4299_v46  ;;  %v2401_v19 = vunpack.c.l.bf16 %v5043_v6 }
 0x2de   : > { %v4303_v20 = vpop.eup %4302  ;;  %2027 = vst [vmem:[#allocation4 + $0x18] sm:$0xff] %v2011_v1  ;;  %v2009_v54 = vmul.f32 %v5105_v43, %v1832_v10  ;;  %1819 = vst [vmem:[#allocation3 + $0x38] sm:$0xff] %v4301_v12  ;;  %v1835_v21 = vsub.f32 1.0, %v4301_v12  ;;  %4328 = vpow2.f32 %v3110_v50  ;;  %v2394_v12 = vunpack.c.h.bf16 %v5025_v61 }
 0x2df   : > { %v4305_v60 = vpop.eup %4304  ;;  %4330 = vrcp.f32 %v2247_v14  ;;  %v2255_v16 = vadd.f32 1.0, %v4303_v20  ;;  %v2400_v14 = vunpack.c.h.bf16 %v5038_v30 }
 0x2e0   : > { %v4307_v29 = vpop.eup %4306  ;;  %2025 = vst [vmem:[#allocation4 + $0x20] sm:$0xff] %v2009_v54  ;;  %v2012_v28 = vmul.f32 %v5108_v31, %v1835_v21  ;;  %1817 = vst [vmem:[#allocation3 + $0x20] sm:$0xff] %v4305_v60  ;;  %v1833_v57 = vsub.f32 1.0, %v4305_v60  ;;  %4332 = vpow2.f32 %v3100_v39  ;;  %v2392_v39 = vunpack.c.h.bf16 %v5016_v18 }
 0x2e1   : > { %v4309_v35 = vpop.eup %4308  ;;  %4334 = vrcp.f32 %v2255_v16  ;;  %v2250_v43 = vadd.f32 1.0, %v4307_v29 }
 0x2e2   : > { %v4311_v38 = vpop.eup %4310  ;;  %2028 = vst [vmem:[#allocation4 + $0x58] sm:$0xff] %v2012_v28  ;;  %v2010_v41 = vmul.f32 %v5111_v34, %v1833_v57  ;;  %1822 = vst [vmem:[#allocation3 + $0x78] sm:$0xff] %v4309_v35  ;;  %v1838_v42 = vsub.f32 1.0, %v4309_v35  ;;  %4336 = vpow2.f32 %v3108_v22  ;;  %v2402_v22 = vunpack.c.h.bf16 %v5043_v6 }
 0x2e3   : > { %v4313_v47 = vpop.eup %4312  ;;  %4338 = vrcp.f32 %v2250_v43  ;;  %v2258_v31 = vadd.f32 1.0, %v4311_v38 }
 0x2e4   : > { %v4315_v37 = vpop.eup %4314  ;;  %2026 = vst [vmem:[#allocation4 + $0x78] sm:$0xff] %v2010_v41  ;;  %v2015_v26 = vmul.f32 %v5114_v51, %v1838_v42  ;;  %1820 = vst [vmem:[#allocation3 + $0x60] sm:$0xff] %v4313_v47  ;;  %v1836_v53 = vsub.f32 1.0, %v4313_v47  ;;  %4340 = vpow2.f32 %v3103_v15 }
 0x2e5   : > { %v4317_v55 = vpop.eup %4316  ;;  %4342 = vrcp.f32 %v2258_v31  ;;  %v2248_v7 = vadd.f32 1.0, %v4315_v37 }
 0x2e6   : > { %v4319_v34 = vpop.eup %4318  ;;  %2031 = vst [vmem:[#allocation4 + $0x60] sm:$0xff] %v2015_v26  ;;  %v2013_v63 = vmul.f32 %v5117_v40, %v1836_v53  ;;  %1823 = vst [vmem:[#allocation3 + $0x28] sm:$0xff] %v4317_v55  ;;  %v1839_v44 = vsub.f32 1.0, %v4317_v55  ;;  %4344 = vpow2.f32 %v3111_v52 }
 0x2e7   : > { %v4321_v58 = vpop.eup %4320  ;;  %4346 = vrcp.f32 %v2248_v7  ;;  %v2256_v59 = vadd.f32 1.0, %v4319_v34 }
 0x2e8   : > { %v4323_v62 = vpop.eup %4322  ;;  %2029 = vst [vmem:[#allocation4] sm:$0xff] %v2013_v63  ;;  %v2016_v51 = vmul.f32 %v5125_v4, %v1839_v44  ;;  %1821 = vst [vmem:[#allocation3 + $0x70] sm:$0xff] %v4321_v58  ;;  %v1837_v3 = vsub.f32 1.0, %v4321_v58  ;;  %4348 = vpow2.f32 %v3101_v0  ;;  %v2393_v4 = vunpack.c.l.bf16 %v5025_v61 }
 0x2e9   : > { %v4325_v11 = vpop.eup %4324  ;;  %4350 = vrcp.f32 %v2256_v59  ;;  %v2377_v46 = vsub.f32 1.0, %v4323_v62 }
 0x2ea   : > { %v4327_v2 = vpop.eup %4326  ;;  %2032 = vst [vmem:[#allocation4 + $0x50] sm:$0xff] %v2016_v51  ;;  %v2014_v40 = vmul.f32 %v5128_v48, %v1837_v3  ;;  %4352 = vpow2.f32 %v3109_v36  ;;  %v2253_v9 = vadd.f32 1.0, %v4325_v11  ;;  %v2399_v48 = vunpack.c.l.bf16 %v5038_v30 }
 0x2eb   : > { %v4329_v5 = vpop.eup %4328  ;;  %v2385_v20 = vsub.f32 1.0, %v4327_v2  ;;  %v2409_v18 = vmul.f32 %v2393_v4, %v2377_v46  ;;  %v2397_v11 = vunpack.c.l.bf16 %v5033_v27  ;;  %v2395_v4 = vunpack.c.l.bf16 %v5028_v23 }
 0x2ec   : > { %v4331_v50 = vpop.eup %4330  ;;  %2030 = vst [vmem:[#allocation4 + $0x8] sm:$0xff] %v2014_v40  ;;  %v2261_v13 = vadd.f32 1.0, %v4329_v5  ;;  %4354 = vrcp.f32 %v2253_v9  ;;  %v2396_v46 = vunpack.c.h.bf16 %v5028_v23 }
 0x2ed   : > { %v4333_v45 = vpop.eup %4332  ;;  %v2375_v24 = vsub.f32 1.0, %v4331_v50  ;;  %v2417_v35 = vmul.f32 %v2401_v19, %v2385_v20 }
 0x2ee   : > { %v4335_v56 = vpop.eup %4334  ;;  %v2251_v1 = vadd.f32 1.0, %v4333_v45  ;;  %4356 = vrcp.f32 %v2261_v13  ;;  %v2406_v45 = vunpack.c.h.bf16 %v5053_v49 }
 0x2ef   : > { %v4337_v10 = vpop.eup %4336  ;;  %v2383_v43 = vsub.f32 1.0, %v4335_v56  ;;  %v2407_v31 = vmul.f32 %v2391_v25, %v2375_v24 }
 0x2f0   : > { %v4339_v17 = vpop.eup %4338  ;;  %v2259_v54 = vadd.f32 1.0, %v4337_v10  ;;  %4358 = vrcp.f32 %v2251_v1 }
 0x2f1   : > { %v4341_v21 = vpop.eup %4340  ;;  %v3333_v60 = vpack.c.bf16 %v4339_v17, %v4323_v62  ;;  %v2378_v16 = vsub.f32 1.0, %v4339_v17  ;;  %v2415_v63 = vmul.f32 %v2399_v48, %v2383_v43  ;;  %v2404_v17 = vunpack.c.h.bf16 %v5048_v32 }
 0x2f2   : > { %v4343_v15 = vpop.eup %4342  ;;  %v2254_v61 = vadd.f32 1.0, %v4341_v21  ;;  %4360 = vrcp.f32 %v2259_v54 }
 0x2f3   : > { %v4345_v29 = vpop.eup %4344  ;;  %3527 = vst [vmem:[#allocation5] sm:$0xff] %v3333_v60   ;;  %v2410_v30 = vmul.f32 %v2394_v12, %v2378_v16  ;;  %v3353_v28 = vpack.c.bf16 %v4343_v15, %v4327_v2  ;;  %v2386_v57 = vsub.f32 1.0, %v4343_v15  ;;  %v2398_v2 = vunpack.c.h.bf16 %v5033_v27 }
 0x2f4   : > { %v4347_v33 = vpop.eup %4346  ;;  %4362 = vrcp.f32 %v2254_v61  ;;  %v2262_v52 = vadd.f32 1.0, %v4345_v29 }
 0x2f5   : > { %v4349_v6 = vpop.eup %4348  ;;  %v3373_v38 = vpack.c.bf16 %v2410_v30, %v2409_v18  ;;  %3531 = vst [vmem:[#allocation5 + $0x28] sm:$0xff] %v3353_v28   ;;  %v2418_v41 = vmul.f32 %v2402_v22, %v2386_v57  ;;  %v3328_v42 = vpack.c.bf16 %v4347_v33, %v4331_v50  ;;  %v2376_v8 = vsub.f32 1.0, %v4347_v33 }
 0x2f6   : > { %v4351_v47 = vpop.eup %4350  ;;  %4364 = vrcp.f32 %v2262_v52  ;;  %v2252_v37 = vadd.f32 1.0, %v4349_v6  ;;  %v2405_v50 = vunpack.c.l.bf16 %v5053_v49 }
 0x2f7   : > { %v4353_v26 = vpop.eup %4352  ;;  %3534 = vst [vmem:[#allocation6 + $0x8] sm:$0xff] %v3373_v38   ;;  %v3393_v53 = vpack.c.bf16 %v2418_v41, %v2417_v35  ;;  %3329 = vst [vmem:[#allocation5 + $0x8] sm:$0xff] %v3328_v42   ;;  %v2408_v0 = vmul.f32 %v2392_v39, %v2376_v8  ;;  %v3348_v55 = vpack.c.bf16 %v4351_v47, %v4335_v56  ;;  %v2384_v7 = vsub.f32 1.0, %v4351_v47 }
 0x2f8   : > { %4366 = vrcp.f32 %v2252_v37  ;;  %v2260_v34 = vadd.f32 1.0, %v4353_v26 }
 0x2f9   : > { %3538 = vst [vmem:[#allocation6] sm:$0xff] %v3393_v53   ;;  %v3368_v44 = vpack.c.bf16 %v2408_v0, %v2407_v31  ;;  %3530 = vst [vmem:[#allocation5 + $0x38] sm:$0xff] %v3348_v55   ;;  %v2416_v36 = vmul.f32 %v2400_v14, %v2384_v7  ;;  %v4355_v59 = vpop.eup %4354  ;;  %v2403_v14 = vunpack.c.l.bf16 %v5048_v32 }
 0x2fa   : > { %4368 = vrcp.f32 %v2260_v34  ;;  %v2381_v40 = vsub.f32 1.0, %v4355_v59 }
 0x2fb   : > { %3369 = vst [vmem:[#allocation6 + $0x18] sm:$0xff] %v3368_v44   ;;  %v3388_v58 = vpack.c.bf16 %v2416_v36, %v2415_v63  ;;  %v4357_v62 = vpop.eup %4356 }
 0x2fc   : > { %v2389_v9 = vsub.f32 1.0, %v4357_v62  ;;  %v2413_v10 = vmul.f32 %v2397_v11, %v2381_v40 }
 0x2fd   : > { %3537 = vst [vmem:[#allocation6 + $0x20] sm:$0xff] %v3388_v58   ;;  %v4359_v51 = vpop.eup %4358 }
 0x2fe   : > { %v2379_v1 = vsub.f32 1.0, %v4359_v51  ;;  %v2421_v19 = vmul.f32 %v2405_v50, %v2389_v9 }
 0x2ff   : > { %v4361_v3 = vpop.eup %4360 }
 0x300   : > { %v2387_v49 = vsub.f32 1.0, %v4361_v3  ;;  %v2411_v23 = vmul.f32 %v2395_v4, %v2379_v1 }
 0x301   : > { %v4363_v5 = vpop.eup %4362 }
 0x302   : > { %v3343_v13 = vpack.c.bf16 %v4363_v5, %v4355_v59  ;;  %v2382_v56 = vsub.f32 1.0, %v4363_v5  ;;  %v2419_v61 = vmul.f32 %v2403_v14, %v2387_v49 }
 0x303   : > { %v4365_v25 = vpop.eup %4364 }
 0x304   : > { %3529 = vst [vmem:[#allocation5 + $0x20] sm:$0xff] %v3343_v13   ;;  %v2414_v39 = vmul.f32 %v2398_v2, %v2382_v56  ;;  %v3363_v12 = vpack.c.bf16 %v4365_v25, %v4357_v62  ;;  %v2390_v27 = vsub.f32 1.0, %v4365_v25 }
 0x305   : > { %v4367_v48 = vpop.eup %4366 }
 0x306   : > { %v3383_v20 = vpack.c.bf16 %v2414_v39, %v2413_v10  ;;  %3533 = vst [vmem:[#allocation5 + $0x10] sm:$0xff] %v3363_v12   ;;  %v2422_v54 = vmul.f32 %v2406_v45, %v2390_v27  ;;  %v3338_v21 = vpack.c.bf16 %v4367_v48, %v4359_v51  ;;  %v2380_v22 = vsub.f32 1.0, %v4367_v48 }
 0x307   : > { %v4369_v60 = vpop.eup %4368 }
 0x308   : > { %3536 = vst [vmem:[#allocation6 + $0x30] sm:$0xff] %v3383_v20   ;;  %v3403_v16 = vpack.c.bf16 %v2422_v54, %v2421_v19  ;;  %3528 = vst [vmem:[#allocation5 + $0x18] sm:$0xff] %v3338_v21   ;;  %v2412_v15 = vmul.f32 %v2396_v46, %v2380_v22  ;;  %v3358_v18 = vpack.c.bf16 %v4369_v60, %v4361_v3  ;;  %v2388_v24 = vsub.f32 1.0, %v4369_v60 }
 0x30a   : > { %3540 = vst [vmem:[#allocation6 + $0x28] sm:$0xff] %v3403_v16   ;;  %v3378_v29 = vpack.c.bf16 %v2412_v15, %v2411_v23  ;;  %3532 = vst [vmem:[#allocation5 + $0x30] sm:$0xff] %v3358_v18   ;;  %v2420_v32 = vmul.f32 %v2404_v17, %v2388_v24 }
 0x30c   : > { %3535 = vst [vmem:[#allocation6 + $0x10] sm:$0xff] %v3378_v29   ;;  %v3398_v30 = vpack.c.bf16 %v2420_v32, %v2419_v61 }
 0x30e   : > { %3539 = vst [vmem:[#allocation6 + $0x38] sm:$0xff] %v3398_v30  }
 0x30f PF: > { %v2503_v28 = vld [vmem:[#allocation3 + $0x30] sm:$0xff]  ;;  %v2504_v57 = vld [vmem:[#allocation3] sm:$0xff]  ;;  %v2507_v33 = vld [vmem:[#allocation4 + $0x28] sm:$0xff]  ;;  %p3160_p9 = scmp.ne.s32.totalorder %s4620_s21, 3 }
 0x310   : > { %v2505_v35 = vmul.f32 0.0, %v2503_v28  ;;  %v2506_v43 = vmul.f32 0.0, %v2504_v57  ;;  %v2508_v52 = vld [vmem:[#allocation4 + $0x68] sm:$0xff]  ;;  %v2535_v6 = vld [vmem:[#allocation3 + $0x58] sm:$0xff]  ;;  %v2539_v8 = vld [vmem:[#allocation4 + $0x10] sm:$0xff] }
 0x311   : > { %v2536_v38 = vld [vmem:[#allocation3 + $0x18] sm:$0xff]  ;;  %v2540_v47 = vld [vmem:[#allocation4 + $0x40] sm:$0xff]  ;;  %v2567_v26 = vld [vmem:[#allocation3 + $0x50] sm:$0xff] }
 0x312   : > { %v2509_v41 = vadd.f32 %v2507_v33, %v2505_v35  ;;  %v2510_v42 = vadd.f32 %v2508_v52, %v2506_v43  ;;  %v2568_v53 = vld [vmem:[#allocation3 + $0x68] sm:$0xff]  ;;  %v2572_v34 = vld [vmem:[#allocation4 + $0x30] sm:$0xff]  ;;  %v2604_v11 = vld [vmem:[#allocation4 + $0x38] sm:$0xff] }
 0x313   : > { %v2571_v7 = vld [vmem:[#allocation4 + $0x48] sm:$0xff]  ;;  %v2603_v3 = vld [vmem:[#allocation4 + $0x70] sm:$0xff]  ;;  %v3410_v5 = vld [vmem:[#allocation6 + $0x18] sm:$0xff]  }
 0x314   : > { %4370 = vtanh.f32 %v2509_v41  ;;  %v2537_v31 = vmul.f32 %v2535_v6, %v2509_v41  ;;  %v2538_v37 = vmul.f32 %v2536_v38, %v2510_v42  ;;  %v2599_v36 = vld [vmem:[#allocation3 + $0x8] sm:$0xff]  ;;  %v2631_v50 = vld [vmem:[#allocation3 + $0x40] sm:$0xff]  ;;  %v2636_v1 = vld [vmem:[#allocation4 + $0x78] sm:$0xff]  ;;  %v3411_v10 = vunpack.c.l.bf16 %v3410_v5 }
 0x315   : > { %4372 = vtanh.f32 %v2510_v42  ;;  %v2600_v58 = vld [vmem:[#allocation3 + $0x48] sm:$0xff]  ;;  %v2632_v9 = vld [vmem:[#allocation3 + $0x20] sm:$0xff]  ;;  %v3412_v14 = vunpack.c.h.bf16 %v3410_v5  ;;  %v2663_v17 = vld [vmem:[#allocation3 + $0x10] sm:$0xff] }
 0x316   : > { %v2541_v0 = vadd.f32 %v2539_v8, %v2537_v31  ;;  %v2542_v55 = vadd.f32 %v2540_v47, %v2538_v37  ;;  %v3406_v51 = vld [vmem:[#allocation5 + $0x8] sm:$0xff]   ;;  %v3541_v4 = vld [vmem:[#allocation5] sm:$0xff]   ;;  %v2664_v19 = vld [vmem:[#allocation3 + $0x38] sm:$0xff] }
 0x317   : > { %v3407_v45 = vunpack.c.l.bf16 %v3406_v51  ;;  %v3408_v25 = vunpack.c.h.bf16 %v3406_v51  ;;  %v2635_v46 = vld [vmem:[#allocation4 + $0x20] sm:$0xff]  ;;  %v3542_v39 = vld [vmem:[#allocation6 + $0x8] sm:$0xff]   ;;  %v3420_v54 = vunpack.c.l.bf16 %v3541_v4  ;;  %v3421_v23 = vunpack.c.h.bf16 %v3541_v4  ;;  %v3544_v15 = vld [vmem:[#allocation5 + $0x18] sm:$0xff]  }
 0x318   : > { %4374 = vtanh.f32 %v2541_v0  ;;  %v2569_v63 = vmul.f32 %v2567_v26, %v2541_v0  ;;  %v2570_v44 = vmul.f32 %v2568_v53, %v2542_v55  ;;  %v3424_v16 = vunpack.c.l.bf16 %v3542_v39  ;;  %v2667_v18 = vld [vmem:[#allocation4 + $0x18] sm:$0xff]  ;;  %v3545_v29 = vld [vmem:[#allocation6 + $0x10] sm:$0xff]   ;;  %v2695_v35 = vld [vmem:[#allocation3 + $0x60] sm:$0xff] }
 0x319   : > { %4376 = vtanh.f32 %v2542_v55  ;;  %v2668_v24 = vld [vmem:[#allocation4 + $0x58] sm:$0xff]  ;;  %v3425_v33 = vunpack.c.h.bf16 %v3542_v39  ;;  %v2696_v43 = vld [vmem:[#allocation3 + $0x70] sm:$0xff]  ;;  %v3433_v38 = vunpack.c.l.bf16 %v3544_v15  ;;  %v3434_v31 = vunpack.c.h.bf16 %v3544_v15  ;;  %v3547_v26 = vld [vmem:[#allocation5 + $0x20] sm:$0xff]  }
 0x31a   : > { %v2573_v59 = vadd.f32 %v2571_v7, %v2569_v63  ;;  %v2574_v62 = vadd.f32 %v2572_v34, %v2570_v44  ;;  %v3437_v37 = vunpack.c.l.bf16 %v3545_v29  ;;  %v2699_v53 = vld [vmem:[#allocation4] sm:$0xff]  ;;  %v2700_v0 = vld [vmem:[#allocation4 + $0x8] sm:$0xff]  ;;  %v3548_v7 = vld [vmem:[#allocation6 + $0x30] sm:$0xff]  }
 0x31c   : > { %4378 = vtanh.f32 %v2573_v59  ;;  %v2601_v2 = vmul.f32 %v2599_v36, %v2573_v59  ;;  %v2602_v40 = vmul.f32 %v2600_v58, %v2574_v62  ;;  %v3438_v58 = vunpack.c.h.bf16 %v3545_v29  ;;  %v2727_v59 = vld [vmem:[#allocation3 + $0x78] sm:$0xff] }
 0x31d   : > { %4380 = vtanh.f32 %v2574_v62  ;;  %v2728_v62 = vld [vmem:[#allocation3 + $0x28] sm:$0xff] }
 0x31e   : > { %v2605_v13 = vadd.f32 %v2603_v3, %v2601_v2  ;;  %v2606_v56 = vadd.f32 %v2604_v11, %v2602_v40  ;;  %v3446_v11 = vunpack.c.l.bf16 %v3547_v26 }
 0x320   : > { %4382 = vtanh.f32 %v2605_v13  ;;  %v2633_v12 = vmul.f32 %v2631_v50, %v2605_v13  ;;  %v2634_v27 = vmul.f32 %v2632_v9, %v2606_v56  ;;  %v3447_v9 = vunpack.c.h.bf16 %v3547_v26  ;;  %v3550_v13 = vld [vmem:[#allocation5 + $0x38] sm:$0xff]  }
 0x321   : > { %v4371_v48 = vpop.eup %4370  ;;  %4384 = vtanh.f32 %v2606_v56  ;;  %v2731_v56 = vld [vmem:[#allocation4 + $0x60] sm:$0xff] }
 0x322   : > { %v4373_v49 = vpop.eup %4372  ;;  %v2521_v20 = vmul.f32 %v4371_v48, %v3407_v45  ;;  %v2637_v21 = vadd.f32 %v2635_v46, %v2633_v12  ;;  %v2638_v22 = vadd.f32 %v2636_v1, %v2634_v27  ;;  %v3450_v45 = vunpack.c.l.bf16 %v3548_v7  ;;  %v3551_v27 = vld [vmem:[#allocation6 + $0x20] sm:$0xff]  }
 0x323   : > { %v2522_v60 = vmul.f32 %v4373_v49, %v3408_v25  ;;  %v2732_v25 = vld [vmem:[#allocation4 + $0x50] sm:$0xff]  ;;  %v3451_v12 = vunpack.c.h.bf16 %v3548_v7 }
 0x324   : > { %v2523_v61 = vadd.f32 %v3411_v10, %v2521_v20  ;;  %4386 = vtanh.f32 %v2637_v21  ;;  %v2665_v32 = vmul.f32 %v2663_v17, %v2637_v21  ;;  %v2666_v30 = vmul.f32 %v2664_v19, %v2638_v22 }
 0x325   : > { %v4375_v28 = vpop.eup %4374  ;;  %v2524_v57 = vadd.f32 %v3412_v14, %v2522_v60  ;;  %4388 = vtanh.f32 %v2638_v22  ;;  %v3459_v17 = vunpack.c.l.bf16 %v3550_v13  ;;  %v3460_v21 = vunpack.c.h.bf16 %v3550_v13  ;;  %v3553_v22 = vld [vmem:[#allocation5 + $0x28] sm:$0xff]  }
 0x326   : > { %v4377_v52 = vpop.eup %4376  ;;  %v2553_v6 = vmul.f32 %v4375_v28, %v3420_v54  ;;  %v2669_v41 = vadd.f32 %v2667_v18, %v2665_v32  ;;  %v2670_v42 = vadd.f32 %v2668_v24, %v2666_v30  ;;  %v3464_v18 = vunpack.c.h.bf16 %v3551_v27  ;;  %v3554_v24 = vld [vmem:[#allocation6] sm:$0xff]  }
 0x327   : > { %v3416_v8 = vpack.c.bf16 %v2524_v57, %v2523_v61  ;;  %v2554_v47 = vmul.f32 %v4377_v52, %v3421_v23  ;;  %v3463_v23 = vunpack.c.l.bf16 %v3551_v27  ;;  %v3472_v32 = vunpack.c.l.bf16 %v3553_v22 }
 0x328   : > { %v2555_v55 = vadd.f32 %v3424_v16, %v2553_v6  ;;  %4390 = vtanh.f32 %v2669_v41  ;;  %v2697_v34 = vmul.f32 %v2695_v35, %v2669_v41  ;;  %v2698_v63 = vmul.f32 %v2696_v43, %v2670_v42  ;;  %v3557_v41 = vld [vmem:[#allocation6 + $0x38] sm:$0xff]  }
 0x329   : > { %v4379_v44 = vpop.eup %4378  ;;  %3417 = vst [vmem:[#allocation2] sm:$0xff] %v3416_v8   ;;  %v2556_v36 = vadd.f32 %v3425_v33, %v2554_v47  ;;  %4392 = vtanh.f32 %v2670_v42  ;;  %v3473_v57 = vunpack.c.h.bf16 %v3553_v22  ;;  %v3556_v33 = vld [vmem:[#allocation5 + $0x30] sm:$0xff]   ;;  %v3476_v43 = vunpack.c.l.bf16 %v3554_v24 }
 0x32a   : > { %v4381_v51 = vpop.eup %4380  ;;  %v2585_v3 = vmul.f32 %v4379_v44, %v3433_v38  ;;  %v2701_v2 = vadd.f32 %v2699_v53, %v2697_v34  ;;  %v2702_v40 = vadd.f32 %v2700_v0, %v2698_v63  ;;  %v3477_v38 = vunpack.c.h.bf16 %v3554_v24  ;;  %v3559_v53 = vld [vmem:[#allocation5 + $0x10] sm:$0xff]   ;;  %v3560_v44 = vld [vmem:[#allocation6 + $0x28] sm:$0xff]  }
 0x32b   : > { %v3429_v5 = vpack.c.bf16 %v2556_v36, %v2555_v55  ;;  %v2586_v50 = vmul.f32 %v4381_v51, %v3434_v31  ;;  %v3485_v47 = vunpack.c.l.bf16 %v3556_v33  ;;  %v3486_v26 = vunpack.c.h.bf16 %v3556_v33 }
 0x32c   : > { %v2587_v4 = vadd.f32 %v3437_v37, %v2585_v3  ;;  %4394 = vtanh.f32 %v2701_v2  ;;  %v2729_v46 = vmul.f32 %v2727_v59, %v2701_v2  ;;  %v2730_v1 = vmul.f32 %v2728_v62, %v2702_v40 }
 0x32d   : > { %v4383_v10 = vpop.eup %4382  ;;  %3543 = vst [vmem:[#allocation2 + $0x8] sm:$0xff] %v3429_v5   ;;  %v2588_v39 = vadd.f32 %v3438_v58, %v2586_v50  ;;  %4396 = vtanh.f32 %v2702_v40  ;;  %v3489_v55 = vunpack.c.l.bf16 %v3557_v41  ;;  %v3490_v63 = vunpack.c.h.bf16 %v3557_v41 }
 0x32e   : > { %v4385_v48 = vpop.eup %4384  ;;  %v2617_v14 = vmul.f32 %v4383_v10, %v3446_v11  ;;  %v2733_v19 = vadd.f32 %v2731_v56, %v2729_v46  ;;  %v2734_v49 = vadd.f32 %v2732_v25, %v2730_v1  ;;  %v3498_v59 = vunpack.c.l.bf16 %v3559_v53 }
 0x32f   : > { %v3442_v20 = vpack.c.bf16 %v2588_v39, %v2587_v4  ;;  %v2618_v54 = vmul.f32 %v4385_v48, %v3447_v9  ;;  %v3499_v3 = vunpack.c.h.bf16 %v3559_v53  ;;  %v3502_v2 = vunpack.c.l.bf16 %v3560_v44 }
 0x330   : > { %v2619_v60 = vadd.f32 %v3450_v45, %v2617_v14  ;;  %4398 = vtanh.f32 %v2733_v19  ;;  %v3503_v50 = vunpack.c.h.bf16 %v3560_v44 }
 0x331   : > { %v4387_v16 = vpop.eup %4386  ;;  %3546 = vst [vmem:[#allocation2 + $0x10] sm:$0xff] %v3442_v20   ;;  %v2620_v15 = vadd.f32 %v3451_v12, %v2618_v54  ;;  %4400 = vtanh.f32 %v2734_v49 }
 0x332   : > { %v4389_v61 = vpop.eup %4388  ;;  %v2649_v29 = vmul.f32 %v4387_v16, %v3459_v17 }
 0x333   : > { %v3455_v30 = vpack.c.bf16 %v2620_v15, %v2619_v60  ;;  %v2650_v28 = vmul.f32 %v4389_v61, %v3460_v21 }
 0x334   : > { %v2651_v35 = vadd.f32 %v3463_v23, %v2649_v29 }
 0x335   : > { %v4391_v52 = vpop.eup %4390  ;;  %3549 = vst [vmem:[#allocation2 + $0x18] sm:$0xff] %v3455_v30   ;;  %v2652_v6 = vadd.f32 %v3464_v18, %v2650_v28 }
 0x336   : > { %v4393_v42 = vpop.eup %4392  ;;  %v2681_v8 = vmul.f32 %v4391_v52, %v3472_v32 }
 0x337   : > { %v3468_v31 = vpack.c.bf16 %v2652_v6, %v2651_v35  ;;  %v2682_v37 = vmul.f32 %v4393_v42, %v3473_v57 }
 0x338   : > { %v2683_v0 = vadd.f32 %v3476_v43, %v2681_v8 }
 0x339   : > { %v4395_v7 = vpop.eup %4394  ;;  %3552 = vst [vmem:[#allocation2 + $0x20] sm:$0xff] %v3468_v31   ;;  %v2684_v34 = vadd.f32 %v3477_v38, %v2682_v37 }
 0x33a   : > { %v4397_v36 = vpop.eup %4396  ;;  %v2713_v58 = vmul.f32 %v4395_v7, %v3485_v47 }
 0x33b   : > { %v3481_v62 = vpack.c.bf16 %v2684_v34, %v2683_v0  ;;  %v2714_v51 = vmul.f32 %v4397_v36, %v3486_v26 }
 0x33c   : > { %v2715_v11 = vadd.f32 %v3489_v55, %v2713_v58 }
 0x33d   : > { %v4399_v40 = vpop.eup %4398  ;;  %3555 = vst [vmem:[#allocation2 + $0x28] sm:$0xff] %v3481_v62   ;;  %v2716_v5 = vadd.f32 %v3490_v63, %v2714_v51 }
 0x33e   : > { %v4401_v9 = vpop.eup %4400  ;;  %v2745_v45 = vmul.f32 %v4399_v40, %v3498_v59 }
 0x33f   : > { %v3494_v13 = vpack.c.bf16 %v2716_v5, %v2715_v11  ;;  %v2746_v56 = vmul.f32 %v4401_v9, %v3499_v3 }
 0x340   : > { %v2747_v25 = vadd.f32 %v3502_v2, %v2745_v45 }
 0x341   : > { %3558 = vst [vmem:[#allocation2 + $0x30] sm:$0xff] %v3494_v13   ;;  %v2748_v4 = vadd.f32 %v3503_v50, %v2746_v56  ;;  %2762 = sbr.rel (%p3160_p9) target bundleno = 1010 (0x3f2), region = 64 }
 0x343   : > { %v3507_v46 = vpack.c.bf16 %v2748_v4, %v2747_v25 }
 0x345   : > { %3561 = vst [vmem:[#allocation2 + $0x38] sm:$0xff] %v3507_v46  }
 0x34c   : > { %v3562_v1 = vld [vmem:[#allocation2 + $0x38] sm:$0xff]  }
 0x34d   : > { %v3511_v10 = vunpack.c.l.bf16 %v3562_v1  ;;  %v3512_v39 = vunpack.c.h.bf16 %v3562_v1 }
 0x34f   : > { %v2767_v12 = vmul.f32 %v3511_v10, %v3511_v10  ;;  %v2768_v27 = vmul.f32 %v3512_v39, %v3512_v39 }
 0x351   : > { %2769 = vadd.xlane.f32.xlu0 %v2767_v12 }
 0x355   : > { %2771 = vadd.xlane.f32.xlu0 %v2768_v27 }
 0x3da   : > { %v2770_v48 = vpop.xlane.xlu0 %2769 }
 0x3db   : > { %v2773_v14 = vmax.f32 %v2770_v48, 1e-12 }
 0x3dd   : > { %4402 = vrsqrt.f32 %v2773_v14 }
 0x3de   : > { %v2772_v17 = vpop.xlane.xlu0 %2771 }
 0x3df   : > { %v2774_v19 = vmax.f32 %v2772_v17, 1e-12 }
 0x3e1   : > { %4404 = vrsqrt.f32 %v2774_v19 }
 0x3ea   : > { %v4403_v49 = vpop.eup %4402 }
 0x3eb   : > { %v2777_v20 = vmul.f32 %v4403_v49, %v3511_v10 }
 0x3ed   : > { %2779 = vst [vmem:[#allocation14] sm:$0xff] %v2777_v20 }
 0x3ee   : > { %v4405_v54 = vpop.eup %4404 }
 0x3ef   : > { %v2778_v21 = vmul.f32 %v4405_v54, %v3512_v39 }
 0x3f1   : > { %2780 = vst [vmem:[#allocation14 + $0x8] sm:$0xff] %v2778_v21 }
 0x3f2 PF: > { %p3953_p13 = scmp.eq.s32.totalorder %s4708_s24, 3  ;;  %s4636_s21 = smov [#allocation14]  }
 0x3f3   : > { %s2790_s25 = sshll.u32 %s4636_s21, 4  ;;  %s2791_s25 = int_to_ptr.vmem [resolvable:$true] %s2790_s25 }
 0x3f4   : > { %s4514_s14 = scalar_lea.vmem %s2791_s25, 256  ;;  %p4521_p2 = scmp.lt.s32.totalorder %s2791_s25, %s2791_s25 }
 0x3f5   : > { %p4515_p1 = scmp.ne.s32.totalorder %s2791_s25, %s4514_s14  ;;  %p4522_p0 = scmp.lt.s32.totalorder %s4514_s14, %s4514_s14 }
 0x3f7   : > { %p4516_p10 = pnand %p4515_p1, %p3953_p13  ;;  %p4523_p6 = por %p4522_p0, %p4521_p2 }
 0x3f9   : > { %p4517_p8 = pneg %p4516_p10 }
 0x3fb   : > { %p4524_p3 = pnand %p4523_p6, %p4517_p8 }
 0x3fd   : > { %4527 = shalt.err (!%p4524_p3)
}
 0x3fe   : > { %s4637_s6 = smov 128   ;;  %s4638_s27 = smov 8  }
 0x3ff   : > { %s5246_s7 = sld [smem:[#allocation21_spill]] }
 0x405   : > { %3931 = dma.vmem_to_hbm [thread:$0]  (%p3953_p13), %s2791_s25, 256, %s5246_s7, [#allocation9], %s4637_s6, %s4637_s6, %s4638_s27  }
 0x406   : > { %4591 = dma.done.wait (%p3953_p13), [#allocation9], 256  }
 0x407   : > { %4593 = vsyncadd (%p3953_p13), [#allocation9], 4294967040 }
 0x408 PF: > { %s17_s23 = sadd.s32 1, %s4628_s23   ;;  %s5247_s15 = smov %s4600_s16 }
 0x409   : > { %p14_p7 = scmp.ge.s32.totalorder %s17_s23, 6   ;;  %s5248_s16 = smov %s4604_s17 }
 0x40a   : > { %s5249_s17 = smov %s4801_s10  ;;  %s5250_s18 = smov %s4612_s19 }
 0x40b   : > { %s5251_s19 = smov %s4616_s20  ;;  %s5252_s20 = smov %s4766_s8 }
 0x40c   : > { %s5253_s21 = smov %s4624_s22  ;;  %s5254_s22 = smov %s5256_s30 }
 0x40d   :  { %16 = sbr.rel (!%p14_p7) target bundleno = 10 (0xa), region = 110 }
 0x412   :  { %2806 = vsyncpa [#allocation8], 1 }
 0x413   :  { %2808 = vsyncpa [#allocation8 + $0x1], 1 }
 0x414   :  { %2809 = vsyncpa [#allocation11], 1 }
 0x415   :  { %2810 = vsyncpa [#allocation9], 1 }
 0x416   :  { %2812 = vsyncpa [#allocation9 + $0x1], 1 }

</bundles_post_ra>
